<compile_context>
chip_gen: v6e
topology: v6e:2x2x1
jax: 0.10.0
libtpu: 0.0.40
codegen_flags: <defaults>
</compile_context>

<pallas_src>
import functools

import jax
import jax.numpy as jnp
from jax import lax
from jax.experimental import pallas as pl
from jax.experimental.pallas import tpu as pltpu

# ---- module hyper-parameters (from the PyTorch script) ----
N_EMBD = 384
N_HEAD = 6
HEAD_SIZE = N_EMBD // N_HEAD      # 64
BLOCK_SIZE = 256                  # max sequence length for the causal mask
LN_EPS = 1e-5
_MASK_NEG = -1e30                 # large finite, bf16/exp safe


def _layernorm(x, gamma, beta):
    # PyTorch nn.LayerNorm semantics: biased variance, eps inside sqrt. f32.
    mu = jnp.mean(x, axis=-1, keepdims=True)
    var = jnp.mean((x - mu) ** 2, axis=-1, keepdims=True)
    return (x - mu) * lax.rsqrt(var + LN_EPS) * gamma + beta


def block_kernel(
    x_ref,                                    # (BB, T, C) f32
    mask_ref,                                 # (T, T)     f32 additive causal
    ln1_g_ref, ln1_b_ref,                     # (1, C)     f32
    wqkv_ref,                                 # (C, 3C)    bf16  [Wq*s | Wk | Wv]
    wp_ref, bp_ref,                           # (C, C) bf16, (1, C) f32
    ln2_g_ref, ln2_b_ref,                     # (1, C)     f32
    w1_ref, b1_ref,                           # (C, 4C) bf16, (1, 4C) f32
    w2_ref, b2_ref,                           # (4C, C) bf16, (1, C) f32
    o_ref,                                    # (BB, T, C)
    *, n_head, head_size, bb,
):
    C = n_head * head_size
    x = x_ref[...]                            # (BB, T, C) f32
    T = x.shape[1]
    N = bb * T
    x2d = x.reshape(N, C)                     # leading-dim merge (free)

    # ---------------- self-attention branch ----------------
    xn = _layernorm(x2d, ln1_g_ref[0], ln1_b_ref[0])

    # One fused QKV matmul over all BB*T rows: bf16 MXU inputs, f32 acc,
    # cast straight back to bf16 so the f32 intermediate is transient.
    qkv = jnp.dot(xn.astype(jnp.bfloat16), wqkv_ref[...],
                  preferred_element_type=jnp.float32).astype(jnp.bfloat16)
    qkv = qkv.reshape(bb, T, 3 * C)
    q = qkv[:, :, :C]                         # scale pre-folded into weights
    k = qkv[:, :, C:2 * C]
    v = qkv[:, :, 2 * C:]

    mask = mask_ref[...]                      # (T, T); broadcasts over bb

    head_outs = []
    for h in range(n_head):                   # static unroll (6 heads)
        sl = slice(h * head_size, (h + 1) * head_size)
        qh, kh, vh = q[:, :, sl], k[:, :, sl], v[:, :, sl]   # bf16 (BB, T, 64)

        # Batched scores; contraction over d consumed by the MXU (no .T).
        wei = jnp.einsum('bqd,bkd->bqk', qh, kh,
                         preferred_element_type=jnp.float32) + mask

        # explicit softmax (f32); reciprocal lands on the idle EUP slot
        m = jnp.max(wei, axis=-1, keepdims=True)
        p = jnp.exp(wei - m)
        p = p * pl.reciprocal(jnp.sum(p, axis=-1, keepdims=True), approx=True)

        head_outs.append(
            jnp.einsum('bqk,bkd->bqd', p.astype(jnp.bfloat16), vh,
                       preferred_element_type=jnp.float32).astype(jnp.bfloat16))

    # Single full-depth output projection (K = C) over the concatenated heads.
    cat = jnp.concatenate(head_outs, axis=-1).reshape(N, C)          # bf16
    sa = jnp.dot(cat, wp_ref[...],
                 preferred_element_type=jnp.float32) + bp_ref[0]

    x1 = x2d + sa                                                    # residual 1

    # ---------------- feed-forward branch ----------------
    xn2 = _layernorm(x1, ln2_g_ref[0], ln2_b_ref[0])
    h1 = jnp.dot(xn2.astype(jnp.bfloat16), w1_ref[...],
                 preferred_element_type=jnp.float32) + b1_ref[0]
    h1 = jnp.maximum(h1, 0.0).astype(jnp.bfloat16)                   # ReLU, bf16
    ff = jnp.dot(h1, w2_ref[...],
                 preferred_element_type=jnp.float32) + b2_ref[0]

    o_ref[...] = (x1 + ff).reshape(bb, T, C).astype(o_ref.dtype)     # residual 2


def _tpu_vmem_capacity():
    try:
        return int(pltpu.get_tpu_info().vmem_capacity_bytes)
    except Exception:
        return 64 * 1024 * 1024      # conservative (v7x per-TC VMEM)


def _pick_bb(batch, max_bb):
    # Largest divisor of `batch` <= max_bb that still leaves >= 2 grid steps
    # (keeps both TensorCores busy on v7x); falls back to 1.
    bb = 1
    for cand in range(1, min(batch, max_bb) + 1):
        if batch % cand == 0 and batch // cand >= 2:
            bb = cand
    return bb


def _const_spec(shape):
    index_map = lambda b: (0,) * len(shape)
    try:
        # Weights / biases / mask never change across grid steps: single-buffer.
        return pl.BlockSpec(shape, index_map, pipeline_mode=pl.Buffered(1))
    except Exception:
        return pl.BlockSpec(shape, index_map)


def transformer_block(x, params):
    """x: (B, T, C) float32.  params: dict of weight arrays (see init_params)."""
    B, T, C = x.shape
    H = 4 * C
    assert C == N_EMBD and T <= BLOCK_SIZE

    vmem_cap = _tpu_vmem_capacity()
    big_vmem = vmem_cap >= 96 * 1024 * 1024          # v5e / v6e (128 MiB)
    bb = _pick_bb(B, 8 if big_vmem else 4)           # batch rows per grid step
    vmem_limit = min((vmem_cap * 3) // 4, 100 * 1024 * 1024)

    # Additive causal mask: 0 where attended, large negative where masked.
    causal = jnp.tril(jnp.ones((T, T), dtype=bool))
    mask = jnp.where(causal, 0.0, _MASK_NEG).astype(jnp.float32)

    in_specs = [
        pl.BlockSpec((bb, T, C), lambda b: (b, 0, 0)),   # x
        _const_spec((T, T)),                             # additive causal mask
        _const_spec((1, C)), _const_spec((1, C)),        # ln1 gamma/beta
        _const_spec((C, 3 * C)),                         # fused Wqkv (bf16)
        _const_spec((C, C)), _const_spec((1, C)),        # Wproj (bf16), bproj
        _const_spec((1, C)), _const_spec((1, C)),        # ln2 gamma/beta
        _const_spec((C, H)), _const_spec((1, H)),        # W1 (bf16), b1
        _const_spec((H, C)), _const_spec((1, C)),        # W2 (bf16), b2
    ]

    kernel = functools.partial(block_kernel, n_head=N_HEAD,
                               head_size=HEAD_SIZE, bb=bb)

    return pl.pallas_call(
        kernel,
        out_shape=jax.ShapeDtypeStruct((B, T, C), x.dtype),
        grid_spec=pltpu.PrefetchScalarGridSpec(
            num_scalar_prefetch=0,
            grid=(B // bb,),
            in_specs=in_specs,
            out_specs=pl.BlockSpec((bb, T, C), lambda b: (b, 0, 0)),
        ),
        compiler_params=pltpu.CompilerParams(
            dimension_semantics=("parallel",),
            vmem_limit_bytes=vmem_limit,
        ),
    )(
        x, mask,
        params["ln1_g"], params["ln1_b"],
        params["wqkv"],
        params["wp"], params["bp"],
        params["ln2_g"], params["ln2_b"],
        params["w1"], params["b1"],
        params["w2"], params["b2"],
    )


def init_params(key, C=N_EMBD):
    H = 4 * C
    ks = jax.random.split(key, 8)
    s = 0.02
    bf = jnp.bfloat16
    # Fused [Wq | Wk | Wv]; within each C-wide block, columns h*64:(h+1)*64
    # belong to head h -- matches the PyTorch concat order.  The attention
    # 1/sqrt(head_size) scale is folded into the Q columns at weight time.
    wqkv = s * jax.random.normal(ks[0], (C, 3 * C), jnp.float32)
    wqkv = wqkv.at[:, :C].multiply(HEAD_SIZE ** (-0.5))
    return {
        "ln1_g": jnp.ones((1, C), jnp.float32),
        "ln1_b": jnp.zeros((1, C), jnp.float32),
        "wqkv": wqkv.astype(bf),
        # Wp rows are in head-concat order (== proj.weight.T).
        "wp": (s * jax.random.normal(ks[1], (C, C), jnp.float32)).astype(bf),
        "bp": s * jax.random.normal(ks[2], (1, C), jnp.float32),
        "ln2_g": jnp.ones((1, C), jnp.float32),
        "ln2_b": jnp.zeros((1, C), jnp.float32),
        "w1": (s * jax.random.normal(ks[3], (C, H), jnp.float32)).astype(bf),
        "b1": jnp.zeros((1, H), jnp.float32),
        "w2": (s * jax.random.normal(ks[4], (H, C), jnp.float32)).astype(bf),
        "b2": jnp.zeros((1, C), jnp.float32),
    }


if __name__ == "__main__":
    key = jax.random.PRNGKey(0)
    k_x, k_p = jax.random.split(key)

    B, T, C = 2, 8, N_EMBD          # small batch / seq, full n_embd=384
    x = jax.random.normal(k_x, (B, T, C), jnp.float32)
    params = init_params(k_p)

    out = transformer_block(x, params)
    out = jax.block_until_ready(out)

    assert out.shape == (B, T, C)
    assert bool(jnp.all(jnp.isfinite(out)))
    print("KERNEL_OK")
</pallas_src>

<mosaic_0001>
module attributes {stable_mosaic.version = 11 : i64} {
  func.func @block_kernel(%arg0: i32, %arg1: memref<1x8x384xf32, #tpu.memory_space<vmem>>, %arg2: memref<8x8xf32, #tpu.memory_space<vmem>>, %arg3: memref<1x384xf32, #tpu.memory_space<vmem>>, %arg4: memref<1x384xf32, #tpu.memory_space<vmem>>, %arg5: memref<384x1152xbf16, #tpu.memory_space<vmem>>, %arg6: memref<384x384xbf16, #tpu.memory_space<vmem>>, %arg7: memref<1x384xf32, #tpu.memory_space<vmem>>, %arg8: memref<1x384xf32, #tpu.memory_space<vmem>>, %arg9: memref<1x384xf32, #tpu.memory_space<vmem>>, %arg10: memref<384x1536xbf16, #tpu.memory_space<vmem>>, %arg11: memref<1x1536xf32, #tpu.memory_space<vmem>>, %arg12: memref<1536x384xbf16, #tpu.memory_space<vmem>>, %arg13: memref<1x384xf32, #tpu.memory_space<vmem>>, %arg14: memref<1x8x384xf32, #tpu.memory_space<vmem>>) attributes {dimension_semantics = [#tpu.dimension_semantics<parallel>], iteration_bounds = array<i64: 2>, scalar_prefetch = 0 : i64, scratch_operands = 0 : i64, tpu.core_type = #tpu.core_type<tc>, window_params = [{transform_indices = @transform_0, window_bounds = array<i64: 1, 8, 384>}, {pipeline_mode = #tpu.pipeline_mode<synchronous>, transform_indices = @transform_1, window_bounds = array<i64: 8, 8>}, {pipeline_mode = #tpu.pipeline_mode<synchronous>, transform_indices = @transform_2, window_bounds = array<i64: 1, 384>}, {pipeline_mode = #tpu.pipeline_mode<synchronous>, transform_indices = @transform_3, window_bounds = array<i64: 1, 384>}, {pipeline_mode = #tpu.pipeline_mode<synchronous>, transform_indices = @transform_4, window_bounds = array<i64: 384, 1152>}, {pipeline_mode = #tpu.pipeline_mode<synchronous>, transform_indices = @transform_5, window_bounds = array<i64: 384, 384>}, {pipeline_mode = #tpu.pipeline_mode<synchronous>, transform_indices = @transform_6, window_bounds = array<i64: 1, 384>}, {pipeline_mode = #tpu.pipeline_mode<synchronous>, transform_indices = @transform_7, window_bounds = array<i64: 1, 384>}, {pipeline_mode = #tpu.pipeline_mode<synchronous>, transform_indices = @transform_8, window_bounds = array<i64: 1, 384>}, {pipeline_mode = #tpu.pipeline_mode<synchronous>, transform_indices = @transform_9, window_bounds = array<i64: 384, 1536>}, {pipeline_mode = #tpu.pipeline_mode<synchronous>, transform_indices = @transform_10, window_bounds = array<i64: 1, 1536>}, {pipeline_mode = #tpu.pipeline_mode<synchronous>, transform_indices = @transform_11, window_bounds = array<i64: 1536, 384>}, {pipeline_mode = #tpu.pipeline_mode<synchronous>, transform_indices = @transform_12, window_bounds = array<i64: 1, 384>}, {transform_indices = @transform_13, window_bounds = array<i64: 1, 8, 384>}]} {
    %c0 = arith.constant 0 : index
    %c0_0 = arith.constant 0 : index
    %c0_1 = arith.constant 0 : index
    %0 = vector.load %arg1[%c0, %c0_0, %c0_1] : memref<1x8x384xf32, #tpu.memory_space<vmem>>, vector<1x8x384xf32>
    %1 = vector.shape_cast %0 : vector<1x8x384xf32> to vector<8x384xf32>
    %c0_2 = arith.constant 0 : index
    %c0_3 = arith.constant 0 : index
    %2 = vector.load %arg3[%c0_2, %c0_3] : memref<1x384xf32, #tpu.memory_space<vmem>>, vector<1x384xf32>
    %3 = vector.shape_cast %2 : vector<1x384xf32> to vector<384xf32>
    %c0_4 = arith.constant 0 : index
    %c0_5 = arith.constant 0 : index
    %4 = vector.load %arg4[%c0_4, %c0_5] : memref<1x384xf32, #tpu.memory_space<vmem>>, vector<1x384xf32>
    %5 = vector.shape_cast %4 : vector<1x384xf32> to vector<384xf32>
    %cst = arith.constant dense<0.000000e+00> : vector<8xf32>
    %6 = vector.multi_reduction <add>, %1, %cst [1] : vector<8x384xf32> to vector<8xf32>
    %7 = vector.shape_cast %6 : vector<8xf32> to vector<8x1xf32>
    %cst_6 = arith.constant 3.840000e+02 : f32
    %8 = vector.broadcast %cst_6 : f32 to vector<8x1xf32>
    %9 = arith.divf %7, %8 : vector<8x1xf32>
    %10 = vector.broadcast %9 : vector<8x1xf32> to vector<8x384xf32>
    %11 = arith.subf %1, %10 : vector<8x384xf32>
    %12 = arith.mulf %11, %11 : vector<8x384xf32>
    %cst_7 = arith.constant dense<0.000000e+00> : vector<8xf32>
    %13 = vector.multi_reduction <add>, %12, %cst_7 [1] : vector<8x384xf32> to vector<8xf32>
    %14 = vector.shape_cast %13 : vector<8xf32> to vector<8x1xf32>
    %cst_8 = arith.constant 3.840000e+02 : f32
    %15 = vector.broadcast %cst_8 : f32 to vector<8x1xf32>
    %16 = arith.divf %14, %15 : vector<8x1xf32>
    %17 = vector.broadcast %9 : vector<8x1xf32> to vector<8x384xf32>
    %18 = arith.subf %1, %17 : vector<8x384xf32>
    %cst_9 = arith.constant 9.99999974E-6 : f32
    %19 = vector.broadcast %cst_9 : f32 to vector<8x1xf32>
    %20 = arith.addf %16, %19 : vector<8x1xf32>
    %21 = math.rsqrt %20 : vector<8x1xf32>
    %22 = vector.broadcast %21 : vector<8x1xf32> to vector<8x384xf32>
    %23 = arith.mulf %18, %22 : vector<8x384xf32>
    %24 = vector.shape_cast %3 : vector<384xf32> to vector<1x384xf32>
    %25 = vector.broadcast %24 : vector<1x384xf32> to vector<8x384xf32>
    %26 = arith.mulf %23, %25 : vector<8x384xf32>
    %27 = vector.shape_cast %5 : vector<384xf32> to vector<1x384xf32>
    %28 = vector.broadcast %27 : vector<1x384xf32> to vector<8x384xf32>
    %29 = arith.addf %26, %28 : vector<8x384xf32>
    %30 = arith.truncf %29 : vector<8x384xf32> to vector<8x384xbf16>
    %c0_10 = arith.constant 0 : index
    %c0_11 = arith.constant 0 : index
    %31 = vector.load %arg5[%c0_10, %c0_11] : memref<384x1152xbf16, #tpu.memory_space<vmem>>, vector<384x1152xbf16>
    %cst_12 = arith.constant dense<0.000000e+00> : vector<8x1152xf32>
    %32 = tpu.matmul %30, %31, %cst_12 {dimension_numbers = #tpu.dot_dimension_numbers<[1], [0], [0], [1], [0, 0, 1, 1], [], []>} : vector<8x384xbf16>, vector<384x1152xbf16>, vector<8x1152xf32> -> vector<8x1152xf32>
    %33 = arith.truncf %32 : vector<8x1152xf32> to vector<8x1152xbf16>
    %34 = vector.shape_cast %33 : vector<8x1152xbf16> to vector<1x8x1152xbf16>
    %35 = vector.extract_strided_slice %34 {offsets = [0, 0, 0], sizes = [1, 8, 384], strides = [1, 1, 1]} : vector<1x8x1152xbf16> to vector<1x8x384xbf16>
    %36 = vector.extract_strided_slice %34 {offsets = [0, 0, 384], sizes = [1, 8, 384], strides = [1, 1, 1]} : vector<1x8x1152xbf16> to vector<1x8x384xbf16>
    %37 = vector.extract_strided_slice %34 {offsets = [0, 0, 768], sizes = [1, 8, 384], strides = [1, 1, 1]} : vector<1x8x1152xbf16> to vector<1x8x384xbf16>
    %c0_13 = arith.constant 0 : index
    %c0_14 = arith.constant 0 : index
    %38 = vector.load %arg2[%c0_13, %c0_14] : memref<8x8xf32, #tpu.memory_space<vmem>>, vector<8x8xf32>
    %39 = vector.extract_strided_slice %35 {offsets = [0, 0, 0], sizes = [1, 8, 64], strides = [1, 1, 1]} : vector<1x8x384xbf16> to vector<1x8x64xbf16>
    %40 = vector.extract_strided_slice %36 {offsets = [0, 0, 0], sizes = [1, 8, 64], strides = [1, 1, 1]} : vector<1x8x384xbf16> to vector<1x8x64xbf16>
    %41 = vector.extract_strided_slice %37 {offsets = [0, 0, 0], sizes = [1, 8, 64], strides = [1, 1, 1]} : vector<1x8x384xbf16> to vector<1x8x64xbf16>
    "tpu.trace_start"() <{level = 10 : i32, message = "bqd,bkd->bqk"}> : () -> ()
    %cst_15 = arith.constant dense<0.000000e+00> : vector<1x8x8xf32>
    %42 = tpu.matmul %39, %40, %cst_15 {dimension_numbers = #tpu.dot_dimension_numbers<[2], [2], [1], [1], [0, 0, 0, 1, 1, 1], [0], [0]>} : vector<1x8x64xbf16>, vector<1x8x64xbf16>, vector<1x8x8xf32> -> vector<1x8x8xf32>
    "tpu.trace_stop"() : () -> ()
    %43 = vector.shape_cast %38 : vector<8x8xf32> to vector<1x8x8xf32>
    %44 = arith.addf %42, %43 : vector<1x8x8xf32>
    %cst_16 = arith.constant dense<0xFF800000> : vector<1x8xf32>
    %45 = vector.multi_reduction <maximumf>, %44, %cst_16 [2] : vector<1x8x8xf32> to vector<1x8xf32>
    %46 = vector.shape_cast %45 : vector<1x8xf32> to vector<1x8x1xf32>
    %47 = vector.broadcast %46 : vector<1x8x1xf32> to vector<1x8x8xf32>
    %48 = arith.subf %44, %47 : vector<1x8x8xf32>
    %49 = math.exp %48 : vector<1x8x8xf32>
    %cst_17 = arith.constant dense<0.000000e+00> : vector<1x8xf32>
    %50 = vector.multi_reduction <add>, %49, %cst_17 [2] : vector<1x8x8xf32> to vector<1x8xf32>
    %51 = vector.shape_cast %50 : vector<1x8xf32> to vector<1x8x1xf32>
    %52 = tpu.reciprocal %51 {approx = true} : vector<1x8x1xf32> -> vector<1x8x1xf32>
    %53 = vector.broadcast %52 : vector<1x8x1xf32> to vector<1x8x8xf32>
    %54 = arith.mulf %49, %53 : vector<1x8x8xf32>
    %55 = arith.truncf %54 : vector<1x8x8xf32> to vector<1x8x8xbf16>
    "tpu.trace_start"() <{level = 10 : i32, message = "bqk,bkd->bqd"}> : () -> ()
    %cst_18 = arith.constant dense<0.000000e+00> : vector<1x8x64xf32>
    %56 = tpu.matmul %55, %41, %cst_18 {dimension_numbers = #tpu.dot_dimension_numbers<[2], [1], [1], [2], [0, 0, 0, 1, 1, 2], [0], [0]>} : vector<1x8x8xbf16>, vector<1x8x64xbf16>, vector<1x8x64xf32> -> vector<1x8x64xf32>
    "tpu.trace_stop"() : () -> ()
    %57 = arith.truncf %56 : vector<1x8x64xf32> to vector<1x8x64xbf16>
    %58 = vector.extract_strided_slice %35 {offsets = [0, 0, 64], sizes = [1, 8, 64], strides = [1, 1, 1]} : vector<1x8x384xbf16> to vector<1x8x64xbf16>
    %59 = vector.extract_strided_slice %36 {offsets = [0, 0, 64], sizes = [1, 8, 64], strides = [1, 1, 1]} : vector<1x8x384xbf16> to vector<1x8x64xbf16>
    %60 = vector.extract_strided_slice %37 {offsets = [0, 0, 64], sizes = [1, 8, 64], strides = [1, 1, 1]} : vector<1x8x384xbf16> to vector<1x8x64xbf16>
    "tpu.trace_start"() <{level = 10 : i32, message = "bqd,bkd->bqk"}> : () -> ()
    %cst_19 = arith.constant dense<0.000000e+00> : vector<1x8x8xf32>
    %61 = tpu.matmul %58, %59, %cst_19 {dimension_numbers = #tpu.dot_dimension_numbers<[2], [2], [1], [1], [0, 0, 0, 1, 1, 1], [0], [0]>} : vector<1x8x64xbf16>, vector<1x8x64xbf16>, vector<1x8x8xf32> -> vector<1x8x8xf32>
    "tpu.trace_stop"() : () -> ()
    %62 = vector.shape_cast %38 : vector<8x8xf32> to vector<1x8x8xf32>
    %63 = arith.addf %61, %62 : vector<1x8x8xf32>
    %cst_20 = arith.constant dense<0xFF800000> : vector<1x8xf32>
    %64 = vector.multi_reduction <maximumf>, %63, %cst_20 [2] : vector<1x8x8xf32> to vector<1x8xf32>
    %65 = vector.shape_cast %64 : vector<1x8xf32> to vector<1x8x1xf32>
    %66 = vector.broadcast %65 : vector<1x8x1xf32> to vector<1x8x8xf32>
    %67 = arith.subf %63, %66 : vector<1x8x8xf32>
    %68 = math.exp %67 : vector<1x8x8xf32>
    %cst_21 = arith.constant dense<0.000000e+00> : vector<1x8xf32>
    %69 = vector.multi_reduction <add>, %68, %cst_21 [2] : vector<1x8x8xf32> to vector<1x8xf32>
    %70 = vector.shape_cast %69 : vector<1x8xf32> to vector<1x8x1xf32>
    %71 = tpu.reciprocal %70 {approx = true} : vector<1x8x1xf32> -> vector<1x8x1xf32>
    %72 = vector.broadcast %71 : vector<1x8x1xf32> to vector<1x8x8xf32>
    %73 = arith.mulf %68, %72 : vector<1x8x8xf32>
    %74 = arith.truncf %73 : vector<1x8x8xf32> to vector<1x8x8xbf16>
    "tpu.trace_start"() <{level = 10 : i32, message = "bqk,bkd->bqd"}> : () -> ()
    %cst_22 = arith.constant dense<0.000000e+00> : vector<1x8x64xf32>
    %75 = tpu.matmul %74, %60, %cst_22 {dimension_numbers = #tpu.dot_dimension_numbers<[2], [1], [1], [2], [0, 0, 0, 1, 1, 2], [0], [0]>} : vector<1x8x8xbf16>, vector<1x8x64xbf16>, vector<1x8x64xf32> -> vector<1x8x64xf32>
    "tpu.trace_stop"() : () -> ()
    %76 = arith.truncf %75 : vector<1x8x64xf32> to vector<1x8x64xbf16>
    %77 = vector.extract_strided_slice %35 {offsets = [0, 0, 128], sizes = [1, 8, 64], strides = [1, 1, 1]} : vector<1x8x384xbf16> to vector<1x8x64xbf16>
    %78 = vector.extract_strided_slice %36 {offsets = [0, 0, 128], sizes = [1, 8, 64], strides = [1, 1, 1]} : vector<1x8x384xbf16> to vector<1x8x64xbf16>
    %79 = vector.extract_strided_slice %37 {offsets = [0, 0, 128], sizes = [1, 8, 64], strides = [1, 1, 1]} : vector<1x8x384xbf16> to vector<1x8x64xbf16>
    "tpu.trace_start"() <{level = 10 : i32, message = "bqd,bkd->bqk"}> : () -> ()
    %cst_23 = arith.constant dense<0.000000e+00> : vector<1x8x8xf32>
    %80 = tpu.matmul %77, %78, %cst_23 {dimension_numbers = #tpu.dot_dimension_numbers<[2], [2], [1], [1], [0, 0, 0, 1, 1, 1], [0], [0]>} : vector<1x8x64xbf16>, vector<1x8x64xbf16>, vector<1x8x8xf32> -> vector<1x8x8xf32>
    "tpu.trace_stop"() : () -> ()
    %81 = vector.shape_cast %38 : vector<8x8xf32> to vector<1x8x8xf32>
    %82 = arith.addf %80, %81 : vector<1x8x8xf32>
    %cst_24 = arith.constant dense<0xFF800000> : vector<1x8xf32>
    %83 = vector.multi_reduction <maximumf>, %82, %cst_24 [2] : vector<1x8x8xf32> to vector<1x8xf32>
    %84 = vector.shape_cast %83 : vector<1x8xf32> to vector<1x8x1xf32>
    %85 = vector.broadcast %84 : vector<1x8x1xf32> to vector<1x8x8xf32>
    %86 = arith.subf %82, %85 : vector<1x8x8xf32>
    %87 = math.exp %86 : vector<1x8x8xf32>
    %cst_25 = arith.constant dense<0.000000e+00> : vector<1x8xf32>
    %88 = vector.multi_reduction <add>, %87, %cst_25 [2] : vector<1x8x8xf32> to vector<1x8xf32>
    %89 = vector.shape_cast %88 : vector<1x8xf32> to vector<1x8x1xf32>
    %90 = tpu.reciprocal %89 {approx = true} : vector<1x8x1xf32> -> vector<1x8x1xf32>
    %91 = vector.broadcast %90 : vector<1x8x1xf32> to vector<1x8x8xf32>
    %92 = arith.mulf %87, %91 : vector<1x8x8xf32>
    %93 = arith.truncf %92 : vector<1x8x8xf32> to vector<1x8x8xbf16>
    "tpu.trace_start"() <{level = 10 : i32, message = "bqk,bkd->bqd"}> : () -> ()
    %cst_26 = arith.constant dense<0.000000e+00> : vector<1x8x64xf32>
    %94 = tpu.matmul %93, %79, %cst_26 {dimension_numbers = #tpu.dot_dimension_numbers<[2], [1], [1], [2], [0, 0, 0, 1, 1, 2], [0], [0]>} : vector<1x8x8xbf16>, vector<1x8x64xbf16>, vector<1x8x64xf32> -> vector<1x8x64xf32>
    "tpu.trace_stop"() : () -> ()
    %95 = arith.truncf %94 : vector<1x8x64xf32> to vector<1x8x64xbf16>
    %96 = vector.extract_strided_slice %35 {offsets = [0, 0, 192], sizes = [1, 8, 64], strides = [1, 1, 1]} : vector<1x8x384xbf16> to vector<1x8x64xbf16>
    %97 = vector.extract_strided_slice %36 {offsets = [0, 0, 192], sizes = [1, 8, 64], strides = [1, 1, 1]} : vector<1x8x384xbf16> to vector<1x8x64xbf16>
    %98 = vector.extract_strided_slice %37 {offsets = [0, 0, 192], sizes = [1, 8, 64], strides = [1, 1, 1]} : vector<1x8x384xbf16> to vector<1x8x64xbf16>
    "tpu.trace_start"() <{level = 10 : i32, message = "bqd,bkd->bqk"}> : () -> ()
    %cst_27 = arith.constant dense<0.000000e+00> : vector<1x8x8xf32>
    %99 = tpu.matmul %96, %97, %cst_27 {dimension_numbers = #tpu.dot_dimension_numbers<[2], [2], [1], [1], [0, 0, 0, 1, 1, 1], [0], [0]>} : vector<1x8x64xbf16>, vector<1x8x64xbf16>, vector<1x8x8xf32> -> vector<1x8x8xf32>
    "tpu.trace_stop"() : () -> ()
    %100 = vector.shape_cast %38 : vector<8x8xf32> to vector<1x8x8xf32>
    %101 = arith.addf %99, %100 : vector<1x8x8xf32>
    %cst_28 = arith.constant dense<0xFF800000> : vector<1x8xf32>
    %102 = vector.multi_reduction <maximumf>, %101, %cst_28 [2] : vector<1x8x8xf32> to vector<1x8xf32>
    %103 = vector.shape_cast %102 : vector<1x8xf32> to vector<1x8x1xf32>
    %104 = vector.broadcast %103 : vector<1x8x1xf32> to vector<1x8x8xf32>
    %105 = arith.subf %101, %104 : vector<1x8x8xf32>
    %106 = math.exp %105 : vector<1x8x8xf32>
    %cst_29 = arith.constant dense<0.000000e+00> : vector<1x8xf32>
    %107 = vector.multi_reduction <add>, %106, %cst_29 [2] : vector<1x8x8xf32> to vector<1x8xf32>
    %108 = vector.shape_cast %107 : vector<1x8xf32> to vector<1x8x1xf32>
    %109 = tpu.reciprocal %108 {approx = true} : vector<1x8x1xf32> -> vector<1x8x1xf32>
    %110 = vector.broadcast %109 : vector<1x8x1xf32> to vector<1x8x8xf32>
    %111 = arith.mulf %106, %110 : vector<1x8x8xf32>
    %112 = arith.truncf %111 : vector<1x8x8xf32> to vector<1x8x8xbf16>
    "tpu.trace_start"() <{level = 10 : i32, message = "bqk,bkd->bqd"}> : () -> ()
    %cst_30 = arith.constant dense<0.000000e+00> : vector<1x8x64xf32>
    %113 = tpu.matmul %112, %98, %cst_30 {dimension_numbers = #tpu.dot_dimension_numbers<[2], [1], [1], [2], [0, 0, 0, 1, 1, 2], [0], [0]>} : vector<1x8x8xbf16>, vector<1x8x64xbf16>, vector<1x8x64xf32> -> vector<1x8x64xf32>
    "tpu.trace_stop"() : () -> ()
    %114 = arith.truncf %113 : vector<1x8x64xf32> to vector<1x8x64xbf16>
    %115 = vector.extract_strided_slice %35 {offsets = [0, 0, 256], sizes = [1, 8, 64], strides = [1, 1, 1]} : vector<1x8x384xbf16> to vector<1x8x64xbf16>
    %116 = vector.extract_strided_slice %36 {offsets = [0, 0, 256], sizes = [1, 8, 64], strides = [1, 1, 1]} : vector<1x8x384xbf16> to vector<1x8x64xbf16>
    %117 = vector.extract_strided_slice %37 {offsets = [0, 0, 256], sizes = [1, 8, 64], strides = [1, 1, 1]} : vector<1x8x384xbf16> to vector<1x8x64xbf16>
    "tpu.trace_start"() <{level = 10 : i32, message = "bqd,bkd->bqk"}> : () -> ()
    %cst_31 = arith.constant dense<0.000000e+00> : vector<1x8x8xf32>
    %118 = tpu.matmul %115, %116, %cst_31 {dimension_numbers = #tpu.dot_dimension_numbers<[2], [2], [1], [1], [0, 0, 0, 1, 1, 1], [0], [0]>} : vector<1x8x64xbf16>, vector<1x8x64xbf16>, vector<1x8x8xf32> -> vector<1x8x8xf32>
    "tpu.trace_stop"() : () -> ()
    %119 = vector.shape_cast %38 : vector<8x8xf32> to vector<1x8x8xf32>
    %120 = arith.addf %118, %119 : vector<1x8x8xf32>
    %cst_32 = arith.constant dense<0xFF800000> : vector<1x8xf32>
    %121 = vector.multi_reduction <maximumf>, %120, %cst_32 [2] : vector<1x8x8xf32> to vector<1x8xf32>
    %122 = vector.shape_cast %121 : vector<1x8xf32> to vector<1x8x1xf32>
    %123 = vector.broadcast %122 : vector<1x8x1xf32> to vector<1x8x8xf32>
    %124 = arith.subf %120, %123 : vector<1x8x8xf32>
    %125 = math.exp %124 : vector<1x8x8xf32>
    %cst_33 = arith.constant dense<0.000000e+00> : vector<1x8xf32>
    %126 = vector.multi_reduction <add>, %125, %cst_33 [2] : vector<1x8x8xf32> to vector<1x8xf32>
    %127 = vector.shape_cast %126 : vector<1x8xf32> to vector<1x8x1xf32>
    %128 = tpu.reciprocal %127 {approx = true} : vector<1x8x1xf32> -> vector<1x8x1xf32>
    %129 = vector.broadcast %128 : vector<1x8x1xf32> to vector<1x8x8xf32>
    %130 = arith.mulf %125, %129 : vector<1x8x8xf32>
    %131 = arith.truncf %130 : vector<1x8x8xf32> to vector<1x8x8xbf16>
    "tpu.trace_start"() <{level = 10 : i32, message = "bqk,bkd->bqd"}> : () -> ()
    %cst_34 = arith.constant dense<0.000000e+00> : vector<1x8x64xf32>
    %132 = tpu.matmul %131, %117, %cst_34 {dimension_numbers = #tpu.dot_dimension_numbers<[2], [1], [1], [2], [0, 0, 0, 1, 1, 2], [0], [0]>} : vector<1x8x8xbf16>, vector<1x8x64xbf16>, vector<1x8x64xf32> -> vector<1x8x64xf32>
    "tpu.trace_stop"() : () -> ()
    %133 = arith.truncf %132 : vector<1x8x64xf32> to vector<1x8x64xbf16>
    %134 = vector.extract_strided_slice %35 {offsets = [0, 0, 320], sizes = [1, 8, 64], strides = [1, 1, 1]} : vector<1x8x384xbf16> to vector<1x8x64xbf16>
    %135 = vector.extract_strided_slice %36 {offsets = [0, 0, 320], sizes = [1, 8, 64], strides = [1, 1, 1]} : vector<1x8x384xbf16> to vector<1x8x64xbf16>
    %136 = vector.extract_strided_slice %37 {offsets = [0, 0, 320], sizes = [1, 8, 64], strides = [1, 1, 1]} : vector<1x8x384xbf16> to vector<1x8x64xbf16>
    "tpu.trace_start"() <{level = 10 : i32, message = "bqd,bkd->bqk"}> : () -> ()
    %cst_35 = arith.constant dense<0.000000e+00> : vector<1x8x8xf32>
    %137 = tpu.matmul %134, %135, %cst_35 {dimension_numbers = #tpu.dot_dimension_numbers<[2], [2], [1], [1], [0, 0, 0, 1, 1, 1], [0], [0]>} : vector<1x8x64xbf16>, vector<1x8x64xbf16>, vector<1x8x8xf32> -> vector<1x8x8xf32>
    "tpu.trace_stop"() : () -> ()
    %138 = vector.shape_cast %38 : vector<8x8xf32> to vector<1x8x8xf32>
    %139 = arith.addf %137, %138 : vector<1x8x8xf32>
    %cst_36 = arith.constant dense<0xFF800000> : vector<1x8xf32>
    %140 = vector.multi_reduction <maximumf>, %139, %cst_36 [2] : vector<1x8x8xf32> to vector<1x8xf32>
    %141 = vector.shape_cast %140 : vector<1x8xf32> to vector<1x8x1xf32>
    %142 = vector.broadcast %141 : vector<1x8x1xf32> to vector<1x8x8xf32>
    %143 = arith.subf %139, %142 : vector<1x8x8xf32>
    %144 = math.exp %143 : vector<1x8x8xf32>
    %cst_37 = arith.constant dense<0.000000e+00> : vector<1x8xf32>
    %145 = vector.multi_reduction <add>, %144, %cst_37 [2] : vector<1x8x8xf32> to vector<1x8xf32>
    %146 = vector.shape_cast %145 : vector<1x8xf32> to vector<1x8x1xf32>
    %147 = tpu.reciprocal %146 {approx = true} : vector<1x8x1xf32> -> vector<1x8x1xf32>
    %148 = vector.broadcast %147 : vector<1x8x1xf32> to vector<1x8x8xf32>
    %149 = arith.mulf %144, %148 : vector<1x8x8xf32>
    %150 = arith.truncf %149 : vector<1x8x8xf32> to vector<1x8x8xbf16>
    "tpu.trace_start"() <{level = 10 : i32, message = "bqk,bkd->bqd"}> : () -> ()
    %cst_38 = arith.constant dense<0.000000e+00> : vector<1x8x64xf32>
    %151 = tpu.matmul %150, %136, %cst_38 {dimension_numbers = #tpu.dot_dimension_numbers<[2], [1], [1], [2], [0, 0, 0, 1, 1, 2], [0], [0]>} : vector<1x8x8xbf16>, vector<1x8x64xbf16>, vector<1x8x64xf32> -> vector<1x8x64xf32>
    "tpu.trace_stop"() : () -> ()
    %152 = arith.truncf %151 : vector<1x8x64xf32> to vector<1x8x64xbf16>
    %153 = tpu.concatenate %57, %76, %95, %114, %133, %152 in 2 : vector<1x8x64xbf16>, vector<1x8x64xbf16>, vector<1x8x64xbf16>, vector<1x8x64xbf16>, vector<1x8x64xbf16>, vector<1x8x64xbf16> -> vector<1x8x384xbf16>
    %154 = vector.shape_cast %153 : vector<1x8x384xbf16> to vector<8x384xbf16>
    %c0_39 = arith.constant 0 : index
    %c0_40 = arith.constant 0 : index
    %155 = vector.load %arg6[%c0_39, %c0_40] : memref<384x384xbf16, #tpu.memory_space<vmem>>, vector<384x384xbf16>
    %cst_41 = arith.constant dense<0.000000e+00> : vector<8x384xf32>
    %156 = tpu.matmul %154, %155, %cst_41 {dimension_numbers = #tpu.dot_dimension_numbers<[1], [0], [0], [1], [0, 0, 1, 1], [], []>} : vector<8x384xbf16>, vector<384x384xbf16>, vector<8x384xf32> -> vector<8x384xf32>
    %c0_42 = arith.constant 0 : index
    %c0_43 = arith.constant 0 : index
    %157 = vector.load %arg7[%c0_42, %c0_43] : memref<1x384xf32, #tpu.memory_space<vmem>>, vector<1x384xf32>
    %158 = vector.shape_cast %157 : vector<1x384xf32> to vector<384xf32>
    %159 = vector.shape_cast %158 : vector<384xf32> to vector<1x384xf32>
    %160 = vector.broadcast %159 : vector<1x384xf32> to vector<8x384xf32>
    %161 = arith.addf %156, %160 : vector<8x384xf32>
    %162 = arith.addf %1, %161 : vector<8x384xf32>
    %c0_44 = arith.constant 0 : index
    %c0_45 = arith.constant 0 : index
    %163 = vector.load %arg8[%c0_44, %c0_45] : memref<1x384xf32, #tpu.memory_space<vmem>>, vector<1x384xf32>
    %164 = vector.shape_cast %163 : vector<1x384xf32> to vector<384xf32>
    %c0_46 = arith.constant 0 : index
    %c0_47 = arith.constant 0 : index
    %165 = vector.load %arg9[%c0_46, %c0_47] : memref<1x384xf32, #tpu.memory_space<vmem>>, vector<1x384xf32>
    %166 = vector.shape_cast %165 : vector<1x384xf32> to vector<384xf32>
    %cst_48 = arith.constant dense<0.000000e+00> : vector<8xf32>
    %167 = vector.multi_reduction <add>, %162, %cst_48 [1] : vector<8x384xf32> to vector<8xf32>
    %168 = vector.shape_cast %167 : vector<8xf32> to vector<8x1xf32>
    %cst_49 = arith.constant 3.840000e+02 : f32
    %169 = vector.broadcast %cst_49 : f32 to vector<8x1xf32>
    %170 = arith.divf %168, %169 : vector<8x1xf32>
    %171 = vector.broadcast %170 : vector<8x1xf32> to vector<8x384xf32>
    %172 = arith.subf %162, %171 : vector<8x384xf32>
    %173 = arith.mulf %172, %172 : vector<8x384xf32>
    %cst_50 = arith.constant dense<0.000000e+00> : vector<8xf32>
    %174 = vector.multi_reduction <add>, %173, %cst_50 [1] : vector<8x384xf32> to vector<8xf32>
    %175 = vector.shape_cast %174 : vector<8xf32> to vector<8x1xf32>
    %cst_51 = arith.constant 3.840000e+02 : f32
    %176 = vector.broadcast %cst_51 : f32 to vector<8x1xf32>
    %177 = arith.divf %175, %176 : vector<8x1xf32>
    %178 = vector.broadcast %170 : vector<8x1xf32> to vector<8x384xf32>
    %179 = arith.subf %162, %178 : vector<8x384xf32>
    %cst_52 = arith.constant 9.99999974E-6 : f32
    %180 = vector.broadcast %cst_52 : f32 to vector<8x1xf32>
    %181 = arith.addf %177, %180 : vector<8x1xf32>
    %182 = math.rsqrt %181 : vector<8x1xf32>
    %183 = vector.broadcast %182 : vector<8x1xf32> to vector<8x384xf32>
    %184 = arith.mulf %179, %183 : vector<8x384xf32>
    %185 = vector.shape_cast %164 : vector<384xf32> to vector<1x384xf32>
    %186 = vector.broadcast %185 : vector<1x384xf32> to vector<8x384xf32>
    %187 = arith.mulf %184, %186 : vector<8x384xf32>
    %188 = vector.shape_cast %166 : vector<384xf32> to vector<1x384xf32>
    %189 = vector.broadcast %188 : vector<1x384xf32> to vector<8x384xf32>
    %190 = arith.addf %187, %189 : vector<8x384xf32>
    %191 = arith.truncf %190 : vector<8x384xf32> to vector<8x384xbf16>
    %c0_53 = arith.constant 0 : index
    %c0_54 = arith.constant 0 : index
    %192 = vector.load %arg10[%c0_53, %c0_54] : memref<384x1536xbf16, #tpu.memory_space<vmem>>, vector<384x1536xbf16>
    %cst_55 = arith.constant dense<0.000000e+00> : vector<8x1536xf32>
    %193 = tpu.matmul %191, %192, %cst_55 {dimension_numbers = #tpu.dot_dimension_numbers<[1], [0], [0], [1], [0, 0, 1, 1], [], []>} : vector<8x384xbf16>, vector<384x1536xbf16>, vector<8x1536xf32> -> vector<8x1536xf32>
    %c0_56 = arith.constant 0 : index
    %c0_57 = arith.constant 0 : index
    %194 = vector.load %arg11[%c0_56, %c0_57] : memref<1x1536xf32, #tpu.memory_space<vmem>>, vector<1x1536xf32>
    %195 = vector.shape_cast %194 : vector<1x1536xf32> to vector<1536xf32>
    %196 = vector.shape_cast %195 : vector<1536xf32> to vector<1x1536xf32>
    %197 = vector.broadcast %196 : vector<1x1536xf32> to vector<8x1536xf32>
    %198 = arith.addf %193, %197 : vector<8x1536xf32>
    %cst_58 = arith.constant 0.000000e+00 : f32
    %199 = vector.broadcast %cst_58 : f32 to vector<8x1536xf32>
    %200 = arith.maximumf %198, %199 : vector<8x1536xf32>
    %201 = arith.truncf %200 : vector<8x1536xf32> to vector<8x1536xbf16>
    %c0_59 = arith.constant 0 : index
    %c0_60 = arith.constant 0 : index
    %202 = vector.load %arg12[%c0_59, %c0_60] : memref<1536x384xbf16, #tpu.memory_space<vmem>>, vector<1536x384xbf16>
    %cst_61 = arith.constant dense<0.000000e+00> : vector<8x384xf32>
    %203 = tpu.matmul %201, %202, %cst_61 {dimension_numbers = #tpu.dot_dimension_numbers<[1], [0], [0], [1], [0, 0, 1, 1], [], []>} : vector<8x1536xbf16>, vector<1536x384xbf16>, vector<8x384xf32> -> vector<8x384xf32>
    %c0_62 = arith.constant 0 : index
    %c0_63 = arith.constant 0 : index
    %204 = vector.load %arg13[%c0_62, %c0_63] : memref<1x384xf32, #tpu.memory_space<vmem>>, vector<1x384xf32>
    %205 = vector.shape_cast %204 : vector<1x384xf32> to vector<384xf32>
    %206 = vector.shape_cast %205 : vector<384xf32> to vector<1x384xf32>
    %207 = vector.broadcast %206 : vector<1x384xf32> to vector<8x384xf32>
    %208 = arith.addf %203, %207 : vector<8x384xf32>
    %209 = arith.addf %162, %208 : vector<8x384xf32>
    %210 = vector.shape_cast %209 : vector<8x384xf32> to vector<1x8x384xf32>
    %c0_64 = arith.constant 0 : index
    %c0_65 = arith.constant 0 : index
    %c0_66 = arith.constant 0 : index
    %211 = vector.load %arg14[%c0_64, %c0_65, %c0_66] : memref<1x8x384xf32, #tpu.memory_space<vmem>>, vector<1x8x384xf32>
    tpu.vector_store %arg14[%c0_64, %c0_65, %c0_66], %210 {strides = array<i32>} : memref<1x8x384xf32, #tpu.memory_space<vmem>>, vector<1x8x384xf32>,
    return
  }
  func.func @transform_0(%arg0: i32) -> (i32, i32, i32) {
    %c0_i32 = arith.constant 0 : i32
    %c0_i32_0 = arith.constant 0 : i32
    %c0_i32_1 = arith.constant 0 : i32
    return %arg0, %c0_i32, %c0_i32_0 : i32, i32, i32
  }
  func.func @transform_1(%arg0: i32) -> (i32, i32) {
    %c0_i32 = arith.constant 0 : i32
    %c0_i32_0 = arith.constant 0 : i32
    %c0_i32_1 = arith.constant 0 : i32
    return %c0_i32, %c0_i32_0 : i32, i32
  }
  func.func @transform_2(%arg0: i32) -> (i32, i32) {
    %c0_i32 = arith.constant 0 : i32
    %c0_i32_0 = arith.constant 0 : i32
    %c0_i32_1 = arith.constant 0 : i32
    return %c0_i32, %c0_i32_0 : i32, i32
  }
  func.func @transform_3(%arg0: i32) -> (i32, i32) {
    %c0_i32 = arith.constant 0 : i32
    %c0_i32_0 = arith.constant 0 : i32
    %c0_i32_1 = arith.constant 0 : i32
    return %c0_i32, %c0_i32_0 : i32, i32
  }
  func.func @transform_4(%arg0: i32) -> (i32, i32) {
    %c0_i32 = arith.constant 0 : i32
    %c0_i32_0 = arith.constant 0 : i32
    %c0_i32_1 = arith.constant 0 : i32
    return %c0_i32, %c0_i32_0 : i32, i32
  }
  func.func @transform_5(%arg0: i32) -> (i32, i32) {
    %c0_i32 = arith.constant 0 : i32
    %c0_i32_0 = arith.constant 0 : i32
    %c0_i32_1 = arith.constant 0 : i32
    return %c0_i32, %c0_i32_0 : i32, i32
  }
  func.func @transform_6(%arg0: i32) -> (i32, i32) {
    %c0_i32 = arith.constant 0 : i32
    %c0_i32_0 = arith.constant 0 : i32
    %c0_i32_1 = arith.constant 0 : i32
    return %c0_i32, %c0_i32_0 : i32, i32
  }
  func.func @transform_7(%arg0: i32) -> (i32, i32) {
    %c0_i32 = arith.constant 0 : i32
    %c0_i32_0 = arith.constant 0 : i32
    %c0_i32_1 = arith.constant 0 : i32
    return %c0_i32, %c0_i32_0 : i32, i32
  }
  func.func @transform_8(%arg0: i32) -> (i32, i32) {
    %c0_i32 = arith.constant 0 : i32
    %c0_i32_0 = arith.constant 0 : i32
    %c0_i32_1 = arith.constant 0 : i32
    return %c0_i32, %c0_i32_0 : i32, i32
  }
  func.func @transform_9(%arg0: i32) -> (i32, i32) {
    %c0_i32 = arith.constant 0 : i32
    %c0_i32_0 = arith.constant 0 : i32
    %c0_i32_1 = arith.constant 0 : i32
    return %c0_i32, %c0_i32_0 : i32, i32
  }
  func.func @transform_10(%arg0: i32) -> (i32, i32) {
    %c0_i32 = arith.constant 0 : i32
    %c0_i32_0 = arith.constant 0 : i32
    %c0_i32_1 = arith.constant 0 : i32
    return %c0_i32, %c0_i32_0 : i32, i32
  }
  func.func @transform_11(%arg0: i32) -> (i32, i32) {
    %c0_i32 = arith.constant 0 : i32
    %c0_i32_0 = arith.constant 0 : i32
    %c0_i32_1 = arith.constant 0 : i32
    return %c0_i32, %c0_i32_0 : i32, i32
  }
  func.func @transform_12(%arg0: i32) -> (i32, i32) {
    %c0_i32 = arith.constant 0 : i32
    %c0_i32_0 = arith.constant 0 : i32
    %c0_i32_1 = arith.constant 0 : i32
    return %c0_i32, %c0_i32_0 : i32, i32
  }
  func.func @transform_13(%arg0: i32) -> (i32, i32, i32) {
    %c0_i32 = arith.constant 0 : i32
    %c0_i32_0 = arith.constant 0 : i32
    %c0_i32_1 = arith.constant 0 : i32
    return %arg0, %c0_i32, %c0_i32_0 : i32, i32, i32
  }
}

</mosaic_0001>

<bundles_post_ra>
// kernel: tpu_custom_call.1
= control target key start
LH: loop header
LB: loop body
LE: loop exit
PB: predicated region body
PF: predicated region fallthrough
CT: control target
= control target key end

     0   :  { %s12673_s0 = inlined_call_operand.hbm [shape: f32[2,8,384], index: 0, kind: input, shape index: {}]   ;;  %s12674_s1 = inlined_call_operand.hbm [shape: f32[8,8], index: 1, kind: input, shape index: {}]   ;;  %s12675_s2 = inlined_call_operand.hbm [shape: f32[1,384], index: 2, kind: input, shape index: {}]   ;;  %s12676_s3 = inlined_call_operand.hbm [shape: f32[1,384], index: 3, kind: input, shape index: {}]   ;;  %s12677_s4 = inlined_call_operand.hbm [shape: bf16[384,1152], index: 4, kind: input, shape index: {}]   ;;  %s12678_s5 = inlined_call_operand.hbm [shape: bf16[384,384], index: 5, kind: input, shape index: {}]   ;;  %s12679_s6 = inlined_call_operand.hbm [shape: f32[1,384], index: 6, kind: input, shape index: {}]   ;;  %s12680_s7 = inlined_call_operand.hbm [shape: f32[1,384], index: 7, kind: input, shape index: {}]   ;;  %s12681_s8 = inlined_call_operand.hbm [shape: f32[1,384], index: 8, kind: input, shape index: {}]   ;;  %s12682_s9 = inlined_call_operand.hbm [shape: bf16[384,1536], index: 9, kind: input, shape index: {}]   ;;  %s12683_s10 = inlined_call_operand.hbm [shape: f32[1,1536], index: 10, kind: input, shape index: {}]   ;;  %s12684_s11 = inlined_call_operand.hbm [shape: bf16[1536,384], index: 11, kind: input, shape index: {}]   ;;  %s12685_s12 = inlined_call_operand.hbm [shape: f32[1,384], index: 12, kind: input, shape index: {}]   ;;  %s12686_s13 = inlined_call_operand.hbm [shape: f32[2,8,384], index: 13, kind: output, shape index: {}]  }
   0x1   :  { %12693 = sst [smem:[#allocation32_spill]] %s12674_s1 }
   0x2   :  { %12694 = sst [smem:[#allocation33_spill]] %s12675_s2 }
   0x3   :  { %12695 = sst [smem:[#allocation34_spill]] %s12676_s3 }
   0x4   :  { %12696 = sst [smem:[#allocation35_spill]] %s12677_s4 }
   0x5   :  { %12697 = sst [smem:[#allocation36_spill]] %s12678_s5 }
   0x6   :  { %12698 = sst [smem:[#allocation37_spill]] %s12679_s6 }
   0x7   :  { %12699 = sst [smem:[#allocation38_spill]] %s12680_s7 }
   0x8   :  { %12700 = sst [smem:[#allocation39_spill]] %s12681_s8 }
   0x9   :  { %18 = vsyncpa [#allocation3], 0 }
   0xa   :  { %20 = vsyncpa [#allocation3 + $0x1], 0 }
   0xb   :  { %21 = vsyncpa [#allocation6], 0 }
   0xc   :  { %22 = vsyncpa [#allocation9], 0 }
   0xd   :  { %23 = vsyncpa [#allocation12], 0 }
   0xe   :  { %24 = vsyncpa [#allocation15], 0 }
   0xf   :  { %25 = vsyncpa [#allocation18], 0 }
  0x10   :  { %26 = vsyncpa [#allocation21], 0 }
  0x11   :  { %27 = vsyncpa [#allocation4], 0 }
  0x12   :  { %29 = vsyncpa [#allocation4 + $0x1], 0  ;;  %s11987_s25 = smov 0   ;;  %s11989_s26 = smov 0  }
  0x13   :  { %s11991_s27 = smov 0   ;;  %s11993_s28 = smov 0  }
  0x14 LB: > { %s11893_s29 = smov [#allocation5]   ;;  %s12008_s14 = sadd.s32 4294967295, %s11891_s28   ;;  %s11891_s28 = sphi %s11993_s28, %s12739_s28   ;;  %s11887_s27 = sphi %s11991_s27, %s12738_s27   ;;  %s11883_s26 = sphi %s11989_s26, %s12737_s26   ;;  %s11879_s25 = sphi %s11987_s25, %s12736_s25  }
  0x15   : > { %s357_s30 = sshll.u32 %s11893_s29, 4  ;;  %p8790_p0 = scmp.ge.s32.totalorder %s11891_s28, 1  ;;  %s358_s30 = int_to_ptr.vmem [resolvable:$true] %s357_s30 }
  0x16   : > { %p12687_p1 = scmp.eq.s32.totalorder %s12008_s14, 0  ;;  %p344_p2 = scmp.lt.s32.totalorder %s11891_s28, 3 }
  0x17   : > { %s11894_s16 = smov [#allocation8]   ;;  %s11895_s18 = smov [#allocation11]  }
  0x18   : > { %p12013_p3 = pnand %p8790_p0, %p344_p2  ;;  %s379_s17 = sshll.u32 %s11894_s16, 4  ;;  %s380_s17 = int_to_ptr.vmem [resolvable:$true] %s379_s17 }
  0x19   : > { %s402_s19 = sshll.u32 %s11895_s18, 4  ;;  %s11474_s22 = scalar_lea.vmem %s358_s30, 128  ;;  %s12026_s19 = int_to_ptr.vmem [resolvable:$true] %s402_s19 }
  0x1a   : > { %s12701_s15 = scalar_select %p12013_p3, 1, 0 }
  0x1b   : > { %p10083_p5 = pneg %p12013_p3  ;;  %p11475_p8 = scmp.ne.s32.totalorder %s358_s30, %s11474_s22 }
  0x1c   : > { %p11482_p11 = scmp.lt.s32.totalorder %s358_s30, %s358_s30  ;;  %p11483_p12 = scmp.lt.s32.totalorder %s11474_s22, %s11474_s22 }
  0x1d   : > { %p12022_p6 = pnand %p10083_p5, %p12687_p1 }
  0x1e   : > { %p11484_p13 = por %p11483_p12, %p11482_p11 }
  0x1f   : > { %p12030_p7 = pneg %p12022_p6 }
  0x21   : > { %p11477_p9 = pnand %p11475_p8, %p12030_p7 }
  0x23   : > { %p11478_p10 = pneg %p11477_p9 }
  0x25   : > { %p11485_p0 = pnand %p11484_p13, %p11478_p10 }
  0x27   : > { %11488 = shalt.err (!%p11485_p0)
}
  0x28   : > { %s12704_s1 = sld [smem:[#allocation32_spill]]  ;;  %s11500_s29 = scalar_lea.vmem %s380_s17, 48 }
  0x29   : > { %p11501_p2 = scmp.ne.s32.totalorder %s380_s17, %s11500_s29  ;;  %s11507_s16 = scalar_lea.vmem %s380_s17, 64 }
  0x2a   : > { %p11508_p8 = scmp.lt.s32.totalorder %s380_s17, %s380_s17  ;;  %p11509_p9 = scmp.lt.s32.totalorder %s11507_s16, %s11500_s29 }
  0x2b   : > { %p11503_p5 = pnand %p11501_p2, %p12030_p7 }
  0x2c   : > { %p11510_p1 = por %p11509_p9, %p11508_p8 }
  0x2d   : > { %p11504_p4 = pneg %p11503_p5 }
  0x2e   : > { %10086 = dma.hbm_to_vmem [thread:$0]  (!%p12022_p6), %s12704_s1, 128, %s358_s30, [#allocation6]  }
  0x2f   : > { %p11511_p3 = pnand %p11510_p1, %p11504_p4 }
  0x31   : > { %11514 = shalt.err (!%p11511_p3)
}
  0x32   : > { %s12705_s3 = sld [smem:[#allocation34_spill]]  ;;  %s11526_s30 = scalar_lea.vmem %s12026_s19, 9216 }
  0x33   : > { %p11527_p10 = scmp.ne.s32.totalorder %s12026_s19, %s11526_s30  ;;  %p11534_p13 = scmp.lt.s32.totalorder %s12026_s19, %s12026_s19 }
  0x34   : > { %p11535_p0 = scmp.lt.s32.totalorder %s11526_s30, %s11526_s30 }
  0x35   : > { %p11529_p11 = pnand %p11527_p10, %p12030_p7 }
  0x36   : > { %p11536_p1 = por %p11535_p0, %p11534_p13 }
  0x37   : > { %p11530_p12 = pneg %p11529_p11 }
  0x38   : > { %10092 = dma.hbm_to_vmem [thread:$0]  (!%p12022_p6), %s12705_s3, 48, %s380_s17, [#allocation9]  }
  0x39   : > { %p11537_p3 = pnand %p11536_p1, %p11530_p12 }
  0x3b   : > { %11540 = shalt.err (!%p11537_p3)
}
  0x3c   : > { %s12689_s23 = smov 192   ;;  %s12690_s24 = smov 12  }
  0x3d   : > { %s12706_s5 = sld [smem:[#allocation36_spill]]  ;;  %s11898_s16 = smov [#allocation14]  }
  0x3e   : > { %s427_s18 = sshll.u32 %s11898_s16, 4  ;;  %s11899_s22 = smov [#allocation17]   ;;  %s428_s18 = int_to_ptr.vmem [resolvable:$true] %s427_s18 }
  0x3f   : > { %s448_s30 = sshll.u32 %s11899_s22, 4  ;;  %s11552_s1 = scalar_lea.vmem %s428_s18, 48  ;;  %s449_s30 = int_to_ptr.vmem [resolvable:$true] %s448_s30 }
  0x40   : > { %p11553_p4 = scmp.ne.s32.totalorder %s428_s18, %s11552_s1  ;;  %s11559_s3 = scalar_lea.vmem %s428_s18, 64 }
  0x41   : > { %p11560_p8 = scmp.lt.s32.totalorder %s428_s18, %s428_s18  ;;  %p11561_p9 = scmp.lt.s32.totalorder %s11559_s3, %s11552_s1 }
  0x42   : > { %p11555_p2 = pnand %p11553_p4, %p12030_p7 }
  0x43   : > { %10098 = dma.hbm_to_vmem [thread:$0]  (!%p12022_p6), %s12706_s5, 9216, %s12026_s19, [#allocation12], %s12689_s23, %s12689_s23, %s12690_s24  }
  0x44   : > { %p11556_p5 = pneg %p11555_p2  ;;  %p11562_p10 = por %p11561_p9, %p11560_p8 }
  0x46   : > { %p11563_p11 = pnand %p11562_p10, %p11556_p5 }
  0x48   : > { %11566 = shalt.err (!%p11563_p11)
}
  0x49   : > { %s12707_s7 = sld [smem:[#allocation38_spill]]  ;;  %s11578_s29 = scalar_lea.vmem %s449_s30, 36864 }
  0x4a   : > { %p11579_p12 = scmp.ne.s32.totalorder %s449_s30, %s11578_s29  ;;  %p11586_p1 = scmp.lt.s32.totalorder %s449_s30, %s449_s30 }
  0x4b   : > { %p11587_p3 = scmp.lt.s32.totalorder %s11578_s29, %s11578_s29 }
  0x4c   : > { %p11581_p13 = pnand %p11579_p12, %p12030_p7 }
  0x4d   : > { %p11588_p4 = por %p11587_p3, %p11586_p1 }
  0x4e   : > { %p11582_p0 = pneg %p11581_p13 }
  0x4f   : > { %10104 = dma.hbm_to_vmem [thread:$0]  (!%p12022_p6), %s12707_s7, 48, %s428_s18, [#allocation15]  }
  0x50   : > { %p11589_p2 = pnand %p11588_p4, %p11582_p0 }
  0x52   : > { %11592 = shalt.err (!%p11589_p2)
}
  0x53   : > { %s11900_s1 = smov 768   ;;  %s11901_s3 = smov 48  }
  0x54   : > { %10110 = dma.hbm_to_vmem [thread:$0]  (!%p12022_p6), %s12682_s9, 36864, %s449_s30, [#allocation18], %s11900_s1, %s11900_s1, %s11901_s3  }
  0x55   : > { %s11902_s18 = smov [#allocation20]   ;;  %s11903_s19 = smov [#allocation7]  }
  0x56   : > { %s472_s17 = sshll.u32 %s11902_s18, 4  ;;  %s368_s23 = sshll.u32 %s11903_s19, 4  ;;  %s473_s17 = int_to_ptr.vmem [resolvable:$true] %s472_s17  ;;  %s369_s23 = int_to_ptr.vmem [resolvable:$true] %s368_s23 }
  0x57   : > { %s11604_s24 = scalar_lea.vmem %s473_s17, 36864  ;;  %p11612_p10 = scmp.lt.s32.totalorder %s473_s17, %s473_s17 }
  0x58   : > { %p11605_p5 = scmp.ne.s32.totalorder %s473_s17, %s11604_s24  ;;  %p11613_p11 = scmp.lt.s32.totalorder %s11604_s24, %s11604_s24 }
  0x5a   : > { %p11607_p8 = pnand %p11605_p5, %p12030_p7  ;;  %p11614_p12 = por %p11613_p11, %p11612_p10 }
  0x5c   : > { %p11608_p9 = pneg %p11607_p8 }
  0x5e   : > { %p11615_p13 = pnand %p11614_p12, %p11608_p9 }
  0x60   : > { %11618 = shalt.err (!%p11615_p13)
}
  0x61   : > { %s12708_s29 = smov 12   ;;  %s12709_s16 = smov 192  }
  0x62   : > { %10116 = dma.hbm_to_vmem [thread:$0]  (!%p12022_p6), %s12684_s11, 36864, %s473_s17, [#allocation21], %s12709_s16, %s12709_s16, %s12708_s29  }
  0x63   : > { %s11630_s3 = scalar_lea.vmem %s369_s23, 48  ;;  %s11637_s24 = scalar_lea.vmem %s369_s23, 64 }
  0x64   : > { %p11631_p0 = scmp.ne.s32.totalorder %s369_s23, %s11630_s3  ;;  %p11638_p4 = scmp.lt.s32.totalorder %s369_s23, %s369_s23 }
  0x65   : > { %p11639_p2 = scmp.lt.s32.totalorder %s11637_s24, %s11630_s3 }
  0x66   : > { %p11633_p1 = pnand %p11631_p0, %p12030_p7 }
  0x67   : > { %p11640_p5 = por %p11639_p2, %p11638_p4 }
  0x68   : > { %p11634_p3 = pneg %p11633_p1 }
  0x6a   : > { %p11641_p8 = pnand %p11640_p5, %p11634_p3 }
  0x6c   : > { %11644 = shalt.err (!%p11641_p8)
}
  0x6d   : > { %s12710_s2 = sld [smem:[#allocation33_spill]]  ;;  %s11904_s17 = smov [#allocation10]  }
  0x6e   : > { %s389_s19 = sshll.u32 %s11904_s17, 4  ;;  %s390_s19 = int_to_ptr.vmem [resolvable:$true] %s389_s19 }
  0x6f   : > { %s11656_s29 = scalar_lea.vmem %s390_s19, 27648  ;;  %p11664_p12 = scmp.lt.s32.totalorder %s390_s19, %s390_s19 }
  0x70   : > { %p11657_p9 = scmp.ne.s32.totalorder %s390_s19, %s11656_s29  ;;  %p11665_p13 = scmp.lt.s32.totalorder %s11656_s29, %s11656_s29 }
  0x72   : > { %p11659_p10 = pnand %p11657_p9, %p12030_p7  ;;  %p11666_p0 = por %p11665_p13, %p11664_p12 }
  0x73   : > { %10089 = dma.hbm_to_vmem [thread:$0]  (!%p12022_p6), %s12710_s2, 48, %s369_s23, [#allocation6]  }
  0x74   : > { %p11660_p11 = pneg %p11659_p10 }
  0x76   : > { %p11667_p1 = pnand %p11666_p0, %p11660_p11 }
  0x78   : > { %11670 = shalt.err (!%p11667_p1)
}
  0x79   : > { %s11905_s16 = smov 576   ;;  %s11906_s30 = smov 36  }
  0x7a   : > { %s12711_s4 = sld [smem:[#allocation35_spill]]  ;;  %s11907_s3 = smov [#allocation13]  }
  0x7b   : > { %s416_s24 = sshll.u32 %s11907_s3, 4  ;;  %s11908_s22 = smov [#allocation16]   ;;  %s417_s24 = int_to_ptr.vmem [resolvable:$true] %s416_s24 }
  0x7c   : > { %s438_s18 = sshll.u32 %s11908_s22, 4  ;;  %s11682_s17 = scalar_lea.vmem %s417_s24, 48  ;;  %s439_s18 = int_to_ptr.vmem [resolvable:$true] %s438_s18 }
  0x7d   : > { %p11683_p3 = scmp.ne.s32.totalorder %s417_s24, %s11682_s17  ;;  %s11689_s29 = scalar_lea.vmem %s417_s24, 64 }
  0x7e   : > { %p11690_p5 = scmp.lt.s32.totalorder %s417_s24, %s417_s24  ;;  %p11691_p8 = scmp.lt.s32.totalorder %s11689_s29, %s11682_s17 }
  0x7f   : > { %p11685_p4 = pnand %p11683_p3, %p12030_p7 }
  0x80   : > { %10095 = dma.hbm_to_vmem [thread:$0]  (!%p12022_p6), %s12711_s4, 27648, %s390_s19, [#allocation9], %s11905_s16, %s11905_s16, %s11906_s30  }
  0x81   : > { %p11686_p2 = pneg %p11685_p4  ;;  %p11692_p9 = por %p11691_p8, %p11690_p5 }
  0x83   : > { %p11693_p10 = pnand %p11692_p9, %p11686_p2 }
  0x85   : > { %11696 = shalt.err (!%p11693_p10)
}
  0x86   : > { %s12712_s6 = sld [smem:[#allocation37_spill]]  ;;  %s11708_s30 = scalar_lea.vmem %s439_s18, 48 }
  0x87   : > { %p11709_p11 = scmp.ne.s32.totalorder %s439_s18, %s11708_s30  ;;  %s11715_s1 = scalar_lea.vmem %s439_s18, 64 }
  0x88   : > { %p11716_p0 = scmp.lt.s32.totalorder %s439_s18, %s439_s18  ;;  %p11717_p1 = scmp.lt.s32.totalorder %s11715_s1, %s11708_s30 }
  0x89   : > { %p11711_p12 = pnand %p11709_p11, %p12030_p7 }
  0x8a   : > { %p11718_p3 = por %p11717_p1, %p11716_p0 }
  0x8b   : > { %p11712_p13 = pneg %p11711_p12 }
  0x8c   : > { %10101 = dma.hbm_to_vmem [thread:$0]  (!%p12022_p6), %s12712_s6, 48, %s417_s24, [#allocation12]  }
  0x8d   : > { %p11719_p4 = pnand %p11718_p3, %p11712_p13 }
  0x8f   : > { %11722 = shalt.err (!%p11719_p4)
}
  0x90   : > { %s12713_s8 = sld [smem:[#allocation39_spill]]  ;;  %s11909_s22 = smov [#allocation19]  }
  0x91   : > { %s462_s24 = sshll.u32 %s11909_s22, 4  ;;  %s11910_s17 = smov [#allocation22]   ;;  %s463_s24 = int_to_ptr.vmem [resolvable:$true] %s462_s24 }
  0x92   : > { %s486_s29 = sshll.u32 %s11910_s17, 4  ;;  %s11734_s19 = scalar_lea.vmem %s463_s24, 192  ;;  %s487_s29 = int_to_ptr.vmem [resolvable:$true] %s486_s29 }
  0x93   : > { %p11735_p2 = scmp.ne.s32.totalorder %s463_s24, %s11734_s19  ;;  %p11742_p9 = scmp.lt.s32.totalorder %s463_s24, %s463_s24 }
  0x94   : > { %p11743_p10 = scmp.lt.s32.totalorder %s11734_s19, %s11734_s19 }
  0x95   : > { %p11737_p5 = pnand %p11735_p2, %p12030_p7 }
  0x96   : > { %10107 = dma.hbm_to_vmem [thread:$0]  (!%p12022_p6), %s12713_s8, 48, %s439_s18, [#allocation15]  }
  0x97   : > { %p11738_p8 = pneg %p11737_p5  ;;  %p11744_p11 = por %p11743_p10, %p11742_p9 }
  0x99   : > { %p11745_p12 = pnand %p11744_p11, %p11738_p8 }
  0x9b   : > { %11748 = shalt.err (!%p11745_p12)
}
  0x9c   : > { %10113 = dma.hbm_to_vmem [thread:$0]  (!%p12022_p6), %s12683_s10, 192, %s463_s24, [#allocation18]  }
  0x9d   : > { %s11760_s30 = scalar_lea.vmem %s487_s29, 48  ;;  %s11767_s1 = scalar_lea.vmem %s487_s29, 64 }
  0x9e   : > { %p11761_p13 = scmp.ne.s32.totalorder %s487_s29, %s11760_s30  ;;  %p11768_p3 = scmp.lt.s32.totalorder %s487_s29, %s487_s29 }
  0x9f   : > { %p11769_p4 = scmp.lt.s32.totalorder %s11767_s1, %s11760_s30 }
  0xa0   : > { %p11763_p0 = pnand %p11761_p13, %p12030_p7 }
  0xa1   : > { %p11770_p2 = por %p11769_p4, %p11768_p3 }
  0xa2   : > { %p11764_p1 = pneg %p11763_p0 }
  0xa4   : > { %p11771_p5 = pnand %p11770_p2, %p11764_p1 }
  0xa6   : > { %11774 = shalt.err (!%p11771_p5)
}
  0xa7   : > { %10119 = dma.hbm_to_vmem [thread:$0]  (!%p12022_p6), %s12685_s12, 48, %s487_s29, [#allocation21]  }
  0xa8   : > { %s8789_s21 = sadd.s32 4294967294, %s11891_s28   ;;  %s12131_s20 = sadd.s32 1, %s11891_s28  }
  0xa9   : > { %s39_s22 = ssub.s32 %s11891_s28, %s12131_s20  ;;  %s42_s24 = sadd.s32 1, %s11887_s27 }
  0xaa   : > { %p40_p7 = scmp.eq.s32.totalorder %s39_s22, 0  ;;  %p49_p8 = scmp.ne.s32.totalorder %s11887_s27, %s11883_s26 }
  0xab   : > { %p50_p9 = scmp.eq.s32.totalorder %s11891_s28, 0  ;;  %p55_p10 = scmp.ne.s32.totalorder %s11883_s26, %s11879_s25 }
  0xac   : > { %s12142_s17 = scalar_select %p40_p7, %s11887_s27, %s42_s24  }
  0xad   : > { %p51_p11 = por %p50_p9, %p49_p8  ;;  %p12714_p12 = scmp.eq.s32.totalorder %s12008_s14, 0 }
  0xae   : > { %p331_p6 = scmp.eq.s32.totalorder %s12008_s14, 1  ;;  %p337_p0 = scmp.eq.s32.totalorder %s8789_s21, 1 }
  0xaf   : > { %p12146_p13 = por %p12714_p12, %p55_p10  ;;  %p10140_p1 = scmp.lt.s32.totalorder %s11891_s28, 2 }
  0xb0   : > { %s497_s29 = sand.u32 1, %s11887_s27   ;;  %p12153_p3 = por %p331_p6, %p49_p8 }
  0xb1   : > { %s12715_s19 = scalar_select %p12146_p13, 1, 0 }
  0xb2   : > { %s12716_s16 = scalar_select %p12153_p3, 1, 0 }
  0xb3   : > { %p12157_p4 = por %p337_p0, %p55_p10  ;;  %s10027_s30 = smul.u32 24, %s497_s29 }
  0xb4   : > { %s10028_s1 = smul.u32 384, %s11891_s28  ;;  %p12162_p2 = pnand %p10140_p1, %p51_p11 }
  0xb5   : > { %s12717_s18 = scalar_select %p12157_p4, 1, 0 }
  0xb6   : > { %s12169_s21 = scalar_lea.hbm %s12673_s0, %s10028_s1  ;;  %s501_s24 = scalar_lea.vmem [#allocation2], %s10027_s30 }
  0xb7   : > { %s509_s2 = sshll.u32 %s501_s24, 4  ;;  %s498_s4 = scalar_lea.sflag [#allocation3], %s497_s29  ;;  %s510_s2 = int_to_ptr.vmem [resolvable:$true] %s509_s2 }
  0xb8   : > { %s11775_s5 = scalar_lea.hbm %s12169_s21, 384  ;;  %p11777_p7 = pneg %p12162_p2 }
  0xb9   : > { %p11776_p5 = scmp.ne.s32.totalorder %s12169_s21, %s11775_s5  ;;  %s11780_s3 = scalar_lea.hbm %s12673_s0, 768 }
  0xba   : > { %p11781_p10 = scmp.lt.s32.totalorder %s12169_s21, %s12673_s0  ;;  %p11782_p11 = scmp.lt.s32.totalorder %s11780_s3, %s11775_s5 }
  0xbb   : > { %p11778_p8 = pnand %p11777_p7, %p11776_p5 }
  0xbc   : > { %p11783_p12 = por %p11782_p11, %p11781_p10 }
  0xbd   : > { %p11779_p9 = pneg %p11778_p8 }
  0xbf   : > { %p11784_p6 = pnand %p11783_p12, %p11779_p9 }
  0xc1   : > { %11787 = shalt.err (!%p11784_p6)
}
  0xc2   : > { %s11788_s30 = scalar_lea.vmem %s510_s2, 384  ;;  %s11911_s29 = smov [#allocation2]  }
  0xc3   : > { %p11789_p0 = scmp.ne.s32.totalorder %s510_s2, %s11788_s30  ;;  %s11793_s24 = sshll.u32 %s11911_s29, 4  ;;  %s11794_s24 = int_to_ptr.vmem [resolvable:$false] %s11793_s24 }
  0xc4   : > { %s11795_s8 = scalar_lea.vmem %s11794_s24, 768  ;;  %p11796_p5 = scmp.lt.s32.totalorder %s510_s2, %s11794_s24 }
  0xc5   : > { %p11791_p1 = pnand %p11789_p0, %p11777_p7  ;;  %p11797_p8 = scmp.lt.s32.totalorder %s11795_s8, %s11788_s30 }
  0xc7   : > { %p11792_p4 = pneg %p11791_p1  ;;  %p11798_p3 = por %p11797_p8, %p11796_p5 }
  0xc9   : > { %p11799_p13 = pnand %p11798_p3, %p11792_p4 }
  0xcb   : > { %11802 = shalt.err (!%p11799_p13)
}
  0xcc   : > { %10123 = dma.hbm_to_vmem [thread:$0]  (!%p12162_p2), %s12169_s21, 384, %s510_s2, %s498_s4  }
  0xcd   : > { %p12719_p9 = scmp.ne.s32.totalorder %s12701_s15, 0 }
  0xce   : > { %s12188_s5 = sand.u32 (!%p12719_p9), 1, %s11883_s26   ;;  %p12720_p13 = scmp.ne.s32.totalorder (!%p12719_p9), %s12715_s19, 0 }
  0xcf   : > { %518 = sbr.rel (%p12719_p9) target bundleno = 3517 (0xdbd), region = 72  ;;  %s521_s7 = scalar_lea.sflag (!%p12719_p9), [#allocation3], %s12188_s5 }
  0xd0   : > { %s10029_s6 = smul.u32 (!%p12719_p9), 24, %s12188_s5 }
  0xd2   : > { %s12194_s8 = scalar_lea.vmem (!%p12719_p9), [#allocation2], %s10029_s6 }
  0xd4   : > { %11846 = dma.done.wait (%p12720_p13), %s521_s7, 384  }
  0xd5   : > { %11848 = vsyncadd (%p12720_p13), %s521_s7, 4294966912  ;;  %p12721_p3 = scmp.eq.s32.totalorder %s12008_s14, 0 }
  0xd7   : > { %11850 = dma.done.wait (%p12721_p3), [#allocation6], 176   ;;  %p12722_p4 = pmov %p12721_p3 }
  0xd8   : > { %p12723_p2 = pmov %p12721_p3 }
  0xd9   : > { %11852 = vsyncadd (%p12722_p4), [#allocation6], 4294967120 }
  0xda   : > { %11854 = dma.done.wait (%p12723_p2), [#allocation9], 27696   ;;  %p12724_p7 = pmov %p12723_p2 }
  0xdb   : > { %p12725_p10 = pmov %p12723_p2 }
  0xdc   : > { %11856 = vsyncadd (%p12724_p7), [#allocation9], 4294939600 }
  0xdd   : > { %11858 = dma.done.wait (%p12725_p10), [#allocation12], 9264   ;;  %p12726_p11 = pmov %p12723_p2 }
  0xde   : > { %p12727_p12 = pmov %p12723_p2 }
  0xdf   : > { %11860 = vsyncadd (%p12726_p11), [#allocation12], 4294958032 }
  0xe0   : > { %11862 = dma.done.wait (%p12727_p12), [#allocation15], 96   ;;  %p12728_p6 = pmov %p12723_p2 }
  0xe1   : > { %p12729_p0 = pmov %p12723_p2 }
  0xe2   : > { %11864 = vsyncadd (%p12728_p6), [#allocation15], 4294967200 }
  0xe3   : > { %11866 = dma.done.wait (%p12729_p0), [#allocation18], 37056   ;;  %p12730_p1 = pmov %p12729_p0 }
  0xe4   : > { %p12731_p5 = pmov %p12729_p0 }
  0xe5   : > { %11868 = vsyncadd (%p12730_p1), [#allocation18], 4294930240 }
  0xe6   : > { %11870 = dma.done.wait (%p12731_p5), [#allocation21], 36912   ;;  %p12732_p8 = pmov %p12729_p0 }
  0xe7   : > { %v616_v0 = vld [vmem:[%s12194_s8] sm:$0xff]  ;;  %v617_v1 = vld [vmem:[%s12194_s8 + $0x8] sm:$0xff]  ;;  %v618_v2 = vld [vmem:[%s12194_s8 + $0x10] sm:$0xff]  ;;  %v11912_v58 = vmov 0   ;;  %vm11914_vm0 = vmmov 0   ;;  %vm2446_vm1 = vcmask 523264  }
  0xe8   : > { %11872 = vsyncadd (%p12732_p8), [#allocation21], 4294930384  ;;  %v621_v3 = vadd.f32 %v617_v1, %v616_v0  ;;  %v10208_v5 = vld [vmem:[#allocation10 + $0x1fc] ss:$36 sps:$4 sm:$0xff]   ;;  %v10211_v7 = vld [vmem:[#allocation10 + $0x1b4] ss:$36 sps:$4 sm:$0xff]   ;;  %2101 = vmatprep.mubr.bf16.mxu1 %v11912_v58 }
  0xe9   : > { %v10210_v6 = vld [vmem:[#allocation10 + $0x1f8] ss:$36 sps:$4 sm:$0xff]   ;;  %2028 = vmatprep.subr.bf16.mxu0 %v10208_v5  ;;  %v10213_v8 = vld [vmem:[#allocation10 + $0x1b0] ss:$36 sps:$4 sm:$0xff]   ;;  %v10216_v13 = vld [vmem:[#allocation10 + $0x168] ss:$36 sps:$4 sm:$0xff]   ;;  %v644_v5 = vlaneseq }
  0xea   : > { %v622_v4 = vadd.f32 %v621_v3, %v618_v2  ;;  %2029 = vmatpush1.bf16.msra.mxu0 %v10210_v6  ;;  %v10214_v9 = vld [vmem:[#allocation10 + $0x16c] ss:$36 sps:$4 sm:$0xff]   ;;  %v10232_v10 = vld [vmem:[#allocation10 + $0x67c] ss:$36 sps:$4 sm:$0xff]   ;;  %v10238_v12 = vld [vmem:[#allocation10 + $0x634] ss:$36 sps:$4 sm:$0xff]  }
  0xeb   : > { %2030 = vmatprep.subr.bf16.mxu0 %v10211_v7  ;;  %v10236_v11 = vld [vmem:[#allocation10 + $0x678] ss:$36 sps:$4 sm:$0xff]   ;;  %v10217_v14 = vld [vmem:[#allocation10 + $0x124] ss:$36 sps:$4 sm:$0xff]   ;;  %2069 = vmatprep.subr.bf16.mxu1 %v10232_v10  ;;  %v10242_v15 = vld [vmem:[#allocation10 + $0x630] ss:$36 sps:$4 sm:$0xff]  }
  0xec   : > { %623 = vadd.xlane.f32.xlu0 %v622_v4  ;;  %2070 = vmatpush1.bf16.msra.mxu1 %v10236_v11  ;;  %v10219_v16 = vld [vmem:[#allocation10 + $0x120] ss:$36 sps:$4 sm:$0xff]   ;;  %v10222_v18 = vld [vmem:[#allocation10 + $0xd8] ss:$36 sps:$4 sm:$0xff]   ;;  %v10225_v20 = vld [vmem:[#allocation10 + $0x90] ss:$36 sps:$4 sm:$0xff]  }
  0xed   : > { %2071 = vmatprep.subr.bf16.mxu1 %v10238_v12  ;;  %v10220_v17 = vld [vmem:[#allocation10 + $0xdc] ss:$36 sps:$4 sm:$0xff]   ;;  %v10223_v19 = vld [vmem:[#allocation10 + $0x94] ss:$36 sps:$4 sm:$0xff]   ;;  %v10226_v21 = vld [vmem:[#allocation10 + $0x4c] ss:$36 sps:$4 sm:$0xff]  }
  0xee   : > { %2031 = vmatpush1.bf16.msra.mxu0 %v10213_v8  ;;  %v10228_v22 = vld [vmem:[#allocation10 + $0x48] ss:$36 sps:$4 sm:$0xff]   ;;  %v10231_v24 = vld [vmem:[#allocation10] ss:$36 sps:$4 sm:$0xff]   ;;  %v10237_v26 = vld [vmem:[#allocation10 + $0x438] ss:$36 sps:$4 sm:$0xff]  }
  0xef   : > { %2032 = vmatprep.subr.bf16.mxu0 %v10214_v9  ;;  %v10229_v23 = vld [vmem:[#allocation10 + $0x4] ss:$36 sps:$4 sm:$0xff]   ;;  %v10234_v25 = vld [vmem:[#allocation10 + $0x43c] ss:$36 sps:$4 sm:$0xff]   ;;  %v10240_v27 = vld [vmem:[#allocation10 + $0x3f4] ss:$36 sps:$4 sm:$0xff]  }
  0xf0   : > { %2072 = vmatpush1.bf16.msra.mxu1 %v10242_v15  ;;  %v10243_v28 = vld [vmem:[#allocation10 + $0x3f0] ss:$36 sps:$4 sm:$0xff]   ;;  %v10248_v41 = vld [vmem:[#allocation10 + $0x5e8] ss:$36 sps:$4 sm:$0xff]   ;;  %v10254_v45 = vld [vmem:[#allocation10 + $0x5a0] ss:$36 sps:$4 sm:$0xff]  }
  0xf1   : > { %v10244_v39 = vld [vmem:[#allocation10 + $0x5ec] ss:$36 sps:$4 sm:$0xff]   ;;  %v10250_v43 = vld [vmem:[#allocation10 + $0x5a4] ss:$36 sps:$4 sm:$0xff]   ;;  %v10256_v47 = vld [vmem:[#allocation10 + $0x55c] ss:$36 sps:$4 sm:$0xff]  }
  0xf2   : > { %2033 = vmatpush1.bf16.msra.mxu0 %v10216_v13  ;;  %v10246_v40 = vld [vmem:[#allocation10 + $0x3ac] ss:$36 sps:$4 sm:$0xff]   ;;  %2073 = vmatprep.subr.bf16.mxu1 %v10244_v39  ;;  %v10252_v44 = vld [vmem:[#allocation10 + $0x364] ss:$36 sps:$4 sm:$0xff]   ;;  %v10258_v48 = vld [vmem:[#allocation10 + $0x31c] ss:$36 sps:$4 sm:$0xff]  }
  0xf3   : > { %2034 = vmatprep.subr.bf16.mxu0 %v10217_v14  ;;  %v10249_v42 = vld [vmem:[#allocation10 + $0x3a8] ss:$36 sps:$4 sm:$0xff]   ;;  %v10255_v46 = vld [vmem:[#allocation10 + $0x360] ss:$36 sps:$4 sm:$0xff]   ;;  %v10260_v49 = vld [vmem:[#allocation10 + $0x558] ss:$36 sps:$4 sm:$0xff]  }
  0xf4   : > { %2074 = vmatpush1.bf16.msra.mxu1 %v10248_v41  ;;  %v10261_v50 = vld [vmem:[#allocation10 + $0x318] ss:$36 sps:$4 sm:$0xff]   ;;  %v10266_v53 = vld [vmem:[#allocation10 + $0x510] ss:$36 sps:$4 sm:$0xff]   ;;  %v10272_v57 = vld [vmem:[#allocation10 + $0x4c8] ss:$36 sps:$4 sm:$0xff]  }
  0xf5   : > { %2075 = vmatprep.subr.bf16.mxu1 %v10250_v43  ;;  %v10262_v51 = vld [vmem:[#allocation10 + $0x514] ss:$36 sps:$4 sm:$0xff]   ;;  %v10268_v55 = vld [vmem:[#allocation10 + $0x4cc] ss:$36 sps:$4 sm:$0xff]   ;;  %v10274_v60 = vld [vmem:[#allocation10 + $0x484] ss:$36 sps:$4 sm:$0xff]  }
  0xf6   : > { %2035 = vmatpush1.bf16.msra.mxu0 %v10219_v16  ;;  %v10264_v52 = vld [vmem:[#allocation10 + $0x2d4] ss:$36 sps:$4 sm:$0xff]   ;;  %v10270_v56 = vld [vmem:[#allocation10 + $0x28c] ss:$36 sps:$4 sm:$0xff]   ;;  %v10276_v61 = vld [vmem:[#allocation10 + $0x244] ss:$36 sps:$4 sm:$0xff]  }
  0xf7   : > { %2036 = vmatprep.subr.bf16.mxu0 %v10220_v17  ;;  %v10267_v54 = vld [vmem:[#allocation10 + $0x2d0] ss:$36 sps:$4 sm:$0xff]   ;;  %v10273_v59 = vld [vmem:[#allocation10 + $0x288] ss:$36 sps:$4 sm:$0xff]   ;;  %v10278_v62 = vld [vmem:[#allocation10 + $0x480] ss:$36 sps:$4 sm:$0xff]  }
  0xf8   : > { %2076 = vmatpush1.bf16.msra.mxu1 %v10254_v45  ;;  %v10279_v63 = vld [vmem:[#allocation10 + $0x240] ss:$36 sps:$4 sm:$0xff]   ;;  %v12240_v6 = vshrl.u32 %v644_v5, 7  ;;  %v619_v7 = vld [vmem:[#allocation7] sm:$0x7]  ;;  %s11915_s2 = smov 64  }
  0xf9   : > { %2077 = vmatprep.subr.bf16.mxu1 %v10256_v47  ;;  %v620_v11 = vld [vmem:[#allocation8] sm:$0x7]  ;;  %v10292_v39 = vld [vmem:[#allocation10 + $0x170] ss:$36 sps:$4 sm:$0xff]   ;;  %v10298_v43 = vld [vmem:[#allocation10 + $0x128] ss:$36 sps:$4 sm:$0xff]  }
  0xfa   : > { %2037 = vmatpush1.bf16.msra.mxu0 %v10222_v18  ;;  %v12243_v8 = vsub.s32 1, %v12240_v6  ;;  %v12246_v9 = vsub.s32 2, %v12240_v6  ;;  %v12249_v10 = vsub.s32 0, %v12240_v6  ;;  %v10300_v41 = vld [vmem:[#allocation10 + $0x12c] ss:$36 sps:$4 sm:$0xff]   ;;  %vm2509_vm2 = vcmask 1043456  }
  0xfb   : > { %2038 = vmatprep.subr.bf16.mxu0 %v10223_v19  ;;  %v10306_v45 = vld [vmem:[#allocation10 + $0xe4] ss:$36 sps:$4 sm:$0xff]   ;;  %vm2493_vm3 = vcmask 64512   ;;  %s12628_s4 = scalar_lea.vmem [#allocation23], %s10029_s6  ;;  %s10030_s15 = smul.u32 384, %s12008_s14 }
  0xfc   : > { %2078 = vmatpush1.bf16.msra.mxu1 %v10260_v49  ;;  %v651_v12 = vrot.slane %v619_v7, %v12243_v8  ;;  %v655_v13 = vrot.slane %v619_v7, %v12246_v9  ;;  %v647_v14 = vrot.slane %v619_v7, %v12249_v10  ;;  %v670_v16 = vrot.slane %v620_v11, %v12243_v8  ;;  %v10304_v47 = vld [vmem:[#allocation10 + $0xe0] ss:$36 sps:$4 sm:$0xff]   ;;  %v10342_v7 = vld [vmem:[#allocation10 + $0x3b4] ss:$36 sps:$4 sm:$0xff]   ;;  %s8605_s19 = sshll.u32 %s12628_s4, 4  ;;  %s8591_s22 = scalar_lea.sflag [#allocation4], %s12188_s5  ;;  %s8606_s19 = int_to_ptr.vmem [resolvable:$true] %s8605_s19 }
  0xfd   : > { %2079 = vmatprep.subr.bf16.mxu1 %v10262_v51  ;;  %v674_v17 = vrot.slane %v620_v11, %v12246_v9  ;;  %v10312_v49 = vld [vmem:[#allocation10 + $0x9c] ss:$36 sps:$4 sm:$0xff]   ;;  %s8603_s3 = scalar_lea.hbm %s12686_s13, %s10030_s15  ;;  %s11803_s1 = scalar_lea.vmem %s8606_s19, 384 }
  0xfe   : > { %2039 = vmatpush1.bf16.msra.mxu0 %v10225_v20  ;;  %v10310_v51 = vld [vmem:[#allocation10 + $0x98] ss:$36 sps:$4 sm:$0xff]   ;;  %v10337_v5 = vld [vmem:[#allocation10 + $0x1c0] ss:$36 sps:$4 sm:$0xff]   ;;  %p11804_p9 = scmp.ne.s32.totalorder %s8606_s19, %s11803_s1  ;;  %p12733_p13 = scmp.ne.s32.totalorder %s12716_s16, 0 }
  0xff   : > { %2040 = vmatprep.subr.bf16.mxu0 %v10226_v21  ;;  %v666_v21 = vrot.slane %v620_v11, %v12249_v10  ;;  %v10345_v11 = vld [vmem:[#allocation10 + $0x17c] ss:$36 sps:$4 sm:$0xff]   ;;  %s11916_s30 = smov [#allocation23]  }
 0x100   : > { %2080 = vmatpush1.bf16.msra.mxu1 %v10266_v53  ;;  %v10318_v53 = vld [vmem:[#allocation10 + $0x54] ss:$36 sps:$4 sm:$0xff]   ;;  %p11805_p3 = pnand %p11804_p9, %p12733_p13  ;;  %s11807_s14 = sshll.u32 %s11916_s30, 4  ;;  %s11808_s14 = int_to_ptr.vmem [resolvable:$false] %s11807_s14 }
 0x101   : > { %2081 = vmatprep.subr.bf16.mxu1 %v10268_v55  ;;  %v10316_v55 = vld [vmem:[#allocation10 + $0x50] ss:$36 sps:$4 sm:$0xff]   ;;  %s11809_s29 = scalar_lea.vmem %s11808_s14, 768  ;;  %p11810_p2 = scmp.lt.s32.totalorder %s8606_s19, %s11808_s14 }
 0x102   : > { %2041 = vmatpush1.bf16.msra.mxu0 %v10228_v22  ;;  %p11806_p4 = pneg %p11805_p3  ;;  %p11811_p7 = scmp.lt.s32.totalorder %s11809_s29, %s11803_s1 }
 0x103   : > { %2042 = vmatprep.subr.bf16.mxu0 %v10229_v23 }
 0x104   : > { %2082 = vmatpush1.bf16.msra.mxu1 %v10272_v57  ;;  %v10324_v57 = vld [vmem:[#allocation10 + $0xc] ss:$36 sps:$4 sm:$0xff]   ;;  %p11812_p10 = por %p11811_p7, %p11810_p2 }
 0x105   : > { %2083 = vmatprep.subr.bf16.mxu1 %v10274_v60  ;;  %v10322_v60 = vld [vmem:[#allocation10 + $0x8] ss:$36 sps:$4 sm:$0xff]  }
 0x106   : > { %2043 = vmatpush1.bf16.msra.mxu0 %v10231_v24  ;;  %p11813_p11 = pnand %p11812_p10, %p11806_p4 }
 0x107   : > { %2044 = vmatprep.subr.bf16.mxu0 %v10234_v25  ;;  %v10280_v25 = vld [vmem:[#allocation10 + $0x200] ss:$36 sps:$4 sm:$0xff]  }
 0x108   : > { %2084 = vmatpush1.bf16.msra.mxu1 %v10278_v62  ;;  %v10330_v62 = vld [vmem:[#allocation10 + $0x444] ss:$36 sps:$4 sm:$0xff]  }
 0x10a   : > { %2045 = vmatpush2.bf16.msra.mxu0 %v10237_v26 }
 0x10b   : > { %2046 = vmatprep.subr.bf16.mxu0 %v10240_v27 }
 0x10e   : > { %2047 = vmatpush2.bf16.msra.mxu0 %v10243_v28 }
 0x10f   : > { %2048 = vmatprep.subr.bf16.mxu0 %v10246_v40  ;;  %v10295_v40 = vld [vmem:[#allocation10 + $0x5f0] ss:$36 sps:$4 sm:$0xff]  }
 0x112   : > { %2049 = vmatpush2.bf16.msra.mxu0 %v10249_v42  ;;  %v10303_v42 = vld [vmem:[#allocation10 + $0x5ac] ss:$36 sps:$4 sm:$0xff]  }
 0x113   : > { %2050 = vmatprep.subr.bf16.mxu0 %v10252_v44  ;;  %v10301_v44 = vld [vmem:[#allocation10 + $0x5a8] ss:$36 sps:$4 sm:$0xff]  }
 0x116   : > { %2051 = vmatpush2.bf16.msra.mxu0 %v10255_v46  ;;  %v10309_v46 = vld [vmem:[#allocation10 + $0x564] ss:$36 sps:$4 sm:$0xff]  }
 0x117   : > { %2052 = vmatprep.subr.bf16.mxu0 %v10258_v48  ;;  %v10307_v48 = vld [vmem:[#allocation10 + $0x560] ss:$36 sps:$4 sm:$0xff]  }
 0x11a   : > { %2053 = vmatpush2.bf16.msra.mxu0 %v10261_v50  ;;  %v10315_v50 = vld [vmem:[#allocation10 + $0x51c] ss:$36 sps:$4 sm:$0xff]  }
 0x11b   : > { %2054 = vmatprep.subr.bf16.mxu0 %v10264_v52  ;;  %v10313_v52 = vld [vmem:[#allocation10 + $0x518] ss:$36 sps:$4 sm:$0xff]  }
 0x11e   : > { %2055 = vmatpush2.bf16.msra.mxu0 %v10267_v54  ;;  %v10321_v54 = vld [vmem:[#allocation10 + $0x4d4] ss:$36 sps:$4 sm:$0xff]  }
 0x11f   : > { %2056 = vmatprep.subr.bf16.mxu0 %v10270_v56  ;;  %v10319_v56 = vld [vmem:[#allocation10 + $0x4d0] ss:$36 sps:$4 sm:$0xff]  }
 0x122   : > { %2057 = vmatpush2.bf16.msra.mxu0 %v10273_v59  ;;  %v10327_v59 = vld [vmem:[#allocation10 + $0x48c] ss:$36 sps:$4 sm:$0xff]  }
 0x123   : > { %2058 = vmatprep.subr.bf16.mxu0 %v10276_v61  ;;  %v10325_v61 = vld [vmem:[#allocation10 + $0x488] ss:$36 sps:$4 sm:$0xff]  }
 0x126   : > { %2059 = vmatpush2.bf16.msra.mxu0 %v10279_v63  ;;  %v10333_v63 = vld [vmem:[#allocation10 + $0x20c] ss:$36 sps:$4 sm:$0xff]  }
 0x175   : > { %v624_v29 = vpop.xlane.xlu0 %623 }
 0x176   : > { %v626_v30 = vmul.f32 0.0026041667, %v624_v29  ;;  %v10283_v29 = vld [vmem:[#allocation10 + $0x680] ss:$36 sps:$4 sm:$0xff]  }
 0x178   : > { %v12227_v31 = vsub.f32 %v616_v0, %v626_v30  ;;  %v12229_v32 = vsub.f32 %v617_v1, %v626_v30  ;;  %v12231_v33 = vsub.f32 %v618_v2, %v626_v30  ;;  %v10282_v0 = vld [vmem:[#allocation10 + $0x204] ss:$36 sps:$4 sm:$0xff]  }
 0x179   : > { %2110 = vmatprep.subr.bf16.mxu1 %v10282_v0  ;;  %v10285_v1 = vld [vmem:[#allocation10 + $0x684] ss:$36 sps:$4 sm:$0xff]  }
 0x17a   : > { %v630_v34 = vmul.f32 %v12227_v31, %v12227_v31  ;;  %v631_v35 = vmul.f32 %v12229_v32, %v12229_v32  ;;  %v632_v36 = vmul.f32 %v12231_v33, %v12231_v33  ;;  %2151 = vmatprep.subr.bf16.mxu0 %v10285_v1  ;;  %v10328_v0 = vld [vmem:[#allocation10 + $0x440] ss:$36 sps:$4 sm:$0xff]   ;;  %v10331_v1 = vld [vmem:[#allocation10 + $0x208] ss:$36 sps:$4 sm:$0xff]  }
 0x17c   : > { %v633_v37 = vadd.f32 %v631_v35, %v630_v34 }
 0x17e   : > { %v634_v38 = vadd.f32 %v633_v37, %v632_v36  ;;  %v10289_v36 = vld [vmem:[#allocation10 + $0x638] ss:$36 sps:$4 sm:$0xff]  }
 0x17f   : > { %v10294_v37 = vld [vmem:[#allocation10 + $0x174] ss:$36 sps:$4 sm:$0xff]  }
 0x180   : > { %635 = vadd.xlane.f32.xlu0 %v634_v38  ;;  %v10297_v38 = vld [vmem:[#allocation10 + $0x5f4] ss:$36 sps:$4 sm:$0xff]  }
 0x209   : > { %v636_v2 = vpop.xlane.xlu0 %635 }
 0x20a   : > { %v637_v3 = vmul.f32 0.0026041667, %v636_v2  ;;  %v10336_v2 = vld [vmem:[#allocation10 + $0x3fc] ss:$36 sps:$4 sm:$0xff]  }
 0x20c   : > { %v638_v4 = vadd.f32 1e-05, %v637_v3  ;;  %v10339_v3 = vld [vmem:[#allocation10 + $0x1c4] ss:$36 sps:$4 sm:$0xff]  }
 0x20e   : > { %11432 = vrsqrt.f32 %v638_v4  ;;  %v10334_v4 = vld [vmem:[#allocation10 + $0x3f8] ss:$36 sps:$4 sm:$0xff]  }
 0x21b   : > { %v11433_v15 = vpop.eup %11432 }
 0x21c   : > { %v641_v18 = vmul.f32 %v11433_v15, %v12229_v32  ;;  %v642_v19 = vmul.f32 %v11433_v15, %v12231_v33  ;;  %v640_v20 = vmul.f32 %v11433_v15, %v12227_v31  ;;  %v10288_v32 = vld [vmem:[#allocation10 + $0x1bc] ss:$36 sps:$4 sm:$0xff]   ;;  %v10351_v15 = vld [vmem:[#allocation10 + $0x134] ss:$36 sps:$4 sm:$0xff]  }
 0x21d   : > { %v10291_v33 = vld [vmem:[#allocation10 + $0x63c] ss:$36 sps:$4 sm:$0xff]  }
 0x21e   : > { %v660_v22 = vmul.f32 %v651_v12, %v641_v18  ;;  %v661_v23 = vmul.f32 %v655_v13, %v642_v19  ;;  %v659_v24 = vmul.f32 %v647_v14, %v640_v20  ;;  %v10286_v31 = vld [vmem:[#allocation10 + $0x1b8] ss:$36 sps:$4 sm:$0xff]   ;;  %v10340_v12 = vld [vmem:[#allocation10 + $0x3b0] ss:$36 sps:$4 sm:$0xff]   ;;  %v10354_v18 = vld [vmem:[#allocation10 + $0x324] ss:$36 sps:$4 sm:$0xff]  }
 0x21f   : > { %v10343_v13 = vld [vmem:[#allocation10 + $0x178] ss:$36 sps:$4 sm:$0xff]   ;;  %v10348_v14 = vld [vmem:[#allocation10 + $0x36c] ss:$36 sps:$4 sm:$0xff]   ;;  %v10352_v20 = vld [vmem:[#allocation10 + $0x320] ss:$36 sps:$4 sm:$0xff]  }
 0x220   : > { %v679_v26 = vadd.f32 %v670_v16, %v660_v22  ;;  %v680_v27 = vadd.f32 %v674_v17, %v661_v23  ;;  %v678_v28 = vadd.f32 %v666_v21, %v659_v24  ;;  %v10346_v16 = vld [vmem:[#allocation10 + $0x368] ss:$36 sps:$4 sm:$0xff]   ;;  %v10349_v17 = vld [vmem:[#allocation10 + $0x130] ss:$36 sps:$4 sm:$0xff]   ;;  %v10360_v22 = vld [vmem:[#allocation10 + $0x2dc] ss:$36 sps:$4 sm:$0xff]  }
 0x221   : > { %v10357_v19 = vld [vmem:[#allocation10 + $0xec] ss:$36 sps:$4 sm:$0xff]   ;;  %v10363_v23 = vld [vmem:[#allocation10 + $0xa4] ss:$36 sps:$4 sm:$0xff]   ;;  %v10358_v24 = vld [vmem:[#allocation10 + $0x2d8] ss:$36 sps:$4 sm:$0xff]  }
 0x222   : > { %v12260_v30 = vpack.c.bf16 %v679_v26, %v679_v26  ;;  %v12262_v34 = vpack.c.bf16 %v680_v27, %v680_v27  ;;  %v12264_v35 = vpack.c.bf16 %v678_v28, %v678_v28  ;;  %v10355_v21 = vld [vmem:[#allocation10 + $0xe8] ss:$36 sps:$4 sm:$0xff]   ;;  %v10366_v26 = vld [vmem:[#allocation10 + $0x294] ss:$36 sps:$4 sm:$0xff]   ;;  %v10369_v27 = vld [vmem:[#allocation10 + $0x5c] ss:$36 sps:$4 sm:$0xff]  }
 0x223   : > { %v10364_v28 = vld [vmem:[#allocation10 + $0x290] ss:$36 sps:$4 sm:$0xff]  }
 0x224   : > { %2060 = vmatprep.mubr.bf16.mxu0 %v12260_v30  ;;  %2102 = vmatmul.mubr.bf16.vlgmr.msra.gmra.mxu1 %v12262_v34 }
 0x225   : > { %2111 = vmatpush1.bf16.msra.mxu1 %v10280_v25  ;;  %2061 = vmatmul.mubr.bf16.vlgmr.msra.gmra.mxu0 %v12264_v35  ;;  %v10361_v25 = vld [vmem:[#allocation10 + $0xa0] ss:$36 sps:$4 sm:$0xff]  }
 0x226   : > { %2142 = vmatprep.mubr.bf16.mxu1 %v12260_v30  ;;  %2152 = vmatpush1.bf16.msra.mxu0 %v10283_v29  ;;  %v10367_v29 = vld [vmem:[#allocation10 + $0x58] ss:$36 sps:$4 sm:$0xff]  }
 0x227   : > { %2112 = vmatprep.subr.bf16.mxu1 %v10288_v32  ;;  %2153 = vmatprep.subr.bf16.mxu0 %v10291_v33  ;;  %v10372_v32 = vld [vmem:[#allocation10 + $0x24c] ss:$36 sps:$4 sm:$0xff]   ;;  %v10375_v33 = vld [vmem:[#allocation10 + $0x14] ss:$36 sps:$4 sm:$0xff]  }
 0x228   : > { %2183 = vmatprep.mubr.bf16.mxu0 %v11912_v58 }
 0x229   : > { %2113 = vmatpush1.bf16.msra.mxu1 %v10286_v31  ;;  %v10370_v31 = vld [vmem:[#allocation10 + $0x248] ss:$36 sps:$4 sm:$0xff]  }
 0x22a   : > { %2154 = vmatpush1.bf16.msra.mxu0 %v10289_v36  ;;  %2114 = vmatprep.subr.bf16.mxu1 %v10294_v37  ;;  %v10373_v36 = vld [vmem:[#allocation10 + $0x10] ss:$36 sps:$4 sm:$0xff]  }
 0x22b   : > { %2155 = vmatprep.subr.bf16.mxu0 %v10297_v38  ;;  %v10378_v37 = vld [vmem:[#allocation10 + $0x68c] ss:$36 sps:$4 sm:$0xff]  }
 0x22c   : > { %v10381_v38 = vld [vmem:[#allocation10 + $0x44c] ss:$36 sps:$4 sm:$0xff]  }
 0x22d   : > { %2115 = vmatpush1.bf16.msra.mxu1 %v10292_v39  ;;  %v10376_v39 = vld [vmem:[#allocation10 + $0x688] ss:$36 sps:$4 sm:$0xff]  }
 0x22e   : > { %2156 = vmatpush1.bf16.msra.mxu0 %v10295_v40  ;;  %2116 = vmatprep.subr.bf16.mxu1 %v10300_v41  ;;  %v10379_v40 = vld [vmem:[#allocation10 + $0x448] ss:$36 sps:$4 sm:$0xff]  }
 0x22f   : > { %2157 = vmatprep.subr.bf16.mxu0 %v10303_v42  ;;  %v10384_v41 = vld [vmem:[#allocation10 + $0x644] ss:$36 sps:$4 sm:$0xff]  }
 0x230   : > { %v10387_v42 = vld [vmem:[#allocation10 + $0x404] ss:$36 sps:$4 sm:$0xff]  }
 0x231   : > { %2117 = vmatpush1.bf16.msra.mxu1 %v10298_v43  ;;  %v10382_v43 = vld [vmem:[#allocation10 + $0x640] ss:$36 sps:$4 sm:$0xff]  }
 0x232   : > { %2158 = vmatpush1.bf16.msra.mxu0 %v10301_v44  ;;  %2118 = vmatprep.subr.bf16.mxu1 %v10306_v45  ;;  %v10385_v44 = vld [vmem:[#allocation10 + $0x400] ss:$36 sps:$4 sm:$0xff]  }
 0x233   : > { %2159 = vmatprep.subr.bf16.mxu0 %v10309_v46  ;;  %v10390_v45 = vld [vmem:[#allocation10 + $0x5fc] ss:$36 sps:$4 sm:$0xff]  }
 0x234   : > { %v10393_v46 = vld [vmem:[#allocation10 + $0x3bc] ss:$36 sps:$4 sm:$0xff]  }
 0x235   : > { %2119 = vmatpush1.bf16.msra.mxu1 %v10304_v47  ;;  %v10388_v47 = vld [vmem:[#allocation10 + $0x5f8] ss:$36 sps:$4 sm:$0xff]  }
 0x236   : > { %2160 = vmatpush1.bf16.msra.mxu0 %v10307_v48  ;;  %2120 = vmatprep.subr.bf16.mxu1 %v10312_v49  ;;  %v10391_v48 = vld [vmem:[#allocation10 + $0x3b8] ss:$36 sps:$4 sm:$0xff]  }
 0x237   : > { %2161 = vmatprep.subr.bf16.mxu0 %v10315_v50  ;;  %v10396_v49 = vld [vmem:[#allocation10 + $0x5b4] ss:$36 sps:$4 sm:$0xff]  }
 0x238   : > { %v10399_v50 = vld [vmem:[#allocation10 + $0x374] ss:$36 sps:$4 sm:$0xff]  }
 0x239   : > { %2121 = vmatpush1.bf16.msra.mxu1 %v10310_v51  ;;  %v10394_v51 = vld [vmem:[#allocation10 + $0x5b0] ss:$36 sps:$4 sm:$0xff]  }
 0x23a   : > { %2162 = vmatpush1.bf16.msra.mxu0 %v10313_v52  ;;  %2122 = vmatprep.subr.bf16.mxu1 %v10318_v53  ;;  %v10397_v52 = vld [vmem:[#allocation10 + $0x370] ss:$36 sps:$4 sm:$0xff]  }
 0x23b   : > { %2163 = vmatprep.subr.bf16.mxu0 %v10321_v54  ;;  %v10402_v53 = vld [vmem:[#allocation10 + $0x56c] ss:$36 sps:$4 sm:$0xff]  }
 0x23c   : > { %v10405_v54 = vld [vmem:[#allocation10 + $0x32c] ss:$36 sps:$4 sm:$0xff]  }
 0x23d   : > { %2123 = vmatpush1.bf16.msra.mxu1 %v10316_v55  ;;  %v10400_v55 = vld [vmem:[#allocation10 + $0x568] ss:$36 sps:$4 sm:$0xff]  }
 0x23e   : > { %2164 = vmatpush1.bf16.msra.mxu0 %v10319_v56  ;;  %2124 = vmatprep.subr.bf16.mxu1 %v10324_v57  ;;  %v10403_v56 = vld [vmem:[#allocation10 + $0x328] ss:$36 sps:$4 sm:$0xff]  }
 0x23f   : > { %2165 = vmatprep.subr.bf16.mxu0 %v10327_v59  ;;  %v10408_v57 = vld [vmem:[#allocation10 + $0x524] ss:$36 sps:$4 sm:$0xff]  }
 0x240   : > { %v10411_v59 = vld [vmem:[#allocation10 + $0x2e4] ss:$36 sps:$4 sm:$0xff]  }
 0x241   : > { %2125 = vmatpush1.bf16.msra.mxu1 %v10322_v60  ;;  %v10406_v60 = vld [vmem:[#allocation10 + $0x520] ss:$36 sps:$4 sm:$0xff]  }
 0x242   : > { %2166 = vmatpush1.bf16.msra.mxu0 %v10325_v61  ;;  %2126 = vmatprep.subr.bf16.mxu1 %v10330_v62  ;;  %v10409_v61 = vld [vmem:[#allocation10 + $0x2e0] ss:$36 sps:$4 sm:$0xff]  }
 0x243   : > { %2192 = vmatprep.subr.bf16.mxu0 %v10333_v63  ;;  %v10414_v62 = vld [vmem:[#allocation10 + $0x4dc] ss:$36 sps:$4 sm:$0xff]  }
 0x244   : > { %v10417_v63 = vld [vmem:[#allocation10 + $0x29c] ss:$36 sps:$4 sm:$0xff]  }
 0x245   : > { %2127 = vmatpush2.bf16.msra.mxu1 %v10328_v0  ;;  %2184 = vmatmul.mubr.bf16.vlgmr.msra.gmra.mxu0 %v12262_v34  ;;  %v10412_v0 = vld [vmem:[#allocation10 + $0x4d8] ss:$36 sps:$4 sm:$0xff]  }
 0x246   : > { %2193 = vmatpush1.bf16.msra.mxu0 %v10331_v1  ;;  %2224 = vmatprep.mubr.bf16.mxu0 %v12260_v30  ;;  %v10415_v1 = vld [vmem:[#allocation10 + $0x298] ss:$36 sps:$4 sm:$0xff]  }
 0x247   : > { %2128 = vmatprep.subr.bf16.mxu1 %v10336_v2  ;;  %2194 = vmatprep.subr.bf16.mxu0 %v10339_v3  ;;  %v10420_v2 = vld [vmem:[#allocation10 + $0x494] ss:$36 sps:$4 sm:$0xff]  }
 0x248   : > { %v10423_v3 = vld [vmem:[#allocation10 + $0x254] ss:$36 sps:$4 sm:$0xff]  }
 0x249   : > { %2129 = vmatpush2.bf16.msra.mxu1 %v10334_v4  ;;  %v10418_v4 = vld [vmem:[#allocation10 + $0x490] ss:$36 sps:$4 sm:$0xff]  }
 0x24a   : > { %2195 = vmatpush1.bf16.msra.mxu0 %v10337_v5  ;;  %2130 = vmatprep.subr.bf16.mxu1 %v10342_v7  ;;  %v10421_v5 = vld [vmem:[#allocation10 + $0x250] ss:$36 sps:$4 sm:$0xff]  }
 0x24b   : > { %2196 = vmatprep.subr.bf16.mxu0 %v10345_v11  ;;  %v10426_v7 = vld [vmem:[#allocation10 + $0x214] ss:$36 sps:$4 sm:$0xff]  }
 0x24c   : > { %v10429_v11 = vld [vmem:[#allocation10 + $0x694] ss:$36 sps:$4 sm:$0xff]  }
 0x24d   : > { %2131 = vmatpush2.bf16.msra.mxu1 %v10340_v12  ;;  %v10424_v12 = vld [vmem:[#allocation10 + $0x210] ss:$36 sps:$4 sm:$0xff]  }
 0x24e   : > { %2197 = vmatpush1.bf16.msra.mxu0 %v10343_v13  ;;  %2132 = vmatprep.subr.bf16.mxu1 %v10348_v14  ;;  %v10427_v13 = vld [vmem:[#allocation10 + $0x690] ss:$36 sps:$4 sm:$0xff]  }
 0x24f   : > { %2198 = vmatprep.subr.bf16.mxu0 %v10351_v15  ;;  %v10432_v14 = vld [vmem:[#allocation10 + $0x1cc] ss:$36 sps:$4 sm:$0xff]  }
 0x250   : > { %v10435_v15 = vld [vmem:[#allocation10 + $0x64c] ss:$36 sps:$4 sm:$0xff]  }
 0x251   : > { %2133 = vmatpush2.bf16.msra.mxu1 %v10346_v16  ;;  %v10430_v16 = vld [vmem:[#allocation10 + $0x1c8] ss:$36 sps:$4 sm:$0xff]  }
 0x252   : > { %2199 = vmatpush1.bf16.msra.mxu0 %v10349_v17  ;;  %2134 = vmatprep.subr.bf16.mxu1 %v10354_v18  ;;  %v10433_v17 = vld [vmem:[#allocation10 + $0x648] ss:$36 sps:$4 sm:$0xff]  }
 0x253   : > { %2200 = vmatprep.subr.bf16.mxu0 %v10357_v19  ;;  %v10438_v18 = vld [vmem:[#allocation10 + $0x184] ss:$36 sps:$4 sm:$0xff]  }
 0x254   : > { %v10441_v19 = vld [vmem:[#allocation10 + $0x604] ss:$36 sps:$4 sm:$0xff]  }
 0x255   : > { %2135 = vmatpush2.bf16.msra.mxu1 %v10352_v20  ;;  %v10436_v20 = vld [vmem:[#allocation10 + $0x180] ss:$36 sps:$4 sm:$0xff]  }
 0x256   : > { %2201 = vmatpush1.bf16.msra.mxu0 %v10355_v21  ;;  %2136 = vmatprep.subr.bf16.mxu1 %v10360_v22  ;;  %v10439_v21 = vld [vmem:[#allocation10 + $0x600] ss:$36 sps:$4 sm:$0xff]  }
 0x257   : > { %2202 = vmatprep.subr.bf16.mxu0 %v10363_v23  ;;  %v10444_v22 = vld [vmem:[#allocation10 + $0x13c] ss:$36 sps:$4 sm:$0xff]  }
 0x258   : > { %v10447_v23 = vld [vmem:[#allocation10 + $0x5bc] ss:$36 sps:$4 sm:$0xff]  }
 0x259   : > { %2137 = vmatpush2.bf16.msra.mxu1 %v10358_v24  ;;  %v10442_v24 = vld [vmem:[#allocation10 + $0x138] ss:$36 sps:$4 sm:$0xff]  }
 0x25a   : > { %2203 = vmatpush1.bf16.msra.mxu0 %v10361_v25  ;;  %2138 = vmatprep.subr.bf16.mxu1 %v10366_v26  ;;  %v10445_v25 = vld [vmem:[#allocation10 + $0x5b8] ss:$36 sps:$4 sm:$0xff]  }
 0x25b   : > { %2204 = vmatprep.subr.bf16.mxu0 %v10369_v27  ;;  %v10450_v26 = vld [vmem:[#allocation10 + $0xf4] ss:$36 sps:$4 sm:$0xff]  }
 0x25c   : > { %v10453_v27 = vld [vmem:[#allocation10 + $0x574] ss:$36 sps:$4 sm:$0xff]  }
 0x25d   : > { %2139 = vmatpush2.bf16.msra.mxu1 %v10364_v28  ;;  %v10448_v28 = vld [vmem:[#allocation10 + $0xf0] ss:$36 sps:$4 sm:$0xff]  }
 0x25e   : > { %2205 = vmatpush1.bf16.msra.mxu0 %v10367_v29  ;;  %2140 = vmatprep.subr.bf16.mxu1 %v10372_v32  ;;  %v10451_v29 = vld [vmem:[#allocation10 + $0x570] ss:$36 sps:$4 sm:$0xff]  }
 0x25f   : > { %2206 = vmatprep.subr.bf16.mxu0 %v10375_v33  ;;  %v10456_v32 = vld [vmem:[#allocation10 + $0xac] ss:$36 sps:$4 sm:$0xff]  }
 0x260   : > { %v10459_v33 = vld [vmem:[#allocation10 + $0x52c] ss:$36 sps:$4 sm:$0xff]  }
 0x261   : > { %2141 = vmatpush2.bf16.msra.mxu1 %v10370_v31  ;;  %v10454_v31 = vld [vmem:[#allocation10 + $0xa8] ss:$36 sps:$4 sm:$0xff]  }
 0x262   : > { %2207 = vmatpush1.bf16.msra.mxu0 %v10373_v36  ;;  %2233 = vmatprep.subr.bf16.mxu1 %v10378_v37  ;;  %v10457_v36 = vld [vmem:[#allocation10 + $0x528] ss:$36 sps:$4 sm:$0xff]  }
 0x263   : > { %2208 = vmatprep.subr.bf16.mxu0 %v10381_v38  ;;  %v10462_v37 = vld [vmem:[#allocation10 + $0x64] ss:$36 sps:$4 sm:$0xff]  }
 0x264   : > { %2143 = vmatmul.mubr.bf16.vlgmr.msra.gmra.mxu1 %v12264_v35  ;;  %v10465_v38 = vld [vmem:[#allocation10 + $0x4e4] ss:$36 sps:$4 sm:$0xff]  }
 0x265   : > { %2234 = vmatpush1.bf16.msra.mxu1 %v10376_v39  ;;  %2265 = vmatprep.mubr.bf16.mxu1 %v11912_v58  ;;  %v10460_v39 = vld [vmem:[#allocation10 + $0x60] ss:$36 sps:$4 sm:$0xff]  }
 0x266   : > { %2209 = vmatpush2.bf16.msra.mxu0 %v10379_v40  ;;  %2235 = vmatprep.subr.bf16.mxu1 %v10384_v41  ;;  %v10463_v40 = vld [vmem:[#allocation10 + $0x4e0] ss:$36 sps:$4 sm:$0xff]  }
 0x267   : > { %2210 = vmatprep.subr.bf16.mxu0 %v10387_v42  ;;  %v10468_v41 = vld [vmem:[#allocation10 + $0x1c] ss:$36 sps:$4 sm:$0xff]  }
 0x268   : > { %v10471_v42 = vld [vmem:[#allocation10 + $0x49c] ss:$36 sps:$4 sm:$0xff]  }
 0x269   : > { %2236 = vmatpush1.bf16.msra.mxu1 %v10382_v43  ;;  %v10466_v43 = vld [vmem:[#allocation10 + $0x18] ss:$36 sps:$4 sm:$0xff]  }
 0x26a   : > { %2211 = vmatpush2.bf16.msra.mxu0 %v10385_v44  ;;  %2237 = vmatprep.subr.bf16.mxu1 %v10390_v45  ;;  %v10469_v44 = vld [vmem:[#allocation10 + $0x498] ss:$36 sps:$4 sm:$0xff]  }
 0x26b   : > { %2212 = vmatprep.subr.bf16.mxu0 %v10393_v46  ;;  %v10474_v45 = vld [vmem:[#allocation10 + $0x454] ss:$36 sps:$4 sm:$0xff]  }
 0x26c   : > { %v10475_v46 = vld [vmem:[#allocation10 + $0x458] ss:$36 sps:$4 sm:$0xff]  }
 0x26d   : > { %2238 = vmatpush1.bf16.msra.mxu1 %v10388_v47  ;;  %v10472_v47 = vld [vmem:[#allocation10 + $0x450] ss:$36 sps:$4 sm:$0xff]  }
 0x26e   : > { %2213 = vmatpush2.bf16.msra.mxu0 %v10391_v48  ;;  %2239 = vmatprep.subr.bf16.mxu1 %v10396_v49  ;;  %v10476_v48 = vld [vmem:[#allocation10 + $0x218] ss:$36 sps:$4 sm:$0xff]   ;;  %v10479_v49 = vld [vmem:[#allocation10 + $0x40c] ss:$36 sps:$4 sm:$0xff]  }
 0x26f   : > { %2214 = vmatprep.subr.bf16.mxu0 %v10399_v50  ;;  %v10480_v50 = vld [vmem:[#allocation10 + $0x410] ss:$36 sps:$4 sm:$0xff]  }
 0x271   : > { %2240 = vmatpush1.bf16.msra.mxu1 %v10394_v51  ;;  %v10477_v51 = vld [vmem:[#allocation10 + $0x408] ss:$36 sps:$4 sm:$0xff]  }
 0x272   : > { %2215 = vmatpush2.bf16.msra.mxu0 %v10397_v52  ;;  %2241 = vmatprep.subr.bf16.mxu1 %v10402_v53  ;;  %v10481_v52 = vld [vmem:[#allocation10 + $0x1d0] ss:$36 sps:$4 sm:$0xff]   ;;  %v10484_v53 = vld [vmem:[#allocation10 + $0x3c4] ss:$36 sps:$4 sm:$0xff]  }
 0x273   : > { %2216 = vmatprep.subr.bf16.mxu0 %v10405_v54  ;;  %v10485_v54 = vld [vmem:[#allocation10 + $0x3c8] ss:$36 sps:$4 sm:$0xff]  }
 0x275   : > { %2242 = vmatpush1.bf16.msra.mxu1 %v10400_v55  ;;  %v10482_v55 = vld [vmem:[#allocation10 + $0x3c0] ss:$36 sps:$4 sm:$0xff]  }
 0x276   : > { %2217 = vmatpush2.bf16.msra.mxu0 %v10403_v56  ;;  %2243 = vmatprep.subr.bf16.mxu1 %v10408_v57  ;;  %v10486_v56 = vld [vmem:[#allocation10 + $0x188] ss:$36 sps:$4 sm:$0xff]   ;;  %v10489_v57 = vld [vmem:[#allocation10 + $0x37c] ss:$36 sps:$4 sm:$0xff]  }
 0x277   : > { %2218 = vmatprep.subr.bf16.mxu0 %v10411_v59  ;;  %v10490_v59 = vld [vmem:[#allocation10 + $0x380] ss:$36 sps:$4 sm:$0xff]  }
 0x279   : > { %2244 = vmatpush1.bf16.msra.mxu1 %v10406_v60  ;;  %v10487_v60 = vld [vmem:[#allocation10 + $0x378] ss:$36 sps:$4 sm:$0xff]  }
 0x27a   : > { %2219 = vmatpush2.bf16.msra.mxu0 %v10409_v61  ;;  %2245 = vmatprep.subr.bf16.mxu1 %v10414_v62  ;;  %v10491_v61 = vld [vmem:[#allocation10 + $0x140] ss:$36 sps:$4 sm:$0xff]   ;;  %v10494_v62 = vld [vmem:[#allocation10 + $0x334] ss:$36 sps:$4 sm:$0xff]  }
 0x27b   : > { %2220 = vmatprep.subr.bf16.mxu0 %v10417_v63  ;;  %v10492_v63 = vld [vmem:[#allocation10 + $0x330] ss:$36 sps:$4 sm:$0xff]  }
 0x27d   : > { %2246 = vmatpush1.bf16.msra.mxu1 %v10412_v0  ;;  %v10496_v0 = vld [vmem:[#allocation10 + $0xf8] ss:$36 sps:$4 sm:$0xff]  }
 0x27e   : > { %2221 = vmatpush2.bf16.msra.mxu0 %v10415_v1  ;;  %2247 = vmatprep.subr.bf16.mxu1 %v10420_v2  ;;  %v10499_v1 = vld [vmem:[#allocation10 + $0x2ec] ss:$36 sps:$4 sm:$0xff]  }
 0x27f   : > { %2222 = vmatprep.subr.bf16.mxu0 %v10423_v3  ;;  %v10500_v2 = vld [vmem:[#allocation10 + $0x2f0] ss:$36 sps:$4 sm:$0xff]   ;;  %v10497_v3 = vld [vmem:[#allocation10 + $0x2e8] ss:$36 sps:$4 sm:$0xff]  }
 0x281   : > { %2248 = vmatpush1.bf16.msra.mxu1 %v10418_v4  ;;  %v10501_v4 = vld [vmem:[#allocation10 + $0xb0] ss:$36 sps:$4 sm:$0xff]  }
 0x282   : > { %2223 = vmatpush2.bf16.msra.mxu0 %v10421_v5  ;;  %2274 = vmatprep.subr.bf16.mxu1 %v10426_v7  ;;  %v10504_v5 = vld [vmem:[#allocation10 + $0x2a4] ss:$36 sps:$4 sm:$0xff]  }
 0x283   : > { %2315 = vmatprep.subr.bf16.mxu0 %v10429_v11  ;;  %v10505_v7 = vld [vmem:[#allocation10 + $0x2a8] ss:$36 sps:$4 sm:$0xff]   ;;  %v10502_v11 = vld [vmem:[#allocation10 + $0x2a0] ss:$36 sps:$4 sm:$0xff]  }
 0x284   : > { %2266 = vmatmul.mubr.bf16.vlgmr.msra.gmra.mxu1 %v12262_v34 }
 0x285   : > { %2225 = vmatmul.mubr.bf16.vlgmr.msra.gmra.mxu0 %v12264_v35  ;;  %2275 = vmatpush1.bf16.msra.mxu1 %v10424_v12  ;;  %v10506_v12 = vld [vmem:[#allocation10 + $0x68] ss:$36 sps:$4 sm:$0xff]  }
 0x286   : > { %2306 = vmatprep.mubr.bf16.mxu1 %v12260_v30  ;;  %2316 = vmatpush1.bf16.msra.mxu0 %v10427_v13  ;;  %v10509_v13 = vld [vmem:[#allocation10 + $0x25c] ss:$36 sps:$4 sm:$0xff]  }
 0x287   : > { %2276 = vmatprep.subr.bf16.mxu1 %v10432_v14  ;;  %2317 = vmatprep.subr.bf16.mxu0 %v10435_v15  ;;  %v10510_v14 = vld [vmem:[#allocation10 + $0x260] ss:$36 sps:$4 sm:$0xff]   ;;  %v10507_v15 = vld [vmem:[#allocation10 + $0x258] ss:$36 sps:$4 sm:$0xff]  }
 0x288   : > { %2347 = vmatprep.mubr.bf16.mxu0 %v11912_v58 }
 0x289   : > { %2277 = vmatpush1.bf16.msra.mxu1 %v10430_v16  ;;  %v10511_v16 = vld [vmem:[#allocation10 + $0x20] ss:$36 sps:$4 sm:$0xff]  }
 0x28a   : > { %2318 = vmatpush1.bf16.msra.mxu0 %v10433_v17  ;;  %2278 = vmatprep.subr.bf16.mxu1 %v10438_v18  ;;  %v10512_v17 = vld [vmem:[#allocation10 + $0x698] ss:$36 sps:$4 sm:$0xff]   ;;  %v11913_v18 = vmov 0.0  }
 0x28b   : > { %2319 = vmatprep.subr.bf16.mxu0 %v10441_v19  ;;  %v10513_v19 = vld [vmem:[#allocation10 + $0x650] ss:$36 sps:$4 sm:$0xff]  }
 0x28d   : > { %2279 = vmatpush1.bf16.msra.mxu1 %v10436_v20  ;;  %v10514_v20 = vld [vmem:[#allocation10 + $0x608] ss:$36 sps:$4 sm:$0xff]  }
 0x28e   : > { %2320 = vmatpush1.bf16.msra.mxu0 %v10439_v21  ;;  %2280 = vmatprep.subr.bf16.mxu1 %v10444_v22  ;;  %v10515_v21 = vld [vmem:[#allocation10 + $0x5c0] ss:$36 sps:$4 sm:$0xff]   ;;  %v10517_v22 = vld [vmem:[#allocation10 + $0x530] ss:$36 sps:$4 sm:$0xff]  }
 0x28f   : > { %2321 = vmatprep.subr.bf16.mxu0 %v10447_v23  ;;  %v10518_v23 = vld [vmem:[#allocation10 + $0x4e8] ss:$36 sps:$4 sm:$0xff]  }
 0x291   : > { %2281 = vmatpush1.bf16.msra.mxu1 %v10442_v24  ;;  %v10519_v24 = vld [vmem:[#allocation10 + $0x4a0] ss:$36 sps:$4 sm:$0xff]  }
 0x292   : > { %2322 = vmatpush1.bf16.msra.mxu0 %v10445_v25  ;;  %2282 = vmatprep.subr.bf16.mxu1 %v10450_v26 }
 0x293   : > { %2323 = vmatprep.subr.bf16.mxu0 %v10453_v27 }
 0x295   : > { %2283 = vmatpush1.bf16.msra.mxu1 %v10448_v28 }
 0x296   : > { %2324 = vmatpush1.bf16.msra.mxu0 %v10451_v29  ;;  %2284 = vmatprep.subr.bf16.mxu1 %v10456_v32 }
 0x297   : > { %2325 = vmatprep.subr.bf16.mxu0 %v10459_v33 }
 0x299   : > { %2285 = vmatpush1.bf16.msra.mxu1 %v10454_v31 }
 0x29a   : > { %2326 = vmatpush1.bf16.msra.mxu0 %v10457_v36  ;;  %2286 = vmatprep.subr.bf16.mxu1 %v10462_v37 }
 0x29b   : > { %2327 = vmatprep.subr.bf16.mxu0 %v10465_v38 }
 0x29d   : > { %2287 = vmatpush1.bf16.msra.mxu1 %v10460_v39 }
 0x29e   : > { %2328 = vmatpush1.bf16.msra.mxu0 %v10463_v40  ;;  %2288 = vmatprep.subr.bf16.mxu1 %v10468_v41 }
 0x29f   : > { %2329 = vmatprep.subr.bf16.mxu0 %v10471_v42 }
 0x2a1   : > { %2289 = vmatpush1.bf16.msra.mxu1 %v10466_v43 }
 0x2a2   : > { %2330 = vmatpush1.bf16.msra.mxu0 %v10469_v44  ;;  %2290 = vmatprep.subr.bf16.mxu1 %v10474_v45 }
 0x2a3   : > { %9697 = vmatprep.subr.bf16.mxu0 %v10475_v46 }
 0x2a5   : > { %2291 = vmatpush2.bf16.msra.mxu1 %v10472_v47  ;;  %2348 = vmatmul.mubr.bf16.vlgmr.msra.gmra.mxu0 %v12262_v34 }
 0x2a6   : > { %9698 = vmatpush3.bf16.msra.mxu0 %v10476_v48  ;;  %2388 = vmatprep.mubr.bf16.mxu0 %v12260_v30  ;;  %v10495_v30 = vld [vmem:[#allocation10 + $0x338] ss:$36 sps:$4 sm:$0xff]  }
 0x2a7   : > { %2292 = vmatprep.subr.bf16.mxu1 %v10479_v49  ;;  %9699 = vmatprep.subr.bf16.mxu0 %v10480_v50 }
 0x2a9   : > { %2293 = vmatpush2.bf16.msra.mxu1 %v10477_v51 }
 0x2aa   : > { %9700 = vmatpush3.bf16.msra.mxu0 %v10481_v52  ;;  %2294 = vmatprep.subr.bf16.mxu1 %v10484_v53 }
 0x2ab   : > { %9701 = vmatprep.subr.bf16.mxu0 %v10485_v54 }
 0x2ad   : > { %2295 = vmatpush2.bf16.msra.mxu1 %v10482_v55 }
 0x2ae   : > { %9702 = vmatpush3.bf16.msra.mxu0 %v10486_v56  ;;  %2296 = vmatprep.subr.bf16.mxu1 %v10489_v57 }
 0x2af   : > { %9703 = vmatprep.subr.bf16.mxu0 %v10490_v59 }
 0x2b1   : > { %2297 = vmatpush2.bf16.msra.mxu1 %v10487_v60 }
 0x2b2   : > { %9704 = vmatpush3.bf16.msra.mxu0 %v10491_v61  ;;  %2298 = vmatprep.subr.bf16.mxu1 %v10494_v62 }
 0x2b3   : > { %9705 = vmatprep.subr.bf16.mxu0 %v10495_v30 }
 0x2b5   : > { %2299 = vmatpush2.bf16.msra.mxu1 %v10492_v63 }
 0x2b6   : > { %9706 = vmatpush3.bf16.msra.mxu0 %v10496_v0  ;;  %2300 = vmatprep.subr.bf16.mxu1 %v10499_v1 }
 0x2b7   : > { %9707 = vmatprep.subr.bf16.mxu0 %v10500_v2 }
 0x2b9   : > { %2301 = vmatpush2.bf16.msra.mxu1 %v10497_v3 }
 0x2ba   : > { %9708 = vmatpush3.bf16.msra.mxu0 %v10501_v4  ;;  %2302 = vmatprep.subr.bf16.mxu1 %v10504_v5 }
 0x2bb   : > { %9709 = vmatprep.subr.bf16.mxu0 %v10505_v7 }
 0x2bd   : > { %2303 = vmatpush2.bf16.msra.mxu1 %v10502_v11 }
 0x2be   : > { %9710 = vmatpush3.bf16.msra.mxu0 %v10506_v12  ;;  %2304 = vmatprep.subr.bf16.mxu1 %v10509_v13 }
 0x2bf   : > { %9711 = vmatprep.subr.bf16.mxu0 %v10510_v14 }
 0x2c1   : > { %2305 = vmatpush2.bf16.msra.mxu1 %v10507_v15 }
 0x2c2   : > { %9712 = vmatpush3.bf16.msra.mxu0 %v10511_v16  ;;  %9915 = vmatprep.subr.bf16.mxu1 %v11913_v18 }
 0x2c3   : > { %9959 = vmatprep.subr.bf16.mxu0 %v11913_v18 }
 0x2c4   : > { %2307 = vmatmul.mubr.bf16.vlgmr.msra.gmra.mxu1 %v12264_v35 }
 0x2c5   : > { %2389 = vmatmul.mubr.bf16.vlgmr.msra.gmra.mxu0 %v12264_v35  ;;  %9916 = vmatpush3.bf16.msra.mxu1 %v10512_v17  ;;  %v10516_v35 = vld [vmem:[#allocation10 + $0x578] ss:$36 sps:$4 sm:$0xff]  }
 0x2c6   : > { %9917 = vmatprep.subr.bf16.mxu1 %v11913_v18  ;;  %9931 = vmatprep.mubr.msk.bf16.mxu1 %vm11914_vm0, %v11913_v18 }
 0x2c7   : > { %9961 = vmatprep.mubr.msk.bf16.mxu0 %vm11914_vm0, %v11913_v18 }
 0x2c9   : > { %9918 = vmatpush3.bf16.msra.mxu1 %v10513_v19 }
 0x2ca   : > { %9919 = vmatprep.subr.bf16.mxu1 %v11913_v18 }
 0x2cd   : > { %9920 = vmatpush3.bf16.msra.mxu1 %v10514_v20 }
 0x2ce   : > { %9921 = vmatprep.subr.bf16.mxu1 %v11913_v18 }
 0x2d1   : > { %9922 = vmatpush3.bf16.msra.mxu1 %v10515_v21 }
 0x2d2   : > { %9923 = vmatprep.subr.bf16.mxu1 %v11913_v18 }
 0x2d5   : > { %9924 = vmatpush3.bf16.msra.mxu1 %v10516_v35 }
 0x2d6   : > { %9925 = vmatprep.subr.bf16.mxu1 %v11913_v18 }
 0x2d9   : > { %9926 = vmatpush3.bf16.msra.mxu1 %v10517_v22 }
 0x2da   : > { %9927 = vmatprep.subr.bf16.mxu1 %v11913_v18 }
 0x2dd   : > { %9928 = vmatpush3.bf16.msra.mxu1 %v10518_v23 }
 0x2de   : > { %9929 = vmatprep.subr.bf16.mxu1 %v11913_v18 }
 0x2e1   : > { %9930 = vmatpush3.bf16.msra.mxu1 %v10519_v24 }
 0x2e2   : > { %9935 = vmatprep.subr.bf16.mxu1 %v11913_v18 }
 0x2e4   : > { %9932 = vmatmul.mubr.bf16.vlgmr.msra.gmra.mxu1 %v12262_v34  ;;  %v2103_v25 = vpop.f32.mrf.mxu1 }
 0x2e5   : > { %v2062_v26 = vpop.f32.mrf.mxu0  ;;  %9937 = vmatprep.mubr.msk.bf16.mxu1 %vm11914_vm0, %v11913_v18 }
 0x2e6   : > { %v2104_v27 = vadd.f32 %v2103_v25, %v2062_v26  ;;  %v2105_v28 = vpop.f32.mrf.mxu1  ;;  %v12329_v26 = vld [vmem:[#allocation5] sm:$0xff] }
 0x2e7   : > { %v2064_v29 = vpop.f32.mrf.mxu0 }
 0x2e8   : > { %v2106_v32 = vadd.f32 %v2105_v28, %v2064_v29  ;;  %v2107_v33 = vpop.f32.mrf.mxu1  ;;  %v12305_v49 = vpack.c.bf16 %v2104_v27, %v2104_v27 }
 0x2e9   : > { %v2066_v31 = vpop.f32.mrf.mxu0 }
 0x2ea   : > { %v2108_v36 = vpop.f32.mrf.mxu1  ;;  %v2437_v63 = vpack.c.bf16 %v2106_v32, %v2106_v32 }
 0x2eb   : > { %v2067_v37 = vpop.f32.mrf.mxu0 }
 0x305   : > { %v2185_v38 = vpop.f32.mrf.mxu0 }
 0x307   : > { %v2187_v39 = vpop.f32.mrf.mxu0 }
 0x309   : > { %v2189_v40 = vpop.f32.mrf.mxu0 }
 0x30b   : > { %v2190_v41 = vpop.f32.mrf.mxu0 }
 0x324   : > { %v2144_v42 = vpop.f32.mrf.mxu1 }
 0x325   : > { %v12300_v43 = vadd.f32 %v2185_v38, %v2144_v42 }
 0x326   : > { %v2146_v34 = vpop.f32.mrf.mxu1 }
 0x327   : > { %v2188_v44 = vadd.f32 %v2187_v39, %v2146_v34 }
 0x328   : > { %v2148_v45 = vpop.f32.mrf.mxu1 }
 0x329   : > { %v2439_v46 = vpack.c.bf16 %v2188_v44, %v2188_v44  ;;  %v2438_v45 = vpack.c.bf16 %v12300_v43, %v12300_v43 }
 0x32a   : > { %v2149_v47 = vpop.f32.mrf.mxu1 }
 0x32b   : > { %v2451_v48 = vsel %vm2446_vm1, %v2439_v46, 0  ;;  %2558 = vrot.lane.b32.xlu0 %v2439_v46, %s11915_s2 }
 0x32c   : > { %9936 = vmatpush3.bf16.xpose.msra.mxu1 %v2451_v48 }
 0x32d   : > { %9941 = vmatprep.subr.bf16.mxu1 %v11913_v18 }
 0x333   : > { %9938 = vmatmul.mubr.msk.bf16.vlgmr.msra.gmra.mxu1 %vm2446_vm1, %v12305_v49 }
 0x334   : > { %9943 = vmatprep.mubr.msk.bf16.mxu1 %vm11914_vm0, %v11913_v18 }
 0x344   : > { %v2267_v50 = vpop.f32.mrf.mxu1 }
 0x345   : > { %v2226_v51 = vpop.f32.mrf.mxu0 }
 0x346   : > { %v2268_v52 = vadd.f32 %v2267_v50, %v2226_v51  ;;  %v2269_v53 = vpop.f32.mrf.mxu1 }
 0x347   : > { %v2228_v54 = vpop.f32.mrf.mxu0 }
 0x348   : > { %v2440_v55 = vpack.c.bf16 %v2268_v52, %v2268_v52  ;;  %v2270_v56 = vadd.f32 %v2269_v53, %v2228_v54  ;;  %v2271_v57 = vpop.f32.mrf.mxu1 }
 0x349   : > { %v2230_v59 = vpop.f32.mrf.mxu0 }
 0x34a   : > { %v2672_v60 = vsel %vm2446_vm1, %v2440_v55, 0  ;;  %v12312_v61 = vpack.c.bf16 %v2270_v56, %v2270_v56  ;;  %v2272_v62 = vpop.f32.mrf.mxu1 }
 0x34b   : > { %v2231_v30 = vpop.f32.mrf.mxu0  ;;  %9960 = vmatpush3.bf16.xpose.msra.mxu0 %v2672_v60 }
 0x34c   : > { %2996 = vrot.lane.b32.xlu0 %v12312_v61, %s11915_s2  ;;  %9971 = vmatprep.subr.bf16.mxu0 %v11913_v18 }
 0x352   : > { %9962 = vmatmul.mubr.msk.bf16.vlgmr.msra.gmra.mxu0 %vm2446_vm1, %v2437_v63 }
 0x353   : > { %9973 = vmatprep.mubr.msk.bf16.mxu0 %vm11914_vm0, %v11913_v18 }
 0x365   : > { %v2349_v0 = vpop.f32.mrf.mxu0 }
 0x367   : > { %v2351_v1 = vpop.f32.mrf.mxu0 }
 0x369   : > { %v2353_v2 = vpop.f32.mrf.mxu0 }
 0x36b   : > { %v2354_v3 = vpop.f32.mrf.mxu0 }
 0x384   : > { %v2308_v4 = vpop.f32.mrf.mxu1 }
 0x385   : > { %v2350_v5 = vadd.f32 %v2349_v0, %v2308_v4  ;;  %v9713_v7 = vpop.f32.mrf.mxu0 }
 0x386   : > { %v2310_v11 = vpop.f32.mrf.mxu1 }
 0x387   : > { %v12320_v12 = vpack.c.bf16 %v2350_v5, %v2350_v5  ;;  %v12322_v13 = vadd.f32 %v2351_v1, %v2310_v11  ;;  %v9714_v14 = vpop.f32.mrf.mxu0 }
 0x388   : > { %v9715_v15 = vadd.f32 %v9714_v14, %v9713_v7  ;;  %v2312_v16 = vpop.f32.mrf.mxu1 }
 0x389   : > { %v2511_v17 = vsel %vm2509_vm2, %v12320_v12, 0  ;;  %v9716_v19 = vpop.f32.mrf.mxu0 }
 0x38a   : > { %v2313_v20 = vpop.f32.mrf.mxu1  ;;  %9942 = vmatpush3.bf16.msra.mxu1 %v2511_v17 }
 0x38b   : > { %v9717_v21 = vpop.f32.mrf.mxu0  ;;  %9947 = vmatprep.subr.bf16.mxu1 %v11913_v18 }
 0x39d   : > { %v2559_v54 = vpop.permute.xlu0 %2558 }
 0x39e   : > { %v2564_v57 = vsel %vm2446_vm1, %v2559_v54, 0 }
 0x3a4   : > { %v2430_v35 = vpop.f32.mrf.mxu1 }
 0x3a5   : > { %v12327_v22 = vadd.f32 %v9715_v15, %v2430_v35 }
 0x3a6   : > { %v9933_v23 = vpop.f32.mrf.mxu1 }
 0x3a8   : > { %v2433_v24 = vpop.f32.mrf.mxu1 }
 0x3aa   : > { %v9934_v25 = vpop.f32.mrf.mxu1 }
 0x3be   : > { %v2997_v59 = vpop.permute.xlu0 %2996 }
 0x3bf   : > { %v3002_v60 = vsel %vm2446_vm1, %v2997_v59, 0 }
 0x3f3   : > { %v2487_v27 = vpop.f32.mrf.mxu1 }
 0x3f4   : > { %v2488_v28 = vadd.f32 %v2487_v27, %v12329_v26 }
 0x3f5   : > { %v9939_v29 = vpop.f32.mrf.mxu1 }
 0x3f6   : > { %v2494_v32 = vsel %vm2493_vm3, %v2488_v28, -inf }
 0x3f7   : > { %2495 = vmax.xlane.f32.xlu1 %v2494_v32  ;;  %v2490_v33 = vpop.f32.mrf.mxu1 }
 0x3f9   : > { %v9940_v31 = vpop.f32.mrf.mxu1 }
 0x412   : > { %v2708_v36 = vpop.f32.mrf.mxu0 }
 0x413   : > { %v2709_v46 = vadd.f32 %v2708_v36, %v12329_v26 }
 0x414   : > { %v9963_v37 = vpop.f32.mrf.mxu0 }
 0x415   : > { %v2714_v47 = vsel %vm2493_vm3, %v2709_v46, -inf }
 0x416   : > { %v2711_v38 = vpop.f32.mrf.mxu0 }
 0x418   : > { %v9964_v39 = vpop.f32.mrf.mxu0 }
 0x480   : > { %v2496_v40 = vpop.xlane.xlu1 %2495 }
 0x481   : > { %v2497_v41 = vsub.f32 %v2488_v28, %v2496_v40 }
 0x483   : > { %v2498_v42 = vmul.f32 1.442695, %v2497_v41 }
 0x485   : > { %11434 = vpow2.f32 %v2498_v42 }
 0x492   : > { %v11435_v34 = vpop.eup %11434 }
 0x493   : > { %v2500_v44 = vsel %vm2493_vm3, %v11435_v34, 0.0 }
 0x494   : > { %2501 = vadd.xlane.f32.xlu1 %v2500_v44 }
 0x4a5   : > { %2555 = vrot.lane.b32.xlu1 %v12305_v49, %s11915_s2 }
 0x4a9   : > { %2777 = vrot.lane.b32.xlu1 %v2440_v55, %s11915_s2  ;;  %v2891_v55 = vsel %vm2446_vm1, %v12312_v61, 0 }
 0x4ad   : > { %2774 = vrot.lane.b32.xlu1 %v2437_v63, %s11915_s2 }
 0x4b1   : > { %2993 = vrot.lane.b32.xlu1 %v2438_v45, %s11915_s2 }
 0x4d5   : > { %2715 = vmax.xlane.f32.xlu1 %v2714_v47 }
 0x51d   : > { %v2502_v48 = vpop.xlane.xlu1 %2501 }
 0x51e   : > { %11436 = vrcp.f32 %v2502_v48 }
 0x521   : > { %v2556_v50 = vpop.permute.xlu1 %2555 }
 0x525   : > { %v2778_v51 = vpop.permute.xlu1 %2777 }
 0x526   : > { %v2783_v49 = vsel %vm2446_vm1, %v2778_v51, 0 }
 0x527   : > { %9972 = vmatpush3.bf16.xpose.msra.mxu0 %v2783_v49 }
 0x528   : > { %9983 = vmatprep.subr.bf16.mxu0 %v11913_v18 }
 0x529   : > { %v2775_v43 = vpop.permute.xlu1 %2774 }
 0x52b   : > { %v11437_v52 = vpop.eup %11436 }
 0x52c   : > { %v2504_v53 = vmul.f32 %v11437_v52, %v11435_v34 }
 0x52d   : > { %v2994_v61 = vpop.permute.xlu1 %2993 }
 0x52e   : > { %9974 = vmatmul.mubr.msk.bf16.vlgmr.msra.gmra.mxu0 %vm2446_vm1, %v2775_v43  ;;  %v2505_v56 = vpack.c.bf16 %v2504_v53, %v2504_v53 }
 0x52f   : > { %9984 = vmatpush3.bf16.xpose.msra.mxu0 %v2891_v55  ;;  %9985 = vmatprep.mubr.msk.bf16.mxu0 %vm11914_vm0, %v11913_v18 }
 0x530   : > { %9944 = vmatmul.mubr.msk.bf16.vlgmr.msra.gmra.mxu1 %vm2493_vm3, %v2505_v56  ;;  %9995 = vmatprep.subr.bf16.mxu0 %v11913_v18 }
 0x531   : > { %9948 = vmatpush3.bf16.xpose.msra.mxu1 %v2564_v57  ;;  %9949 = vmatprep.mubr.msk.bf16.mxu1 %vm11914_vm0, %v11913_v18 }
 0x532   : > { %9953 = vmatprep.subr.bf16.mxu1 %v11913_v18 }
 0x536   : > { %9986 = vmatmul.mubr.msk.bf16.vlgmr.msra.gmra.mxu0 %vm2446_vm1, %v2438_v45 }
 0x537   : > { %9996 = vmatpush3.bf16.xpose.msra.mxu0 %v3002_v60  ;;  %9997 = vmatprep.mubr.msk.bf16.mxu0 %vm11914_vm0, %v11913_v18  ;;  %v2444_v60 = vpack.c.bf16 %v12327_v22, %v12327_v22 }
 0x538   : > { %9950 = vmatmul.mubr.msk.bf16.vlgmr.msra.gmra.mxu1 %vm2446_vm1, %v2556_v50 }
 0x539   : > { %9955 = vmatprep.mubr.msk.bf16.mxu1 %vm11914_vm0, %v11913_v18 }
 0x53e   : > { %9998 = vmatmul.mubr.msk.bf16.vlgmr.msra.gmra.mxu0 %vm2446_vm1, %v2994_v61  ;;  %v2443_v61 = vpack.c.bf16 %v12322_v13, %v12322_v13 }
 0x55e   : > { %v2716_v30 = vpop.xlane.xlu1 %2715 }
 0x55f   : > { %v2717_v3 = vsub.f32 %v2709_v46, %v2716_v30 }
 0x561   : > { %v2718_v14 = vmul.f32 1.442695, %v2717_v3 }
 0x563   : > { %11438 = vpow2.f32 %v2718_v14 }
 0x570   : > { %v11439_v39 = vpop.eup %11438 }
 0x571   : > { %v2720_v40 = vsel %vm2493_vm3, %v11439_v39, 0.0 }
 0x5ee   : > { %v2819_v62 = vpop.f32.mrf.mxu0 }
 0x5ef   : > { %v2820_v21 = vadd.f32 %v2819_v62, %v12329_v26 }
 0x5f0   : > { %v12364_v63 = vpop.f32.mrf.mxu1  ;;  %v9975_v0 = vpop.f32.mrf.mxu0 }
 0x5f1   : > { %v2825_v29 = vsel %vm2493_vm3, %v2820_v21, -inf }
 0x5f2   : > { %v9945_v1 = vpop.f32.mrf.mxu1  ;;  %v2822_v2 = vpop.f32.mrf.mxu0 }
 0x5f4   : > { %v2550_v4 = vpop.f32.mrf.mxu1  ;;  %v9976_v5 = vpop.f32.mrf.mxu0 }
 0x5f6   : > { %v9946_v7 = vpop.f32.mrf.mxu1  ;;  %v2927_v11 = vpop.f32.mrf.mxu0 }
 0x5f7   : > { %v2928_v28 = vadd.f32 %v2927_v11, %v12329_v26  ;;  %v2730_v7 = vsel %vm2509_vm2, %v2443_v61, 0 }
 0x5f8   : > { %v2600_v15 = vpop.f32.mrf.mxu1  ;;  %v9987_v16 = vpop.f32.mrf.mxu0 }
 0x5f9   : > { %v2601_v17 = vadd.f32 %v2600_v15, %v12329_v26  ;;  %v2933_v36 = vsel %vm2493_vm3, %v2928_v28, -inf }
 0x5fa   : > { %v9951_v19 = vpop.f32.mrf.mxu1  ;;  %v2930_v20 = vpop.f32.mrf.mxu0 }
 0x5fb   : > { %v2606_v35 = vsel %vm2493_vm3, %v2601_v17, -inf }
 0x5fc   : > { %2607 = vmax.xlane.f32.xlu0 %v2606_v35  ;;  %v2603_v23 = vpop.f32.mrf.mxu1  ;;  %v9988_v24 = vpop.f32.mrf.mxu0  ;;  %v2949_v35 = vsel %vm2509_vm2, %v2444_v60, 0 }
 0x5fe   : > { %v9952_v25 = vpop.f32.mrf.mxu1  ;;  %v3038_v27 = vpop.f32.mrf.mxu0 }
 0x5ff   : > { %v3039_v31 = vadd.f32 %v3038_v27, %v12329_v26 }
 0x600   : > { %2826 = vmax.xlane.f32.xlu0 %v2825_v29  ;;  %v9999_v32 = vpop.f32.mrf.mxu0 }
 0x601   : > { %v3044_v38 = vsel %vm2493_vm3, %v3039_v31, -inf }
 0x602   : > { %v3041_v33 = vpop.f32.mrf.mxu0 }
 0x603   : > { %v10520_v33 = vld [vmem:[#allocation11 + $0xa8] ss:$12 sps:$4 sm:$0xff]  }
 0x604   : > { %2934 = vmax.xlane.f32.xlu0 %v2933_v36  ;;  %v10000_v37 = vpop.f32.mrf.mxu0  ;;  %v10525_v36 = vld [vmem:[#allocation11 + $0x94] ss:$12 sps:$4 sm:$0xff]  }
 0x605   : > { %v10523_v37 = vld [vmem:[#allocation11 + $0x90] ss:$12 sps:$4 sm:$0xff]  }
 0x608   : > { %3045 = vmax.xlane.f32.xlu0 %v3044_v38  ;;  %v10528_v38 = vld [vmem:[#allocation11 + $0x7c] ss:$12 sps:$4 sm:$0xff]  }
 0x60c   : > { %2721 = vadd.xlane.f32.xlu0 %v2720_v40  ;;  %v10543_v40 = vld [vmem:[#allocation11 + $0x22c] ss:$12 sps:$4 sm:$0xff]  }
 0x685   : > { %v2608_v41 = vpop.xlane.xlu0 %2607 }
 0x686   : > { %v2609_v42 = vsub.f32 %v2601_v17, %v2608_v41  ;;  %v10549_v41 = vld [vmem:[#allocation11 + $0x214] ss:$12 sps:$4 sm:$0xff]  }
 0x688   : > { %v2610_v45 = vmul.f32 1.442695, %v2609_v42  ;;  %v10526_v42 = vld [vmem:[#allocation11 + $0x78] ss:$12 sps:$4 sm:$0xff]  }
 0x689   : > { %v2827_v34 = vpop.xlane.xlu0 %2826 }
 0x68a   : > { %v2828_v44 = vsub.f32 %v2820_v21, %v2827_v34  ;;  %v10531_v34 = vld [vmem:[#allocation11 + $0x64] ss:$12 sps:$4 sm:$0xff]  }
 0x68c   : > { %v2829_v46 = vmul.f32 1.442695, %v2828_v44  ;;  %v10547_v44 = vld [vmem:[#allocation11 + $0x210] ss:$12 sps:$4 sm:$0xff]  }
 0x68d   : > { %v2935_v47 = vpop.xlane.xlu0 %2934 }
 0x68e   : > { %11440 = vpow2.f32 %v2829_v46  ;;  %v2936_v26 = vsub.f32 %v2928_v28, %v2935_v47  ;;  %v10529_v46 = vld [vmem:[#allocation11 + $0x60] ss:$12 sps:$4 sm:$0xff]  }
 0x68f   : > { %11442 = vpow2.f32 %v2610_v45  ;;  %v10555_v45 = vld [vmem:[#allocation11 + $0x1fc] ss:$12 sps:$4 sm:$0xff]   ;;  %v10534_v47 = vld [vmem:[#allocation11 + $0x4c] ss:$12 sps:$4 sm:$0xff]  }
 0x690   : > { %v2937_v48 = vmul.f32 1.442695, %v2936_v26  ;;  %v10553_v26 = vld [vmem:[#allocation11 + $0x1f8] ss:$12 sps:$4 sm:$0xff]  }
 0x691   : > { %v3046_v50 = vpop.xlane.xlu0 %3045 }
 0x692   : > { %11444 = vpow2.f32 %v2937_v48  ;;  %v3047_v51 = vsub.f32 %v3039_v31, %v3046_v50  ;;  %v10522_v31 = vld [vmem:[#allocation11 + $0xac] ss:$12 sps:$4 sm:$0xff]   ;;  %v10561_v48 = vld [vmem:[#allocation11 + $0x1e4] ss:$12 sps:$4 sm:$0xff]   ;;  %v10532_v50 = vld [vmem:[#allocation11 + $0x48] ss:$12 sps:$4 sm:$0xff]  }
 0x693   : > { %3624 = vmatprep.subr.bf16.mxu0 %v10522_v31  ;;  %v10586_v31 = vld [vmem:[#allocation11 + $0xd8] ss:$12 sps:$4 sm:$0xff]  }
 0x694   : > { %v3048_v49 = vmul.f32 1.442695, %v3047_v51  ;;  %3625 = vmatpush1.bf16.msra.mxu0 %v10520_v33  ;;  %v10537_v51 = vld [vmem:[#allocation11 + $0x34] ss:$12 sps:$4 sm:$0xff]  }
 0x695   : > { %v2722_v0 = vpop.xlane.xlu0 %2721  ;;  %3626 = vmatprep.subr.bf16.mxu0 %v10525_v36 }
 0x696   : > { %11446 = vpow2.f32 %v3048_v49  ;;  %v10559_v49 = vld [vmem:[#allocation11 + $0x1e0] ss:$12 sps:$4 sm:$0xff]  }
 0x698   : > { %3627 = vmatpush1.bf16.msra.mxu0 %v10523_v37  ;;  %v10591_v37 = vld [vmem:[#allocation11 + $0xc0] ss:$12 sps:$4 sm:$0xff]  }
 0x699   : > { %3628 = vmatprep.subr.bf16.mxu0 %v10528_v38  ;;  %v10593_v38 = vld [vmem:[#allocation11 + $0xc4] ss:$12 sps:$4 sm:$0xff]  }
 0x69b   : > { %v11441_v52 = vpop.eup %11440 }
 0x69c   : > { %v2831_v53 = vsel %vm2493_vm3, %v11441_v52, 0.0  ;;  %v11443_v54 = vpop.eup %11442  ;;  %3629 = vmatpush1.bf16.msra.mxu0 %v10526_v42 }
 0x69d   : > { %2832 = vadd.xlane.f32.xlu1 %v2831_v53  ;;  %v2612_v55 = vsel %vm2493_vm3, %v11443_v54, 0.0  ;;  %3630 = vmatprep.subr.bf16.mxu0 %v10531_v34  ;;  %v10535_v53 = vld [vmem:[#allocation11 + $0x30] ss:$12 sps:$4 sm:$0xff]  }
 0x69f   : > { %v11445_v43 = vpop.eup %11444 }
 0x6a0   : > { %v2939_v56 = vsel %vm2493_vm3, %v11445_v43, 0.0  ;;  %3631 = vmatpush1.bf16.msra.mxu0 %v10529_v46 }
 0x6a1   : > { %2613 = vadd.xlane.f32.xlu1 %v2612_v55  ;;  %2940 = vadd.xlane.f32.xlu0 %v2939_v56  ;;  %v10573_v55 = vld [vmem:[#allocation11 + $0x1b4] ss:$12 sps:$4 sm:$0xff]   ;;  %v10538_v56 = vld [vmem:[#allocation11 + $0x18] ss:$12 sps:$4 sm:$0xff]  }
 0x6a2   : > { %3632 = vmatprep.subr.bf16.mxu0 %v10534_v47 }
 0x6a3   : > { %v11447_v57 = vpop.eup %11446 }
 0x6a4   : > { %v3050_v59 = vsel %vm2493_vm3, %v11447_v57, 0.0  ;;  %3633 = vmatpush1.bf16.msra.mxu0 %v10532_v50  ;;  %v10590_v50 = vld [vmem:[#allocation11 + $0xb0] ss:$12 sps:$4 sm:$0xff]  }
 0x6a5   : > { %3051 = vadd.xlane.f32.xlu0 %v3050_v59  ;;  %3634 = vmatprep.subr.bf16.mxu0 %v10537_v51  ;;  %v10571_v59 = vld [vmem:[#allocation11 + $0x1b0] ss:$12 sps:$4 sm:$0xff]  }
 0x6a8   : > { %3635 = vmatpush1.bf16.msra.mxu0 %v10535_v53 }
 0x6b2   : > { %2619 = vrot.lane.b32.xlu1 %v12320_v12, %s11915_s2 }
 0x6b6   : > { %3057 = vrot.lane.b32.xlu1 %v2444_v60, %s11915_s2  ;;  %v10579_v60 = vld [vmem:[#allocation11 + $0x19c] ss:$12 sps:$4 sm:$0xff]  }
 0x6bb   : > { %2838 = vrot.lane.b32.xlu0 %v2443_v61, %s11915_s2  ;;  %v10544_v61 = vld [vmem:[#allocation11] ss:$12 sps:$4 sm:$0xff]  }
 0x726   : > { %v2833_v62 = vpop.xlane.xlu1 %2832 }
 0x72a   : > { %v2614_v30 = vpop.xlane.xlu1 %2613  ;;  %v2941_v12 = vpop.xlane.xlu0 %2940 }
 0x72b   : > { %11448 = vrcp.f32 %v2614_v30  ;;  %v10577_v30 = vld [vmem:[#allocation11 + $0x198] ss:$12 sps:$4 sm:$0xff]  }
 0x72c   : > { %11450 = vrcp.f32 %v2722_v0  ;;  %v10585_v0 = vld [vmem:[#allocation11 + $0x184] ss:$12 sps:$4 sm:$0xff]  }
 0x72d   : > { %11452 = vrcp.f32 %v2833_v62  ;;  %v10552_v62 = vld [vmem:[#allocation11 + $0x16c] ss:$12 sps:$4 sm:$0xff]  }
 0x72e   : > { %v2620_v1 = vpop.permute.xlu1 %2619  ;;  %v3052_v13 = vpop.xlane.xlu0 %3051  ;;  %11454 = vrcp.f32 %v2941_v12  ;;  %v10583_v12 = vld [vmem:[#allocation11 + $0x180] ss:$12 sps:$4 sm:$0xff]  }
 0x72f   : > { %v2625_v2 = vsel %vm2509_vm2, %v2620_v1, 0  ;;  %11456 = vrcp.f32 %v3052_v13  ;;  %v10550_v1 = vld [vmem:[#allocation11 + $0x168] ss:$12 sps:$4 sm:$0xff]   ;;  %v10568_v13 = vld [vmem:[#allocation11 + $0x120] ss:$12 sps:$4 sm:$0xff]  }
 0x730   : > { %9954 = vmatpush3.bf16.msra.mxu1 %v2625_v2  ;;  %v10558_v2 = vld [vmem:[#allocation11 + $0x154] ss:$12 sps:$4 sm:$0xff]  }
 0x731   : > { %9965 = vmatprep.subr.bf16.mxu1 %v11913_v18 }
 0x732   : > { %v2839_v14 = vpop.permute.xlu0 %2838  ;;  %v3058_v24 = vpop.permute.xlu1 %3057 }
 0x733   : > { %v2844_v17 = vsel %vm2509_vm2, %v2839_v14, 0  ;;  %v3063_v28 = vsel %vm2509_vm2, %v3058_v24, 0  ;;  %v10582_v14 = vld [vmem:[#allocation11 + $0xf4] ss:$12 sps:$4 sm:$0xff]  }
 0x738   : > { %v11449_v22 = vpop.eup %11448 }
 0x739   : > { %v2616_v3 = vmul.f32 %v11449_v22, %v11443_v54  ;;  %v11451_v5 = vpop.eup %11450  ;;  %v10540_v54 = vld [vmem:[#allocation11 + $0x1c] ss:$12 sps:$4 sm:$0xff]  }
 0x73a   : > { %v2724_v11 = vmul.f32 %v11451_v5, %v11439_v39  ;;  %v11453_v16 = vpop.eup %11452  ;;  %v10541_v39 = vld [vmem:[#allocation11 + $0x228] ss:$12 sps:$4 sm:$0xff]   ;;  %3636 = vmatprep.subr.bf16.mxu0 %v10540_v54  ;;  %v10556_v22 = vld [vmem:[#allocation11 + $0x150] ss:$12 sps:$4 sm:$0xff]   ;;  %v10595_v54 = vld [vmem:[#allocation11 + $0x98] ss:$12 sps:$4 sm:$0xff]  }
 0x73b   : > { %v2617_v4 = vpack.c.bf16 %v2616_v3, %v2616_v3  ;;  %v2835_v19 = vmul.f32 %v11453_v16, %v11441_v52  ;;  %v11455_v21 = vpop.eup %11454  ;;  %v10567_v52 = vld [vmem:[#allocation11 + $0x1cc] ss:$12 sps:$4 sm:$0xff]   ;;  %3637 = vmatpush1.bf16.msra.mxu0 %v10538_v56  ;;  %v10564_v3 = vld [vmem:[#allocation11 + $0x13c] ss:$12 sps:$4 sm:$0xff]   ;;  %v10570_v5 = vld [vmem:[#allocation11 + $0x124] ss:$12 sps:$4 sm:$0xff]  }
 0x73c   : > { %v2725_v15 = vpack.c.bf16 %v2724_v11, %v2724_v11  ;;  %v2943_v23 = vmul.f32 %v11455_v21, %v11445_v43  ;;  %v11457_v27 = vpop.eup %11456  ;;  %v10565_v43 = vld [vmem:[#allocation11 + $0x1c8] ss:$12 sps:$4 sm:$0xff]  }
 0x73d   : > { %9956 = vmatmul.mubr.msk.bf16.vlgmr.msra.gmra.mxu1 %vm2493_vm3, %v2617_v4  ;;  %v2836_v20 = vpack.c.bf16 %v2835_v19, %v2835_v19  ;;  %v3054_v29 = vmul.f32 %v11457_v27, %v11447_v57  ;;  %v10546_v57 = vld [vmem:[#allocation11 + $0x4] ss:$12 sps:$4 sm:$0xff]   ;;  %v10574_v11 = vld [vmem:[#allocation11 + $0x108] ss:$12 sps:$4 sm:$0xff]  }
 0x73e   : > { %9966 = vmatpush3.bf16.msra.mxu1 %v2730_v7  ;;  %9967 = vmatprep.mubr.msk.bf16.mxu1 %vm11914_vm0, %v11913_v18  ;;  %v2944_v25 = vpack.c.bf16 %v2943_v23, %v2943_v23  ;;  %v10562_v4 = vld [vmem:[#allocation11 + $0x138] ss:$12 sps:$4 sm:$0xff]  }
 0x73f   : > { %9977 = vmatprep.subr.bf16.mxu1 %v11913_v18  ;;  %v3055_v32 = vpack.c.bf16 %v3054_v29, %v3054_v29  ;;  %3638 = vmatprep.subr.bf16.mxu0 %v10546_v57  ;;  %v10576_v7 = vld [vmem:[#allocation11 + $0x10c] ss:$12 sps:$4 sm:$0xff]   ;;  %v10588_v29 = vld [vmem:[#allocation11 + $0xdc] ss:$12 sps:$4 sm:$0xff]   ;;  %v2553_v57 = vpack.c.bf16 %v12364_v63, %v12364_v63 }
 0x740   : > { %3639 = vmatpush1.bf16.msra.mxu0 %v10544_v61  ;;  %v10603_v63 = vld [vmem:[#allocation11 + $0x50] ss:$12 sps:$4 sm:$0xff]  }
 0x741   : > { %3640 = vmatprep.subr.bf16.mxu0 %v10552_v62  ;;  %v10599_v62 = vld [vmem:[#allocation11 + $0x128] ss:$12 sps:$4 sm:$0xff]  }
 0x744   : > { %3641 = vmatpush2.bf16.msra.mxu0 %v10550_v1  ;;  %v10601_v1 = vld [vmem:[#allocation11 + $0x218] ss:$12 sps:$4 sm:$0xff]  }
 0x745   : > { %9968 = vmatmul.mubr.msk.bf16.vlgmr.msra.gmra.mxu1 %vm2493_vm3, %v2725_v15  ;;  %3642 = vmatprep.subr.bf16.mxu0 %v10558_v2  ;;  %v10580_v15 = vld [vmem:[#allocation11 + $0xf0] ss:$12 sps:$4 sm:$0xff]  }
 0x746   : > { %9978 = vmatpush3.bf16.msra.mxu1 %v2844_v17  ;;  %9979 = vmatprep.mubr.msk.bf16.mxu1 %vm11914_vm0, %v11913_v18  ;;  %v10602_v2 = vld [vmem:[#allocation11 + $0x110] ss:$12 sps:$4 sm:$0xff]  }
 0x747   : > { %9989 = vmatprep.subr.bf16.mxu1 %v11913_v18 }
 0x748   : > { %3643 = vmatpush2.bf16.msra.mxu0 %v10556_v22  ;;  %v10605_v22 = vld [vmem:[#allocation11 + $0xf8] ss:$12 sps:$4 sm:$0xff]  }
 0x749   : > { %3644 = vmatprep.subr.bf16.mxu0 %v10564_v3  ;;  %v10606_v3 = vld [vmem:[#allocation11 + $0x38] ss:$12 sps:$4 sm:$0xff]  }
 0x74c   : > { %3645 = vmatpush2.bf16.msra.mxu0 %v10562_v4  ;;  %v10607_v4 = vld [vmem:[#allocation11 + $0x1e8] ss:$12 sps:$4 sm:$0xff]  }
 0x74d   : > { %9980 = vmatmul.mubr.msk.bf16.vlgmr.msra.gmra.mxu1 %vm2493_vm3, %v2836_v20  ;;  %3646 = vmatprep.subr.bf16.mxu0 %v10570_v5  ;;  %v10608_v5 = vld [vmem:[#allocation11 + $0xe0] ss:$12 sps:$4 sm:$0xff]  }
 0x74e   : > { %9990 = vmatpush3.bf16.msra.mxu1 %v2949_v35  ;;  %9991 = vmatprep.mubr.msk.bf16.mxu1 %vm11914_vm0, %v11913_v18 }
 0x74f   : > { %10001 = vmatprep.subr.bf16.mxu1 %v11913_v18 }
 0x750   : > { %3647 = vmatpush2.bf16.msra.mxu0 %v10568_v13  ;;  %v10609_v13 = vld [vmem:[#allocation11 + $0x20] ss:$12 sps:$4 sm:$0xff]  }
 0x751   : > { %3648 = vmatprep.subr.bf16.mxu0 %v10576_v7  ;;  %v10610_v7 = vld [vmem:[#allocation11 + $0x1d0] ss:$12 sps:$4 sm:$0xff]  }
 0x754   : > { %3649 = vmatpush2.bf16.msra.mxu0 %v10574_v11  ;;  %v10611_v11 = vld [vmem:[#allocation11 + $0xc8] ss:$12 sps:$4 sm:$0xff]  }
 0x755   : > { %9992 = vmatmul.mubr.msk.bf16.vlgmr.msra.gmra.mxu1 %vm2493_vm3, %v2944_v25  ;;  %3650 = vmatprep.subr.bf16.mxu0 %v10582_v14  ;;  %v10612_v14 = vld [vmem:[#allocation11 + $0x8] ss:$12 sps:$4 sm:$0xff]  }
 0x756   : > { %10002 = vmatpush3.bf16.msra.mxu1 %v3063_v28  ;;  %10003 = vmatprep.mubr.msk.bf16.mxu1 %vm11914_vm0, %v11913_v18 }
 0x757   : > { %3665 = vmatprep.subr.bf16.mxu1 %v10543_v40 }
 0x758   : > { %3651 = vmatpush2.bf16.msra.mxu0 %v10580_v15  ;;  %v10613_v15 = vld [vmem:[#allocation11 + $0x1b8] ss:$12 sps:$4 sm:$0xff]  }
 0x759   : > { %3652 = vmatprep.subr.bf16.mxu0 %v10588_v29 }
 0x75c   : > { %3653 = vmatpush2.bf16.msra.mxu0 %v10586_v31 }
 0x75d   : > { %10004 = vmatmul.mubr.msk.bf16.vlgmr.msra.gmra.mxu1 %vm2493_vm3, %v3055_v32  ;;  %v10589_v32 = vld [vmem:[#allocation11 + $0x170] ss:$12 sps:$4 sm:$0xff]   ;;  %3654 = vmatprep.subr.bf16.mxu0 %v10593_v38 }
 0x75e   : > { %3697 = vmatprep.mubr.bf16.mxu1 %v11912_v58  ;;  %3666 = vmatpush1.bf16.msra.mxu1 %v10541_v39 }
 0x75f   : > { %3667 = vmatprep.subr.bf16.mxu1 %v10549_v41 }
 0x760   : > { %3655 = vmatpush2.bf16.msra.mxu0 %v10591_v37 }
 0x761   : > { %10007 = vmatprep.subr.bf16.mxu0 %v11913_v18 }
 0x762   : > { %3668 = vmatpush1.bf16.msra.mxu1 %v10547_v44 }
 0x763   : > { %3669 = vmatprep.subr.bf16.mxu1 %v10555_v45 }
 0x766   : > { %3670 = vmatpush1.bf16.msra.mxu1 %v10553_v26 }
 0x767   : > { %3671 = vmatprep.subr.bf16.mxu1 %v10561_v48 }
 0x76a   : > { %3672 = vmatpush1.bf16.msra.mxu1 %v10559_v49  ;;  %v10594_v49 = vld [vmem:[#allocation11 + $0x158] ss:$12 sps:$4 sm:$0xff]  }
 0x76b   : > { %3673 = vmatprep.subr.bf16.mxu1 %v10567_v52 }
 0x76e   : > { %3674 = vmatpush1.bf16.msra.mxu1 %v10565_v43 }
 0x76f   : > { %3675 = vmatprep.subr.bf16.mxu1 %v10573_v55  ;;  %v10596_v55 = vld [vmem:[#allocation11 + $0x140] ss:$12 sps:$4 sm:$0xff]  }
 0x772   : > { %3676 = vmatpush1.bf16.msra.mxu1 %v10571_v59  ;;  %v10597_v59 = vld [vmem:[#allocation11 + $0x80] ss:$12 sps:$4 sm:$0xff]  }
 0x773   : > { %3677 = vmatprep.subr.bf16.mxu1 %v10579_v60  ;;  %v10598_v60 = vld [vmem:[#allocation11 + $0x230] ss:$12 sps:$4 sm:$0xff]  }
 0x776   : > { %3678 = vmatpush1.bf16.msra.mxu1 %v10577_v30 }
 0x777   : > { %3679 = vmatprep.subr.bf16.mxu1 %v10585_v0  ;;  %v10600_v0 = vld [vmem:[#allocation11 + $0x68] ss:$12 sps:$4 sm:$0xff]  }
 0x77a   : > { %3680 = vmatpush1.bf16.msra.mxu1 %v10583_v12  ;;  %v10604_v12 = vld [vmem:[#allocation11 + $0x200] ss:$12 sps:$4 sm:$0xff]  }
 0x77b   : > { %9752 = vmatprep.subr.bf16.mxu1 %v10589_v32 }
 0x7fd   : > { %v2661_v16 = vpop.f32.mrf.mxu1 }
 0x7fe   : > { %v2667_v26 = vpack.c.bf16 %v2661_v16, %v2661_v16  ;;  %v10614_v16 = vld [vmem:[#allocation11 + $0x1a0] ss:$12 sps:$4 sm:$0xff]  }
 0x7ff   : > { %v9957_v17 = vpop.f32.mrf.mxu1 }
 0x800   : > { %v10615_v17 = vld [vmem:[#allocation11 + $0x188] ss:$12 sps:$4 sm:$0xff]  }
 0x801   : > { %v2664_v19 = vpop.f32.mrf.mxu1 }
 0x803   : > { %v9958_v20 = vpop.f32.mrf.mxu1 }
 0x805   : > { %v2766_v21 = vpop.f32.mrf.mxu1 }
 0x806   : > { %v2772_v53 = vpack.c.bf16 %v2766_v21, %v2766_v21 }
 0x807   : > { %v9969_v35 = vpop.f32.mrf.mxu1 }
 0x809   : > { %v2769_v23 = vpop.f32.mrf.mxu1 }
 0x80b   : > { %v9970_v24 = vpop.f32.mrf.mxu1 }
 0x80d   : > { %v2880_v25 = vpop.f32.mrf.mxu1 }
 0x80e   : > { %v2886_v46 = vpack.c.bf16 %v2880_v25, %v2880_v25 }
 0x80f   : > { %v9981_v27 = vpop.f32.mrf.mxu1 }
 0x811   : > { %v2883_v28 = vpop.f32.mrf.mxu1 }
 0x812   : > { %v3223_v28 = vld [vmem:[#allocation13] sm:$0x7] }
 0x813   : > { %v9982_v33 = vpop.f32.mrf.mxu1  ;;  %v3232_v29 = vrot.slane %v3223_v28, %v12243_v8 }
 0x815   : > { %v2985_v36 = vpop.f32.mrf.mxu1 }
 0x816   : > { %v2991_v48 = vpack.c.bf16 %v2985_v36, %v2985_v36 }
 0x817   : > { %v9993_v39 = vpop.f32.mrf.mxu1 }
 0x818   : > { %v3236_v39 = vrot.slane %v3223_v28, %v12246_v9 }
 0x819   : > { %v2988_v40 = vpop.f32.mrf.mxu1 }
 0x81b   : > { %v9994_v41 = vpop.f32.mrf.mxu1 }
 0x81d   : > { %v3099_v42 = vpop.f32.mrf.mxu1 }
 0x81e   : > { %v3105_v34 = vpack.c.bf16 %v3099_v42, %v3099_v42 }
 0x81f   : > { %v10005_v44 = vpop.f32.mrf.mxu1 }
 0x820   : > { %3113 = vrot.lane.b32.xlu1 %v3105_v34, %s11915_s2  ;;  %v11460_v34 = vld [vmem:[%s12194_s8 + $0x8] sm:$0xff] }
 0x821   : > { %v3102_v45 = vpop.f32.mrf.mxu1 }
 0x823   : > { %v10006_v47 = vpop.f32.mrf.mxu1 }
 0x824   : > { %3110 = vrot.lane.b32.xlu1 %v2886_v46, %s11915_s2  ;;  %v11461_v47 = vld [vmem:[%s12194_s8] sm:$0xff] }
 0x828   : > { %3107 = vrot.lane.b32.xlu1 %v2667_v26, %s11915_s2 }
 0x892   : > { %v3114_v51 = vpop.permute.xlu1 %3113 }
 0x893   : > { %v12415_v52 = vsel %vm2446_vm1, %v2991_v48, %v3114_v51  ;;  %v11462_v51 = vld [vmem:[%s12194_s8 + $0x10] sm:$0xff] }
 0x894   : > { %3698 = vmatmul.mubr.bf16.vlgmr.msra.gmra.mxu1 %v12415_v52 }
 0x895   : > { %9753 = vmatpush3.bf16.msra.mxu1 %v10590_v50 }
 0x896   : > { %v3111_v43 = vpop.permute.xlu1 %3110  ;;  %9754 = vmatprep.subr.bf16.mxu1 %v10594_v49 }
 0x897   : > { %v3121_v56 = vsel %vm2446_vm1, %v2772_v53, %v3111_v43 }
 0x898   : > { %3656 = vmatprep.mubr.bf16.mxu0 %v3121_v56  ;;  %3738 = vmatprep.mubr.bf16.mxu1 %v3121_v56  ;;  %v10618_v56 = vld [vmem:[#allocation17 + $0x2a4] ss:$48 sps:$4 sm:$0xff]  }
 0x899   : > { %9755 = vmatpush3.bf16.msra.mxu1 %v10595_v54 }
 0x89a   : > { %v3108_v61 = vpop.permute.xlu1 %3107  ;;  %9756 = vmatprep.subr.bf16.mxu1 %v10596_v55  ;;  %v10616_v55 = vld [vmem:[#allocation17 + $0x2a0] ss:$48 sps:$4 sm:$0xff]  }
 0x89b   : > { %v3117_v30 = vsel %vm2446_vm1, %v2553_v57, %v3108_v61  ;;  %v10621_v57 = vld [vmem:[#allocation17 + $0x244] ss:$48 sps:$4 sm:$0xff]   ;;  %v10640_v61 = vld [vmem:[#allocation17 + $0x8a0] ss:$48 sps:$4 sm:$0xff]  }
 0x89c   : > { %3657 = vmatmul.mubr.bf16.vlgmr.msra.gmra.mxu0 %v3117_v30 }
 0x89d   : > { %9757 = vmatpush3.bf16.msra.mxu1 %v10597_v59  ;;  %10008 = vmatpush3.bf16.msra.mxu0 %v10598_v60  ;;  %v10619_v59 = vld [vmem:[#allocation17 + $0x240] ss:$48 sps:$4 sm:$0xff]   ;;  %v10624_v60 = vld [vmem:[#allocation17 + $0x1e4] ss:$48 sps:$4 sm:$0xff]  }
 0x89e   : > { %9758 = vmatprep.subr.bf16.mxu1 %v10599_v62  ;;  %10009 = vmatprep.subr.bf16.mxu0 %v11913_v18  ;;  %v10642_v62 = vld [vmem:[#allocation17 + $0x8a4] ss:$48 sps:$4 sm:$0xff]  }
 0x89f   : > { %10023 = vmatprep.mubr.msk.bf16.mxu0 %vm11914_vm0, %v11913_v18 }
 0x8a1   : > { %9759 = vmatpush3.bf16.msra.mxu1 %v10600_v0  ;;  %10010 = vmatpush3.bf16.msra.mxu0 %v10601_v1  ;;  %v10648_v0 = vld [vmem:[#allocation17 + $0x844] ss:$48 sps:$4 sm:$0xff]  }
 0x8a2   : > { %9760 = vmatprep.subr.bf16.mxu1 %v10602_v2  ;;  %10011 = vmatprep.subr.bf16.mxu0 %v11913_v18  ;;  %v10627_v1 = vld [vmem:[#allocation17 + $0x184] ss:$48 sps:$4 sm:$0xff]   ;;  %v10646_v2 = vld [vmem:[#allocation17 + $0x840] ss:$48 sps:$4 sm:$0xff]  }
 0x8a5   : > { %9761 = vmatpush3.bf16.msra.mxu1 %v10603_v63  ;;  %10012 = vmatpush3.bf16.msra.mxu0 %v10604_v12  ;;  %v10625_v63 = vld [vmem:[#allocation17 + $0x180] ss:$48 sps:$4 sm:$0xff]   ;;  %v10630_v12 = vld [vmem:[#allocation17 + $0x124] ss:$48 sps:$4 sm:$0xff]  }
 0x8a6   : > { %9762 = vmatprep.subr.bf16.mxu1 %v10605_v22  ;;  %10013 = vmatprep.subr.bf16.mxu0 %v11913_v18  ;;  %v10628_v22 = vld [vmem:[#allocation17 + $0x120] ss:$48 sps:$4 sm:$0xff]  }
 0x8a9   : > { %9763 = vmatpush3.bf16.msra.mxu1 %v10606_v3  ;;  %10014 = vmatpush3.bf16.msra.mxu0 %v10607_v4  ;;  %v10633_v3 = vld [vmem:[#allocation17 + $0xc4] ss:$48 sps:$4 sm:$0xff]   ;;  %v10631_v4 = vld [vmem:[#allocation17 + $0xc0] ss:$48 sps:$4 sm:$0xff]  }
 0x8aa   : > { %9764 = vmatprep.subr.bf16.mxu1 %v10608_v5  ;;  %10015 = vmatprep.subr.bf16.mxu0 %v11913_v18  ;;  %v10636_v5 = vld [vmem:[#allocation17 + $0x64] ss:$48 sps:$4 sm:$0xff]  }
 0x8ad   : > { %9765 = vmatpush3.bf16.msra.mxu1 %v10609_v13  ;;  %10016 = vmatpush3.bf16.msra.mxu0 %v10610_v7  ;;  %v10634_v13 = vld [vmem:[#allocation17 + $0x60] ss:$48 sps:$4 sm:$0xff]   ;;  %v10639_v7 = vld [vmem:[#allocation17 + $0x4] ss:$48 sps:$4 sm:$0xff]  }
 0x8ae   : > { %9766 = vmatprep.subr.bf16.mxu1 %v10611_v11  ;;  %10017 = vmatprep.subr.bf16.mxu0 %v11913_v18  ;;  %v10637_v11 = vld [vmem:[#allocation17] ss:$48 sps:$4 sm:$0xff]  }
 0x8b1   : > { %9767 = vmatpush3.bf16.msra.mxu1 %v10612_v14  ;;  %10018 = vmatpush3.bf16.msra.mxu0 %v10613_v15  ;;  %v10645_v14 = vld [vmem:[#allocation17 + $0x5a4] ss:$48 sps:$4 sm:$0xff]   ;;  %v10643_v15 = vld [vmem:[#allocation17 + $0x5a0] ss:$48 sps:$4 sm:$0xff]  }
 0x8b2   : > { %10019 = vmatprep.subr.bf16.mxu0 %v11913_v18  ;;  %5645 = vmatprep.subr.bf16.mxu1 %v10618_v56  ;;  %v10685_v56 = vld [vmem:[#allocation17 + $0x300] ss:$48 sps:$4 sm:$0xff]  }
 0x8b4   : > { %3739 = vmatmul.mubr.bf16.vlgmr.msra.gmra.mxu1 %v3117_v30  ;;  %v10622_v30 = vld [vmem:[#allocation17 + $0x1e0] ss:$48 sps:$4 sm:$0xff]  }
 0x8b5   : > { %10020 = vmatpush3.bf16.msra.mxu0 %v10614_v16  ;;  %5646 = vmatpush1.bf16.msra.mxu1 %v10616_v55  ;;  %v10651_v16 = vld [vmem:[#allocation17 + $0x544] ss:$48 sps:$4 sm:$0xff]   ;;  %v10682_v55 = vld [vmem:[#allocation17 + $0x600] ss:$48 sps:$4 sm:$0xff]  }
 0x8b6   : > { %10021 = vmatprep.subr.bf16.mxu0 %v11913_v18  ;;  %v3228_v18 = vrot.slane %v3223_v28, %v12249_v10  ;;  %5647 = vmatprep.subr.bf16.mxu1 %v10621_v57  ;;  %v10690_v57 = vld [vmem:[#allocation17 + $0x2ac] ss:$48 sps:$4 sm:$0xff]  }
 0x8b9   : > { %10022 = vmatpush3.bf16.msra.mxu0 %v10615_v17  ;;  %5648 = vmatpush1.bf16.msra.mxu1 %v10619_v59  ;;  %v10649_v17 = vld [vmem:[#allocation17 + $0x540] ss:$48 sps:$4 sm:$0xff]   ;;  %v10693_v59 = vld [vmem:[#allocation17 + $0x8ac] ss:$48 sps:$4 sm:$0xff]  }
 0x8ba   : > { %5686 = vmatprep.subr.bf16.mxu0 %v10642_v62  ;;  %5649 = vmatprep.subr.bf16.mxu1 %v10624_v60 }
 0x8bc   : > { %10024 = vmatmul.mubr.bf16.vlgmr.msra.gmra.mxu0 %v12415_v52 }
 0x8bd   : > { %5718 = vmatprep.mubr.bf16.mxu0 %v11912_v58  ;;  %5687 = vmatpush1.bf16.msra.mxu0 %v10640_v61 }
 0x8be   : > { %5688 = vmatprep.subr.bf16.mxu0 %v10648_v0  ;;  %5650 = vmatpush1.bf16.msra.mxu1 %v10622_v30  ;;  %v3789_v30 = vld [vmem:[#allocation14] sm:$0x7]  ;;  %v3790_v0 = vld [vmem:[#allocation16] sm:$0x7] }
 0x8bf   : > { %5651 = vmatprep.subr.bf16.mxu1 %v10627_v1  ;;  %v3820_v1 = vrot.slane %v3789_v30, %v12243_v8 }
 0x8c1   : > { %5689 = vmatpush1.bf16.msra.mxu0 %v10646_v2  ;;  %v3824_v2 = vrot.slane %v3789_v30, %v12246_v9 }
 0x8c2   : > { %5652 = vmatpush1.bf16.msra.mxu1 %v10625_v63  ;;  %v3816_v63 = vrot.slane %v3789_v30, %v12249_v10  ;;  %v10747_v30 = vld [vmem:[#allocation17 + $0x254] ss:$48 sps:$4 sm:$0xff]  }
 0x8c3   : > { %5653 = vmatprep.subr.bf16.mxu1 %v10630_v12 }
 0x8c6   : > { %5654 = vmatpush1.bf16.msra.mxu1 %v10628_v22  ;;  %v3839_v22 = vrot.slane %v3790_v0, %v12243_v8 }
 0x8c7   : > { %5655 = vmatprep.subr.bf16.mxu1 %v10633_v3  ;;  %v3843_v3 = vrot.slane %v3790_v0, %v12246_v9 }
 0x8ca   : > { %5656 = vmatpush1.bf16.msra.mxu1 %v10631_v4 }
 0x8cb   : > { %5657 = vmatprep.subr.bf16.mxu1 %v10636_v5 }
 0x8ce   : > { %5658 = vmatpush1.bf16.msra.mxu1 %v10634_v13 }
 0x8cf   : > { %5659 = vmatprep.subr.bf16.mxu1 %v10639_v7  ;;  %v3835_v7 = vrot.slane %v3790_v0, %v12249_v10  ;;  %v10742_v0 = vld [vmem:[#allocation17 + $0x548] ss:$48 sps:$4 sm:$0xff]  }
 0x8d2   : > { %5660 = vmatpush1.bf16.msra.mxu1 %v10637_v11 }
 0x8d3   : > { %5661 = vmatprep.subr.bf16.mxu1 %v10645_v14 }
 0x8d6   : > { %5662 = vmatpush2.bf16.msra.mxu1 %v10643_v15 }
 0x8d7   : > { %5663 = vmatprep.subr.bf16.mxu1 %v10651_v16 }
 0x8da   : > { %5664 = vmatpush2.bf16.msra.mxu1 %v10649_v17 }
 0x954   : > { %v3699_v19 = vpop.f32.mrf.mxu1 }
 0x956   : > { %v3701_v20 = vpop.f32.mrf.mxu1 }
 0x958   : > { %v3703_v21 = vpop.f32.mrf.mxu1 }
 0x95a   : > { %v3704_v35 = vpop.f32.mrf.mxu1 }
 0x95c   : > { %v3658_v23 = vpop.f32.mrf.mxu0 }
 0x95d   : > { %v3659_v31 = vadd.f32 %v3658_v23, %v3228_v18  ;;  %v10654_v18 = vld [vmem:[#allocation17 + $0x7e4] ss:$48 sps:$4 sm:$0xff]  }
 0x95e   : > { %v3660_v24 = vpop.f32.mrf.mxu0  ;;  %5690 = vmatprep.subr.bf16.mxu0 %v10654_v18  ;;  %v10702_v18 = vld [vmem:[#allocation17 + $0x1ec] ss:$48 sps:$4 sm:$0xff]  }
 0x95f   : > { %v3661_v32 = vadd.f32 %v3660_v24, %v3232_v29  ;;  %v3700_v41 = vadd.f32 %v3699_v19, %v3659_v31  ;;  %v10655_v31 = vld [vmem:[#allocation17 + $0x4e0] ss:$48 sps:$4 sm:$0xff]  }
 0x960   : > { %v3662_v25 = vpop.f32.mrf.mxu0 }
 0x961   : > { %v3702_v37 = vadd.f32 %v3701_v20, %v3661_v32  ;;  %v12440_v26 = vadd.f32 %v11461_v47, %v3700_v41  ;;  %v10652_v32 = vld [vmem:[#allocation17 + $0x7e0] ss:$48 sps:$4 sm:$0xff]  }
 0x962   : > { %v3663_v27 = vpop.f32.mrf.mxu0  ;;  %5691 = vmatpush1.bf16.msra.mxu0 %v10652_v32  ;;  %v10664_v41 = vld [vmem:[#allocation17 + $0x720] ss:$48 sps:$4 sm:$0xff]   ;;  %v10705_v32 = vld [vmem:[#allocation17 + $0x7ec] ss:$48 sps:$4 sm:$0xff]  }
 0x963   : > { %v12437_v44 = vadd.f32 %v11460_v34, %v3702_v37  ;;  %v10658_v37 = vld [vmem:[#allocation17 + $0x780] ss:$48 sps:$4 sm:$0xff]  }
 0x964   : > { %v10667_v34 = vld [vmem:[#allocation17 + $0x420] ss:$48 sps:$4 sm:$0xff]  }
 0x965   : > { %v3791_v52 = vadd.f32 %v12437_v44, %v12440_v26  ;;  %v10670_v47 = vld [vmem:[#allocation17 + $0x6c0] ss:$48 sps:$4 sm:$0xff]  }
 0x974   : > { %v9768_v33 = vpop.f32.mrf.mxu1 }
 0x976   : > { %v9769_v36 = vpop.f32.mrf.mxu1 }
 0x977   : > { %v9770_v38 = vadd.f32 %v9769_v36, %v9768_v33  ;;  %v10657_v33 = vld [vmem:[#allocation17 + $0x4e4] ss:$48 sps:$4 sm:$0xff]  }
 0x978   : > { %v9771_v40 = vpop.f32.mrf.mxu1  ;;  %5665 = vmatprep.subr.bf16.mxu1 %v10657_v33  ;;  %v10660_v36 = vld [vmem:[#allocation17 + $0x784] ss:$48 sps:$4 sm:$0xff]   ;;  %v10700_v33 = vld [vmem:[#allocation17 + $0x1e8] ss:$48 sps:$4 sm:$0xff]  }
 0x979   : > { %v3741_v45 = vadd.f32 %v9770_v38, %v3236_v39  ;;  %5666 = vmatpush2.bf16.msra.mxu1 %v10655_v31  ;;  %v10661_v38 = vld [vmem:[#allocation17 + $0x480] ss:$48 sps:$4 sm:$0xff]   ;;  %v10663_v39 = vld [vmem:[#allocation17 + $0x484] ss:$48 sps:$4 sm:$0xff]   ;;  %5692 = vmatprep.subr.bf16.mxu0 %v10660_v36  ;;  %v10703_v31 = vld [vmem:[#allocation17 + $0x7e8] ss:$48 sps:$4 sm:$0xff]  }
 0x97a   : > { %v9772_v42 = vpop.f32.mrf.mxu1  ;;  %v10666_v40 = vld [vmem:[#allocation17 + $0x724] ss:$48 sps:$4 sm:$0xff]   ;;  %5667 = vmatprep.subr.bf16.mxu1 %v10663_v39  ;;  %5693 = vmatpush1.bf16.msra.mxu0 %v10658_v37  ;;  %v10708_v36 = vld [vmem:[#allocation17 + $0x18c] ss:$48 sps:$4 sm:$0xff]   ;;  %v10709_v39 = vld [vmem:[#allocation17 + $0x788] ss:$48 sps:$4 sm:$0xff]  }
 0x97b   : > { %v10669_v42 = vld [vmem:[#allocation17 + $0x424] ss:$48 sps:$4 sm:$0xff]   ;;  %5694 = vmatprep.subr.bf16.mxu0 %v10666_v40  ;;  %v10711_v37 = vld [vmem:[#allocation17 + $0x78c] ss:$48 sps:$4 sm:$0xff]  }
 0x97c   : > { %v3780_v46 = vpop.f32.mrf.mxu0  ;;  %v10714_v40 = vld [vmem:[#allocation17 + $0x12c] ss:$48 sps:$4 sm:$0xff]  }
 0x97d   : > { %v3781_v48 = vadd.f32 %v3780_v46, %v3741_v45  ;;  %5668 = vmatpush2.bf16.msra.mxu1 %v10661_v38  ;;  %v10672_v45 = vld [vmem:[#allocation17 + $0x6c4] ss:$48 sps:$4 sm:$0xff]   ;;  %v10706_v38 = vld [vmem:[#allocation17 + $0x188] ss:$48 sps:$4 sm:$0xff]  }
 0x97e   : > { %v10025_v50 = vpop.f32.mrf.mxu0  ;;  %5669 = vmatprep.subr.bf16.mxu1 %v10669_v42  ;;  %v10675_v46 = vld [vmem:[#allocation17 + $0x3c4] ss:$48 sps:$4 sm:$0xff]   ;;  %5695 = vmatpush1.bf16.msra.mxu0 %v10664_v41  ;;  %v10717_v41 = vld [vmem:[#allocation17 + $0x72c] ss:$48 sps:$4 sm:$0xff]   ;;  %v10712_v42 = vld [vmem:[#allocation17 + $0x128] ss:$48 sps:$4 sm:$0xff]  }
 0x97f   : > { %v12443_v49 = vadd.f32 %v11462_v51, %v3781_v48  ;;  %5696 = vmatprep.subr.bf16.mxu0 %v10672_v45  ;;  %v10673_v48 = vld [vmem:[#allocation17 + $0x3c0] ss:$48 sps:$4 sm:$0xff]   ;;  %v10678_v50 = vld [vmem:[#allocation17 + $0x664] ss:$48 sps:$4 sm:$0xff]   ;;  %v10720_v45 = vld [vmem:[#allocation17 + $0xcc] ss:$48 sps:$4 sm:$0xff]  }
 0x980   : > { %v3783_v53 = vpop.f32.mrf.mxu0  ;;  %v10681_v51 = vld [vmem:[#allocation17 + $0x364] ss:$48 sps:$4 sm:$0xff]  }
 0x981   : > { %v3792_v54 = vadd.f32 %v3791_v52, %v12443_v49  ;;  %5670 = vmatpush2.bf16.msra.mxu1 %v10667_v34  ;;  %v10676_v52 = vld [vmem:[#allocation17 + $0x660] ss:$48 sps:$4 sm:$0xff]   ;;  %v10715_v34 = vld [vmem:[#allocation17 + $0x728] ss:$48 sps:$4 sm:$0xff]  }
 0x982   : > { %v10026_v43 = vpop.f32.mrf.mxu0  ;;  %5671 = vmatprep.subr.bf16.mxu1 %v10675_v46  ;;  %5697 = vmatpush1.bf16.msra.mxu0 %v10670_v47  ;;  %v10679_v53 = vld [vmem:[#allocation17 + $0x360] ss:$48 sps:$4 sm:$0xff]   ;;  %v10723_v46 = vld [vmem:[#allocation17 + $0x6cc] ss:$48 sps:$4 sm:$0xff]   ;;  %v10718_v47 = vld [vmem:[#allocation17 + $0xc8] ss:$48 sps:$4 sm:$0xff]  }
 0x983   : > { %3793 = vadd.xlane.f32.xlu0 %v3792_v54  ;;  %5698 = vmatprep.subr.bf16.mxu0 %v10678_v50  ;;  %v10684_v54 = vld [vmem:[#allocation17 + $0x604] ss:$48 sps:$4 sm:$0xff]   ;;  %v10726_v50 = vld [vmem:[#allocation17 + $0x6c] ss:$48 sps:$4 sm:$0xff]  }
 0x984   : > { %v10687_v43 = vld [vmem:[#allocation17 + $0x304] ss:$48 sps:$4 sm:$0xff]  }
 0x985   : > { %5672 = vmatpush2.bf16.msra.mxu1 %v10673_v48  ;;  %v10721_v48 = vld [vmem:[#allocation17 + $0x6c8] ss:$48 sps:$4 sm:$0xff]  }
 0x986   : > { %5673 = vmatprep.subr.bf16.mxu1 %v10681_v51  ;;  %5699 = vmatpush1.bf16.msra.mxu0 %v10676_v52  ;;  %v10729_v51 = vld [vmem:[#allocation17 + $0x66c] ss:$48 sps:$4 sm:$0xff]   ;;  %v10724_v52 = vld [vmem:[#allocation17 + $0x68] ss:$48 sps:$4 sm:$0xff]  }
 0x987   : > { %5700 = vmatprep.subr.bf16.mxu0 %v10684_v54  ;;  %v10732_v54 = vld [vmem:[#allocation17 + $0xc] ss:$48 sps:$4 sm:$0xff]  }
 0x989   : > { %5674 = vmatpush2.bf16.msra.mxu1 %v10679_v53  ;;  %v10727_v53 = vld [vmem:[#allocation17 + $0x668] ss:$48 sps:$4 sm:$0xff]  }
 0x98a   : > { %5675 = vmatprep.subr.bf16.mxu1 %v10687_v43  ;;  %5701 = vmatpush1.bf16.msra.mxu0 %v10682_v55  ;;  %v10735_v43 = vld [vmem:[#allocation17 + $0x60c] ss:$48 sps:$4 sm:$0xff]   ;;  %v10730_v55 = vld [vmem:[#allocation17 + $0x8] ss:$48 sps:$4 sm:$0xff]  }
 0x98b   : > { %5727 = vmatprep.subr.bf16.mxu0 %v10690_v57  ;;  %v10738_v57 = vld [vmem:[#allocation17 + $0x5ac] ss:$48 sps:$4 sm:$0xff]  }
 0x98d   : > { %5676 = vmatpush2.bf16.msra.mxu1 %v10685_v56  ;;  %v10733_v56 = vld [vmem:[#allocation17 + $0x608] ss:$48 sps:$4 sm:$0xff]  }
 0x98e   : > { %5768 = vmatprep.subr.bf16.mxu1 %v10693_v59  ;;  %v10741_v59 = vld [vmem:[#allocation17 + $0x2b4] ss:$48 sps:$4 sm:$0xff]  }
 0xa0c   : > { %v3794_v19 = vpop.xlane.xlu0 %3793 }
 0xa0d   : > { %v3795_v20 = vmul.f32 0.0026041667, %v3794_v19 }
 0xa0f   : > { %v12449_v21 = vsub.f32 %v12440_v26, %v3795_v20  ;;  %v12452_v35 = vsub.f32 %v12437_v44, %v3795_v20  ;;  %v12455_v23 = vsub.f32 %v12443_v49, %v3795_v20  ;;  %v10688_v20 = vld [vmem:[#allocation17 + $0x2a8] ss:$48 sps:$4 sm:$0xff]  }
 0xa11   : > { %v3799_v24 = vmul.f32 %v12449_v21, %v12449_v21  ;;  %v3800_v25 = vmul.f32 %v12452_v35, %v12452_v35  ;;  %v3801_v27 = vmul.f32 %v12455_v23, %v12455_v23 }
 0xa13   : > { %v3802_v28 = vadd.f32 %v3800_v25, %v3799_v24 }
 0xa15   : > { %v3803_v29 = vadd.f32 %v3802_v28, %v3801_v27  ;;  %v10691_v27 = vld [vmem:[#allocation17 + $0x8a8] ss:$48 sps:$4 sm:$0xff]  }
 0xa17   : > { %3804 = vadd.xlane.f32.xlu1 %v3803_v29  ;;  %v10697_v29 = vld [vmem:[#allocation17 + $0x848] ss:$48 sps:$4 sm:$0xff]  }
 0xaa0   : > { %v3805_v60 = vpop.xlane.xlu1 %3804 }
 0xaa1   : > { %v3806_v61 = vmul.f32 0.0026041667, %v3805_v60  ;;  %v10736_v60 = vld [vmem:[#allocation17 + $0x5a8] ss:$48 sps:$4 sm:$0xff]  }
 0xaa3   : > { %v3807_v62 = vadd.f32 1e-05, %v3806_v61  ;;  %v10739_v61 = vld [vmem:[#allocation17 + $0x2b0] ss:$48 sps:$4 sm:$0xff]  }
 0xaa5   : > { %11458 = vrsqrt.f32 %v3807_v62  ;;  %v10744_v62 = vld [vmem:[#allocation17 + $0x54c] ss:$48 sps:$4 sm:$0xff]  }
 0xab2   : > { %v11459_v12 = vpop.eup %11458 }
 0xab3   : > { %v3810_v4 = vmul.f32 %v11459_v12, %v12452_v35  ;;  %v3811_v5 = vmul.f32 %v11459_v12, %v12455_v23  ;;  %v3809_v13 = vmul.f32 %v11459_v12, %v12449_v21  ;;  %v10696_v35 = vld [vmem:[#allocation17 + $0x24c] ss:$48 sps:$4 sm:$0xff]   ;;  %v10694_v21 = vld [vmem:[#allocation17 + $0x248] ss:$48 sps:$4 sm:$0xff]  }
 0xab4   : > { %v10699_v23 = vld [vmem:[#allocation17 + $0x84c] ss:$48 sps:$4 sm:$0xff]   ;;  %v10748_v12 = vld [vmem:[#allocation17 + $0x4e8] ss:$48 sps:$4 sm:$0xff]  }
 0xab5   : > { %v3829_v11 = vmul.f32 %v3820_v1, %v3810_v4  ;;  %v3830_v14 = vmul.f32 %v3824_v2, %v3811_v5  ;;  %v3828_v15 = vmul.f32 %v3816_v63, %v3809_v13  ;;  %v10745_v1 = vld [vmem:[#allocation17 + $0x250] ss:$48 sps:$4 sm:$0xff]   ;;  %v10750_v2 = vld [vmem:[#allocation17 + $0x4ec] ss:$48 sps:$4 sm:$0xff]   ;;  %v10753_v63 = vld [vmem:[#allocation17 + $0x1f4] ss:$48 sps:$4 sm:$0xff]  }
 0xab6   : > { %v10759_v4 = vld [vmem:[#allocation17 + $0x194] ss:$48 sps:$4 sm:$0xff]   ;;  %v10754_v5 = vld [vmem:[#allocation17 + $0x488] ss:$48 sps:$4 sm:$0xff]   ;;  %v10757_v13 = vld [vmem:[#allocation17 + $0x190] ss:$48 sps:$4 sm:$0xff]  }
 0xab7   : > { %v3848_v16 = vadd.f32 %v3839_v22, %v3829_v11  ;;  %v3849_v17 = vadd.f32 %v3843_v3, %v3830_v14  ;;  %v3847_v19 = vadd.f32 %v3835_v7, %v3828_v15  ;;  %v10751_v22 = vld [vmem:[#allocation17 + $0x1f0] ss:$48 sps:$4 sm:$0xff]   ;;  %v10756_v3 = vld [vmem:[#allocation17 + $0x48c] ss:$48 sps:$4 sm:$0xff]   ;;  %v10765_v11 = vld [vmem:[#allocation17 + $0x134] ss:$48 sps:$4 sm:$0xff]  }
 0xab8   : > { %v10762_v7 = vld [vmem:[#allocation17 + $0x42c] ss:$48 sps:$4 sm:$0xff]   ;;  %v10760_v14 = vld [vmem:[#allocation17 + $0x428] ss:$48 sps:$4 sm:$0xff]   ;;  %v10763_v15 = vld [vmem:[#allocation17 + $0x130] ss:$48 sps:$4 sm:$0xff]  }
 0xab9   : > { %v12472_v24 = vpack.c.bf16 %v3848_v16, %v3848_v16  ;;  %v12474_v25 = vpack.c.bf16 %v3849_v17, %v3849_v17  ;;  %v12476_v28 = vpack.c.bf16 %v3847_v19, %v3847_v19  ;;  %v10768_v16 = vld [vmem:[#allocation17 + $0x3cc] ss:$48 sps:$4 sm:$0xff]   ;;  %v10771_v17 = vld [vmem:[#allocation17 + $0xd4] ss:$48 sps:$4 sm:$0xff]   ;;  %v10766_v19 = vld [vmem:[#allocation17 + $0x3c8] ss:$48 sps:$4 sm:$0xff]  }
 0xabb   : > { %5677 = vmatprep.mubr.bf16.mxu1 %v12472_v24  ;;  %5719 = vmatmul.mubr.bf16.vlgmr.msra.gmra.mxu0 %v12474_v25 }
 0xabc   : > { %5728 = vmatpush1.bf16.msra.mxu0 %v10688_v20  ;;  %5678 = vmatmul.mubr.bf16.vlgmr.msra.gmra.mxu1 %v12476_v28  ;;  %v10769_v20 = vld [vmem:[#allocation17 + $0xd0] ss:$48 sps:$4 sm:$0xff]  }
 0xabd   : > { %5759 = vmatprep.mubr.bf16.mxu0 %v12472_v24  ;;  %5769 = vmatpush1.bf16.msra.mxu1 %v10691_v27  ;;  %v10774_v27 = vld [vmem:[#allocation17 + $0x36c] ss:$48 sps:$4 sm:$0xff]  }
 0xabe   : > { %5729 = vmatprep.subr.bf16.mxu0 %v10696_v35  ;;  %5770 = vmatprep.subr.bf16.mxu1 %v10699_v23  ;;  %v10777_v35 = vld [vmem:[#allocation17 + $0x74] ss:$48 sps:$4 sm:$0xff]   ;;  %v10772_v23 = vld [vmem:[#allocation17 + $0x368] ss:$48 sps:$4 sm:$0xff]  }
 0xabf   : > { %5800 = vmatprep.mubr.bf16.mxu1 %v11912_v58 }
 0xac0   : > { %5730 = vmatpush1.bf16.msra.mxu0 %v10694_v21  ;;  %v10775_v21 = vld [vmem:[#allocation17 + $0x70] ss:$48 sps:$4 sm:$0xff]  }
 0xac1   : > { %5771 = vmatpush1.bf16.msra.mxu1 %v10697_v29  ;;  %5731 = vmatprep.subr.bf16.mxu0 %v10702_v18  ;;  %v10780_v29 = vld [vmem:[#allocation17 + $0x30c] ss:$48 sps:$4 sm:$0xff]   ;;  %v10783_v18 = vld [vmem:[#allocation17 + $0x14] ss:$48 sps:$4 sm:$0xff]  }
 0xac2   : > { %5772 = vmatprep.subr.bf16.mxu1 %v10705_v32  ;;  %v10778_v32 = vld [vmem:[#allocation17 + $0x308] ss:$48 sps:$4 sm:$0xff]  }
 0xac4   : > { %5732 = vmatpush1.bf16.msra.mxu0 %v10700_v33  ;;  %v10781_v33 = vld [vmem:[#allocation17 + $0x10] ss:$48 sps:$4 sm:$0xff]  }
 0xac5   : > { %5773 = vmatpush1.bf16.msra.mxu1 %v10703_v31  ;;  %5733 = vmatprep.subr.bf16.mxu0 %v10708_v36  ;;  %v10786_v31 = vld [vmem:[#allocation17 + $0x8b4] ss:$48 sps:$4 sm:$0xff]  }
 0xac6   : > { %5774 = vmatprep.subr.bf16.mxu1 %v10711_v37  ;;  %v10789_v36 = vld [vmem:[#allocation17 + $0x5b4] ss:$48 sps:$4 sm:$0xff]   ;;  %v10784_v37 = vld [vmem:[#allocation17 + $0x8b0] ss:$48 sps:$4 sm:$0xff]  }
 0xac8   : > { %5734 = vmatpush1.bf16.msra.mxu0 %v10706_v38  ;;  %v10787_v38 = vld [vmem:[#allocation17 + $0x5b0] ss:$48 sps:$4 sm:$0xff]  }
 0xac9   : > { %5775 = vmatpush1.bf16.msra.mxu1 %v10709_v39  ;;  %5735 = vmatprep.subr.bf16.mxu0 %v10714_v40  ;;  %v10792_v39 = vld [vmem:[#allocation17 + $0x854] ss:$48 sps:$4 sm:$0xff]  }
 0xaca   : > { %5776 = vmatprep.subr.bf16.mxu1 %v10717_v41  ;;  %v10795_v40 = vld [vmem:[#allocation17 + $0x554] ss:$48 sps:$4 sm:$0xff]   ;;  %v10790_v41 = vld [vmem:[#allocation17 + $0x850] ss:$48 sps:$4 sm:$0xff]  }
 0xacc   : > { %5736 = vmatpush1.bf16.msra.mxu0 %v10712_v42  ;;  %v10793_v42 = vld [vmem:[#allocation17 + $0x550] ss:$48 sps:$4 sm:$0xff]  }
 0xacd   : > { %5777 = vmatpush1.bf16.msra.mxu1 %v10715_v34  ;;  %5737 = vmatprep.subr.bf16.mxu0 %v10720_v45  ;;  %v10798_v34 = vld [vmem:[#allocation17 + $0x7f4] ss:$48 sps:$4 sm:$0xff]  }
 0xace   : > { %5778 = vmatprep.subr.bf16.mxu1 %v10723_v46  ;;  %v10801_v45 = vld [vmem:[#allocation17 + $0x4f4] ss:$48 sps:$4 sm:$0xff]   ;;  %v10796_v46 = vld [vmem:[#allocation17 + $0x7f0] ss:$48 sps:$4 sm:$0xff]  }
 0xad0   : > { %5738 = vmatpush1.bf16.msra.mxu0 %v10718_v47  ;;  %v10799_v47 = vld [vmem:[#allocation17 + $0x4f0] ss:$48 sps:$4 sm:$0xff]  }
 0xad1   : > { %5779 = vmatpush1.bf16.msra.mxu1 %v10721_v48  ;;  %5739 = vmatprep.subr.bf16.mxu0 %v10726_v50  ;;  %v10804_v48 = vld [vmem:[#allocation17 + $0x794] ss:$48 sps:$4 sm:$0xff]  }
 0xad2   : > { %5780 = vmatprep.subr.bf16.mxu1 %v10729_v51  ;;  %v10807_v50 = vld [vmem:[#allocation17 + $0x494] ss:$48 sps:$4 sm:$0xff]   ;;  %v10802_v51 = vld [vmem:[#allocation17 + $0x790] ss:$48 sps:$4 sm:$0xff]  }
 0xad4   : > { %5740 = vmatpush1.bf16.msra.mxu0 %v10724_v52  ;;  %v10805_v52 = vld [vmem:[#allocation17 + $0x490] ss:$48 sps:$4 sm:$0xff]  }
 0xad5   : > { %5781 = vmatpush1.bf16.msra.mxu1 %v10727_v53  ;;  %5741 = vmatprep.subr.bf16.mxu0 %v10732_v54  ;;  %v10810_v53 = vld [vmem:[#allocation17 + $0x734] ss:$48 sps:$4 sm:$0xff]  }
 0xad6   : > { %5782 = vmatprep.subr.bf16.mxu1 %v10735_v43  ;;  %v10813_v54 = vld [vmem:[#allocation17 + $0x434] ss:$48 sps:$4 sm:$0xff]   ;;  %v10808_v43 = vld [vmem:[#allocation17 + $0x730] ss:$48 sps:$4 sm:$0xff]  }
 0xad8   : > { %5742 = vmatpush1.bf16.msra.mxu0 %v10730_v55  ;;  %v10811_v55 = vld [vmem:[#allocation17 + $0x430] ss:$48 sps:$4 sm:$0xff]  }
 0xad9   : > { %5783 = vmatpush1.bf16.msra.mxu1 %v10733_v56  ;;  %5743 = vmatprep.subr.bf16.mxu0 %v10738_v57  ;;  %v10816_v56 = vld [vmem:[#allocation17 + $0x6d4] ss:$48 sps:$4 sm:$0xff]  }
 0xada   : > { %5809 = vmatprep.subr.bf16.mxu1 %v10741_v59  ;;  %v10819_v57 = vld [vmem:[#allocation17 + $0x3d4] ss:$48 sps:$4 sm:$0xff]   ;;  %v10814_v59 = vld [vmem:[#allocation17 + $0x6d0] ss:$48 sps:$4 sm:$0xff]  }
 0xadc   : > { %5744 = vmatpush2.bf16.msra.mxu0 %v10736_v60  ;;  %5801 = vmatmul.mubr.bf16.vlgmr.msra.gmra.mxu1 %v12474_v25  ;;  %v10817_v60 = vld [vmem:[#allocation17 + $0x3d0] ss:$48 sps:$4 sm:$0xff]  }
 0xadd   : > { %5810 = vmatpush1.bf16.msra.mxu1 %v10739_v61  ;;  %5841 = vmatprep.mubr.bf16.mxu1 %v12472_v24  ;;  %v10822_v61 = vld [vmem:[#allocation17 + $0x674] ss:$48 sps:$4 sm:$0xff]  }
 0xade   : > { %5745 = vmatprep.subr.bf16.mxu0 %v10744_v62  ;;  %5811 = vmatprep.subr.bf16.mxu1 %v10747_v30  ;;  %v10825_v62 = vld [vmem:[#allocation17 + $0x374] ss:$48 sps:$4 sm:$0xff]   ;;  %v10820_v30 = vld [vmem:[#allocation17 + $0x670] ss:$48 sps:$4 sm:$0xff]  }
 0xae0   : > { %5746 = vmatpush2.bf16.msra.mxu0 %v10742_v0  ;;  %v10823_v0 = vld [vmem:[#allocation17 + $0x370] ss:$48 sps:$4 sm:$0xff]  }
 0xae1   : > { %5812 = vmatpush1.bf16.msra.mxu1 %v10745_v1  ;;  %5747 = vmatprep.subr.bf16.mxu0 %v10750_v2  ;;  %v10828_v1 = vld [vmem:[#allocation17 + $0x614] ss:$48 sps:$4 sm:$0xff]  }
 0xae2   : > { %5813 = vmatprep.subr.bf16.mxu1 %v10753_v63  ;;  %v10831_v2 = vld [vmem:[#allocation17 + $0x314] ss:$48 sps:$4 sm:$0xff]   ;;  %v10826_v63 = vld [vmem:[#allocation17 + $0x610] ss:$48 sps:$4 sm:$0xff]  }
 0xae4   : > { %5748 = vmatpush2.bf16.msra.mxu0 %v10748_v12  ;;  %v10829_v12 = vld [vmem:[#allocation17 + $0x310] ss:$48 sps:$4 sm:$0xff]  }
 0xae5   : > { %5814 = vmatpush1.bf16.msra.mxu1 %v10751_v22  ;;  %5749 = vmatprep.subr.bf16.mxu0 %v10756_v3  ;;  %v10834_v22 = vld [vmem:[#allocation17 + $0x2bc] ss:$48 sps:$4 sm:$0xff]  }
 0xae6   : > { %5815 = vmatprep.subr.bf16.mxu1 %v10759_v4  ;;  %v10837_v3 = vld [vmem:[#allocation17 + $0x8bc] ss:$48 sps:$4 sm:$0xff]   ;;  %v10832_v4 = vld [vmem:[#allocation17 + $0x2b8] ss:$48 sps:$4 sm:$0xff]  }
 0xae8   : > { %5750 = vmatpush2.bf16.msra.mxu0 %v10754_v5  ;;  %v10835_v5 = vld [vmem:[#allocation17 + $0x8b8] ss:$48 sps:$4 sm:$0xff]  }
 0xae9   : > { %5816 = vmatpush1.bf16.msra.mxu1 %v10757_v13  ;;  %5751 = vmatprep.subr.bf16.mxu0 %v10762_v7  ;;  %v10840_v13 = vld [vmem:[#allocation17 + $0x25c] ss:$48 sps:$4 sm:$0xff]  }
 0xaea   : > { %5817 = vmatprep.subr.bf16.mxu1 %v10765_v11  ;;  %v10843_v7 = vld [vmem:[#allocation17 + $0x85c] ss:$48 sps:$4 sm:$0xff]   ;;  %v10838_v11 = vld [vmem:[#allocation17 + $0x258] ss:$48 sps:$4 sm:$0xff]  }
 0xaec   : > { %5752 = vmatpush2.bf16.msra.mxu0 %v10760_v14  ;;  %v10841_v14 = vld [vmem:[#allocation17 + $0x858] ss:$48 sps:$4 sm:$0xff]  }
 0xaed   : > { %5818 = vmatpush1.bf16.msra.mxu1 %v10763_v15  ;;  %5753 = vmatprep.subr.bf16.mxu0 %v10768_v16  ;;  %v10846_v15 = vld [vmem:[#allocation17 + $0x1fc] ss:$48 sps:$4 sm:$0xff]  }
 0xaee   : > { %5819 = vmatprep.subr.bf16.mxu1 %v10771_v17  ;;  %v10849_v16 = vld [vmem:[#allocation17 + $0x7fc] ss:$48 sps:$4 sm:$0xff]   ;;  %v10844_v17 = vld [vmem:[#allocation17 + $0x1f8] ss:$48 sps:$4 sm:$0xff]  }
 0xaf0   : > { %5754 = vmatpush2.bf16.msra.mxu0 %v10766_v19  ;;  %v10847_v19 = vld [vmem:[#allocation17 + $0x7f8] ss:$48 sps:$4 sm:$0xff]  }
 0xaf1   : > { %5820 = vmatpush1.bf16.msra.mxu1 %v10769_v20  ;;  %5755 = vmatprep.subr.bf16.mxu0 %v10774_v27  ;;  %v10852_v20 = vld [vmem:[#allocation17 + $0x19c] ss:$48 sps:$4 sm:$0xff]  }
 0xaf2   : > { %5821 = vmatprep.subr.bf16.mxu1 %v10777_v35  ;;  %v10855_v27 = vld [vmem:[#allocation17 + $0x79c] ss:$48 sps:$4 sm:$0xff]   ;;  %v10850_v35 = vld [vmem:[#allocation17 + $0x198] ss:$48 sps:$4 sm:$0xff]  }
 0xaf4   : > { %5756 = vmatpush2.bf16.msra.mxu0 %v10772_v23  ;;  %v10853_v23 = vld [vmem:[#allocation17 + $0x798] ss:$48 sps:$4 sm:$0xff]  }
 0xaf5   : > { %5822 = vmatpush1.bf16.msra.mxu1 %v10775_v21  ;;  %5757 = vmatprep.subr.bf16.mxu0 %v10780_v29  ;;  %v10858_v21 = vld [vmem:[#allocation17 + $0x13c] ss:$48 sps:$4 sm:$0xff]  }
 0xaf6   : > { %5823 = vmatprep.subr.bf16.mxu1 %v10783_v18  ;;  %v10861_v29 = vld [vmem:[#allocation17 + $0x73c] ss:$48 sps:$4 sm:$0xff]   ;;  %v10856_v18 = vld [vmem:[#allocation17 + $0x138] ss:$48 sps:$4 sm:$0xff]  }
 0xaf8   : > { %5758 = vmatpush2.bf16.msra.mxu0 %v10778_v32  ;;  %v10859_v32 = vld [vmem:[#allocation17 + $0x738] ss:$48 sps:$4 sm:$0xff]  }
 0xaf9   : > { %5824 = vmatpush1.bf16.msra.mxu1 %v10781_v33  ;;  %5850 = vmatprep.subr.bf16.mxu0 %v10786_v31  ;;  %v10864_v33 = vld [vmem:[#allocation17 + $0xdc] ss:$48 sps:$4 sm:$0xff]  }
 0xafa   : > { %5825 = vmatprep.subr.bf16.mxu1 %v10789_v36  ;;  %v10867_v31 = vld [vmem:[#allocation17 + $0x6dc] ss:$48 sps:$4 sm:$0xff]   ;;  %v10862_v36 = vld [vmem:[#allocation17 + $0xd8] ss:$48 sps:$4 sm:$0xff]  }
 0xafb   : > { %5760 = vmatmul.mubr.bf16.vlgmr.msra.gmra.mxu0 %v12476_v28 }
 0xafc   : > { %5851 = vmatpush1.bf16.msra.mxu0 %v10784_v37  ;;  %5882 = vmatprep.mubr.bf16.mxu0 %v11912_v58  ;;  %v10865_v37 = vld [vmem:[#allocation17 + $0x6d8] ss:$48 sps:$4 sm:$0xff]  }
 0xafd   : > { %5826 = vmatpush2.bf16.msra.mxu1 %v10787_v38  ;;  %5852 = vmatprep.subr.bf16.mxu0 %v10792_v39  ;;  %v10870_v38 = vld [vmem:[#allocation17 + $0x7c] ss:$48 sps:$4 sm:$0xff]  }
 0xafe   : > { %5827 = vmatprep.subr.bf16.mxu1 %v10795_v40  ;;  %v10873_v39 = vld [vmem:[#allocation17 + $0x67c] ss:$48 sps:$4 sm:$0xff]   ;;  %v10868_v40 = vld [vmem:[#allocation17 + $0x78] ss:$48 sps:$4 sm:$0xff]  }
 0xb00   : > { %5853 = vmatpush1.bf16.msra.mxu0 %v10790_v41  ;;  %v10871_v41 = vld [vmem:[#allocation17 + $0x678] ss:$48 sps:$4 sm:$0xff]  }
 0xb01   : > { %5828 = vmatpush2.bf16.msra.mxu1 %v10793_v42  ;;  %5854 = vmatprep.subr.bf16.mxu0 %v10798_v34  ;;  %v10876_v42 = vld [vmem:[#allocation17 + $0x1c] ss:$48 sps:$4 sm:$0xff]  }
 0xb02   : > { %5829 = vmatprep.subr.bf16.mxu1 %v10801_v45  ;;  %v10879_v34 = vld [vmem:[#allocation17 + $0x61c] ss:$48 sps:$4 sm:$0xff]   ;;  %v10874_v45 = vld [vmem:[#allocation17 + $0x18] ss:$48 sps:$4 sm:$0xff]  }
 0xb04   : > { %5855 = vmatpush1.bf16.msra.mxu0 %v10796_v46  ;;  %v10877_v46 = vld [vmem:[#allocation17 + $0x618] ss:$48 sps:$4 sm:$0xff]  }
 0xb05   : > { %5830 = vmatpush2.bf16.msra.mxu1 %v10799_v47  ;;  %5856 = vmatprep.subr.bf16.mxu0 %v10804_v48  ;;  %v10882_v47 = vld [vmem:[#allocation17 + $0x5bc] ss:$48 sps:$4 sm:$0xff]   ;;  %v10885_v48 = vld [vmem:[#allocation17 + $0x2c4] ss:$48 sps:$4 sm:$0xff]  }
 0xb06   : > { %5831 = vmatprep.subr.bf16.mxu1 %v10807_v50  ;;  %v10880_v50 = vld [vmem:[#allocation17 + $0x5b8] ss:$48 sps:$4 sm:$0xff]  }
 0xb08   : > { %5857 = vmatpush1.bf16.msra.mxu0 %v10802_v51  ;;  %v10883_v51 = vld [vmem:[#allocation17 + $0x2c0] ss:$48 sps:$4 sm:$0xff]  }
 0xb09   : > { %5832 = vmatpush2.bf16.msra.mxu1 %v10805_v52  ;;  %5858 = vmatprep.subr.bf16.mxu0 %v10810_v53  ;;  %v10888_v52 = vld [vmem:[#allocation17 + $0x55c] ss:$48 sps:$4 sm:$0xff]   ;;  %v10891_v53 = vld [vmem:[#allocation17 + $0x264] ss:$48 sps:$4 sm:$0xff]  }
 0xb0a   : > { %5833 = vmatprep.subr.bf16.mxu1 %v10813_v54  ;;  %v10886_v54 = vld [vmem:[#allocation17 + $0x558] ss:$48 sps:$4 sm:$0xff]  }
 0xb0c   : > { %5859 = vmatpush1.bf16.msra.mxu0 %v10808_v43  ;;  %v10889_v43 = vld [vmem:[#allocation17 + $0x260] ss:$48 sps:$4 sm:$0xff]  }
 0xb0d   : > { %5834 = vmatpush2.bf16.msra.mxu1 %v10811_v55  ;;  %5860 = vmatprep.subr.bf16.mxu0 %v10816_v56  ;;  %v10894_v55 = vld [vmem:[#allocation17 + $0x4fc] ss:$48 sps:$4 sm:$0xff]   ;;  %v10897_v56 = vld [vmem:[#allocation17 + $0x204] ss:$48 sps:$4 sm:$0xff]  }
 0xb0e   : > { %5835 = vmatprep.subr.bf16.mxu1 %v10819_v57  ;;  %v10892_v57 = vld [vmem:[#allocation17 + $0x4f8] ss:$48 sps:$4 sm:$0xff]  }
 0xb10   : > { %5861 = vmatpush1.bf16.msra.mxu0 %v10814_v59  ;;  %v10895_v59 = vld [vmem:[#allocation17 + $0x200] ss:$48 sps:$4 sm:$0xff]  }
 0xb11   : > { %5836 = vmatpush2.bf16.msra.mxu1 %v10817_v60  ;;  %5862 = vmatprep.subr.bf16.mxu0 %v10822_v61  ;;  %v10900_v60 = vld [vmem:[#allocation17 + $0x49c] ss:$48 sps:$4 sm:$0xff]   ;;  %v10903_v61 = vld [vmem:[#allocation17 + $0x1a4] ss:$48 sps:$4 sm:$0xff]  }
 0xb12   : > { %5837 = vmatprep.subr.bf16.mxu1 %v10825_v62  ;;  %v10898_v62 = vld [vmem:[#allocation17 + $0x498] ss:$48 sps:$4 sm:$0xff]  }
 0xb14   : > { %5863 = vmatpush1.bf16.msra.mxu0 %v10820_v30  ;;  %v10901_v30 = vld [vmem:[#allocation17 + $0x1a0] ss:$48 sps:$4 sm:$0xff]  }
 0xb15   : > { %5838 = vmatpush2.bf16.msra.mxu1 %v10823_v0  ;;  %5864 = vmatprep.subr.bf16.mxu0 %v10828_v1  ;;  %v10906_v0 = vld [vmem:[#allocation17 + $0x43c] ss:$48 sps:$4 sm:$0xff]   ;;  %v10909_v1 = vld [vmem:[#allocation17 + $0x144] ss:$48 sps:$4 sm:$0xff]  }
 0xb16   : > { %5839 = vmatprep.subr.bf16.mxu1 %v10831_v2  ;;  %v10904_v2 = vld [vmem:[#allocation17 + $0x438] ss:$48 sps:$4 sm:$0xff]  }
 0xb18   : > { %5865 = vmatpush1.bf16.msra.mxu0 %v10826_v63  ;;  %v10907_v63 = vld [vmem:[#allocation17 + $0x140] ss:$48 sps:$4 sm:$0xff]  }
 0xb19   : > { %5840 = vmatpush2.bf16.msra.mxu1 %v10829_v12  ;;  %5891 = vmatprep.subr.bf16.mxu0 %v10834_v22  ;;  %v10912_v12 = vld [vmem:[#allocation17 + $0x3dc] ss:$48 sps:$4 sm:$0xff]   ;;  %v10915_v22 = vld [vmem:[#allocation17 + $0xe4] ss:$48 sps:$4 sm:$0xff]  }
 0xb1a   : > { %5932 = vmatprep.subr.bf16.mxu1 %v10837_v3  ;;  %v10910_v3 = vld [vmem:[#allocation17 + $0x3d8] ss:$48 sps:$4 sm:$0xff]  }
 0xb1b   : > { %5883 = vmatmul.mubr.bf16.vlgmr.msra.gmra.mxu0 %v12474_v25 }
 0xb1c   : > { %5842 = vmatmul.mubr.bf16.vlgmr.msra.gmra.mxu1 %v12476_v28  ;;  %5892 = vmatpush1.bf16.msra.mxu0 %v10832_v4  ;;  %v10913_v4 = vld [vmem:[#allocation17 + $0xe0] ss:$48 sps:$4 sm:$0xff]  }
 0xb1d   : > { %5923 = vmatprep.mubr.bf16.mxu0 %v12472_v24  ;;  %5933 = vmatpush1.bf16.msra.mxu1 %v10835_v5  ;;  %v10918_v5 = vld [vmem:[#allocation17 + $0x37c] ss:$48 sps:$4 sm:$0xff]  }
 0xb1e   : > { %5893 = vmatprep.subr.bf16.mxu0 %v10840_v13  ;;  %5934 = vmatprep.subr.bf16.mxu1 %v10843_v7  ;;  %v10921_v13 = vld [vmem:[#allocation17 + $0x84] ss:$48 sps:$4 sm:$0xff]   ;;  %v10916_v7 = vld [vmem:[#allocation17 + $0x378] ss:$48 sps:$4 sm:$0xff]  }
 0xb1f   : > { %5964 = vmatprep.mubr.bf16.mxu1 %v11912_v58 }
 0xb20   : > { %5894 = vmatpush1.bf16.msra.mxu0 %v10838_v11  ;;  %v10919_v11 = vld [vmem:[#allocation17 + $0x80] ss:$48 sps:$4 sm:$0xff]  }
 0xb21   : > { %5935 = vmatpush1.bf16.msra.mxu1 %v10841_v14  ;;  %5895 = vmatprep.subr.bf16.mxu0 %v10846_v15  ;;  %v10924_v14 = vld [vmem:[#allocation17 + $0x31c] ss:$48 sps:$4 sm:$0xff]   ;;  %v10927_v15 = vld [vmem:[#allocation17 + $0x24] ss:$48 sps:$4 sm:$0xff]  }
 0xb22   : > { %5936 = vmatprep.subr.bf16.mxu1 %v10849_v16  ;;  %v10922_v16 = vld [vmem:[#allocation17 + $0x318] ss:$48 sps:$4 sm:$0xff]  }
 0xb24   : > { %5896 = vmatpush1.bf16.msra.mxu0 %v10844_v17  ;;  %v10925_v17 = vld [vmem:[#allocation17 + $0x20] ss:$48 sps:$4 sm:$0xff]  }
 0xb25   : > { %5937 = vmatpush1.bf16.msra.mxu1 %v10847_v19  ;;  %5897 = vmatprep.subr.bf16.mxu0 %v10852_v20  ;;  %v10930_v19 = vld [vmem:[#allocation17 + $0x8c4] ss:$48 sps:$4 sm:$0xff]  }
 0xb26   : > { %5938 = vmatprep.subr.bf16.mxu1 %v10855_v27  ;;  %v10933_v20 = vld [vmem:[#allocation17 + $0x5c4] ss:$48 sps:$4 sm:$0xff]   ;;  %v10928_v27 = vld [vmem:[#allocation17 + $0x8c0] ss:$48 sps:$4 sm:$0xff]  }
 0xb28   : > { %5898 = vmatpush1.bf16.msra.mxu0 %v10850_v35  ;;  %v10931_v35 = vld [vmem:[#allocation17 + $0x5c0] ss:$48 sps:$4 sm:$0xff]  }
 0xb29   : > { %5939 = vmatpush1.bf16.msra.mxu1 %v10853_v23  ;;  %5899 = vmatprep.subr.bf16.mxu0 %v10858_v21  ;;  %v10936_v23 = vld [vmem:[#allocation17 + $0x864] ss:$48 sps:$4 sm:$0xff]  }
 0xb2a   : > { %5940 = vmatprep.subr.bf16.mxu1 %v10861_v29  ;;  %v10939_v21 = vld [vmem:[#allocation17 + $0x564] ss:$48 sps:$4 sm:$0xff]   ;;  %v10934_v29 = vld [vmem:[#allocation17 + $0x860] ss:$48 sps:$4 sm:$0xff]  }
 0xb2c   : > { %5900 = vmatpush1.bf16.msra.mxu0 %v10856_v18  ;;  %v10937_v18 = vld [vmem:[#allocation17 + $0x560] ss:$48 sps:$4 sm:$0xff]  }
 0xb2d   : > { %5941 = vmatpush1.bf16.msra.mxu1 %v10859_v32  ;;  %5901 = vmatprep.subr.bf16.mxu0 %v10864_v33  ;;  %v10942_v32 = vld [vmem:[#allocation17 + $0x804] ss:$48 sps:$4 sm:$0xff]  }
 0xb2e   : > { %5942 = vmatprep.subr.bf16.mxu1 %v10867_v31  ;;  %v10945_v33 = vld [vmem:[#allocation17 + $0x504] ss:$48 sps:$4 sm:$0xff]   ;;  %v10940_v31 = vld [vmem:[#allocation17 + $0x800] ss:$48 sps:$4 sm:$0xff]  }
 0xb30   : > { %5902 = vmatpush1.bf16.msra.mxu0 %v10862_v36  ;;  %v10943_v36 = vld [vmem:[#allocation17 + $0x500] ss:$48 sps:$4 sm:$0xff]  }
 0xb31   : > { %5943 = vmatpush1.bf16.msra.mxu1 %v10865_v37  ;;  %5903 = vmatprep.subr.bf16.mxu0 %v10870_v38  ;;  %v10948_v37 = vld [vmem:[#allocation17 + $0x7a4] ss:$48 sps:$4 sm:$0xff]  }
 0xb32   : > { %5944 = vmatprep.subr.bf16.mxu1 %v10873_v39  ;;  %v10951_v38 = vld [vmem:[#allocation17 + $0x4a4] ss:$48 sps:$4 sm:$0xff]   ;;  %v10946_v39 = vld [vmem:[#allocation17 + $0x7a0] ss:$48 sps:$4 sm:$0xff]  }
 0xb34   : > { %5904 = vmatpush1.bf16.msra.mxu0 %v10868_v40  ;;  %v10949_v40 = vld [vmem:[#allocation17 + $0x4a0] ss:$48 sps:$4 sm:$0xff]  }
 0xb35   : > { %5945 = vmatpush1.bf16.msra.mxu1 %v10871_v41  ;;  %5905 = vmatprep.subr.bf16.mxu0 %v10876_v42  ;;  %v10954_v41 = vld [vmem:[#allocation17 + $0x744] ss:$48 sps:$4 sm:$0xff]  }
 0xb36   : > { %5946 = vmatprep.subr.bf16.mxu1 %v10879_v34  ;;  %v10957_v42 = vld [vmem:[#allocation17 + $0x444] ss:$48 sps:$4 sm:$0xff]   ;;  %v10952_v34 = vld [vmem:[#allocation17 + $0x740] ss:$48 sps:$4 sm:$0xff]  }
 0xb38   : > { %5906 = vmatpush1.bf16.msra.mxu0 %v10874_v45  ;;  %v10955_v45 = vld [vmem:[#allocation17 + $0x440] ss:$48 sps:$4 sm:$0xff]  }
 0xb39   : > { %5947 = vmatpush1.bf16.msra.mxu1 %v10877_v46  ;;  %5907 = vmatprep.subr.bf16.mxu0 %v10882_v47  ;;  %v10960_v46 = vld [vmem:[#allocation17 + $0x6e4] ss:$48 sps:$4 sm:$0xff]  }
 0xb3a   : > { %5973 = vmatprep.subr.bf16.mxu1 %v10885_v48  ;;  %v10963_v47 = vld [vmem:[#allocation17 + $0x3e4] ss:$48 sps:$4 sm:$0xff]   ;;  %v10958_v48 = vld [vmem:[#allocation17 + $0x6e0] ss:$48 sps:$4 sm:$0xff]  }
 0xb3c   : > { %5908 = vmatpush2.bf16.msra.mxu0 %v10880_v50  ;;  %5965 = vmatmul.mubr.bf16.vlgmr.msra.gmra.mxu1 %v12474_v25  ;;  %v10961_v50 = vld [vmem:[#allocation17 + $0x3e0] ss:$48 sps:$4 sm:$0xff]  }
 0xb3d   : > { %5974 = vmatpush1.bf16.msra.mxu1 %v10883_v51  ;;  %6005 = vmatprep.mubr.bf16.mxu1 %v12472_v24  ;;  %v10966_v51 = vld [vmem:[#allocation17 + $0x684] ss:$48 sps:$4 sm:$0xff]  }
 0xb3e   : > { %5909 = vmatprep.subr.bf16.mxu0 %v10888_v52  ;;  %5975 = vmatprep.subr.bf16.mxu1 %v10891_v53  ;;  %v10969_v52 = vld [vmem:[#allocation17 + $0x384] ss:$48 sps:$4 sm:$0xff]   ;;  %v10964_v53 = vld [vmem:[#allocation17 + $0x680] ss:$48 sps:$4 sm:$0xff]  }
 0xb40   : > { %5910 = vmatpush2.bf16.msra.mxu0 %v10886_v54  ;;  %v10967_v54 = vld [vmem:[#allocation17 + $0x380] ss:$48 sps:$4 sm:$0xff]  }
 0xb41   : > { %5976 = vmatpush1.bf16.msra.mxu1 %v10889_v43  ;;  %5911 = vmatprep.subr.bf16.mxu0 %v10894_v55  ;;  %v10972_v43 = vld [vmem:[#allocation17 + $0x624] ss:$48 sps:$4 sm:$0xff]  }
 0xb42   : > { %5977 = vmatprep.subr.bf16.mxu1 %v10897_v56  ;;  %v10975_v55 = vld [vmem:[#allocation17 + $0x324] ss:$48 sps:$4 sm:$0xff]   ;;  %v10970_v56 = vld [vmem:[#allocation17 + $0x620] ss:$48 sps:$4 sm:$0xff]  }
 0xb44   : > { %5912 = vmatpush2.bf16.msra.mxu0 %v10892_v57  ;;  %v10973_v57 = vld [vmem:[#allocation17 + $0x320] ss:$48 sps:$4 sm:$0xff]  }
 0xb45   : > { %5978 = vmatpush1.bf16.msra.mxu1 %v10895_v59  ;;  %5913 = vmatprep.subr.bf16.mxu0 %v10900_v60  ;;  %v10978_v59 = vld [vmem:[#allocation17 + $0x2cc] ss:$48 sps:$4 sm:$0xff]  }
 0xb46   : > { %5979 = vmatprep.subr.bf16.mxu1 %v10903_v61  ;;  %v10981_v60 = vld [vmem:[#allocation17 + $0x8cc] ss:$48 sps:$4 sm:$0xff]   ;;  %v12495_v61 = vld [vmem:[#allocation19] sm:$0xff] }
 0xb48   : > { %5914 = vmatpush2.bf16.msra.mxu0 %v10898_v62  ;;  %v10976_v62 = vld [vmem:[#allocation17 + $0x2c8] ss:$48 sps:$4 sm:$0xff]  }
 0xb49   : > { %5980 = vmatpush1.bf16.msra.mxu1 %v10901_v30  ;;  %5915 = vmatprep.subr.bf16.mxu0 %v10906_v0  ;;  %v10979_v30 = vld [vmem:[#allocation17 + $0x8c8] ss:$48 sps:$4 sm:$0xff]   ;;  %v4148_v0 = vrot.slane %v12495_v61, %v12249_v10 }
 0xb4a   : > { %5981 = vmatprep.subr.bf16.mxu1 %v10909_v1  ;;  %v10984_v1 = vld [vmem:[#allocation17 + $0x26c] ss:$48 sps:$4 sm:$0xff]  }
 0xb4c   : > { %5916 = vmatpush2.bf16.msra.mxu0 %v10904_v2  ;;  %v10987_v2 = vld [vmem:[#allocation17 + $0x86c] ss:$48 sps:$4 sm:$0xff]  }
 0xb4d   : > { %5982 = vmatpush1.bf16.msra.mxu1 %v10907_v63  ;;  %5917 = vmatprep.subr.bf16.mxu0 %v10912_v12 }
 0xb4e   : > { %5983 = vmatprep.subr.bf16.mxu1 %v10915_v22  ;;  %v10982_v22 = vld [vmem:[#allocation17 + $0x268] ss:$48 sps:$4 sm:$0xff]  }
 0xb50   : > { %5918 = vmatpush2.bf16.msra.mxu0 %v10910_v3 }
 0xb51   : > { %5984 = vmatpush1.bf16.msra.mxu1 %v10913_v4  ;;  %5919 = vmatprep.subr.bf16.mxu0 %v10918_v5  ;;  %v10985_v5 = vld [vmem:[#allocation17 + $0x868] ss:$48 sps:$4 sm:$0xff]  }
 0xb52   : > { %5985 = vmatprep.subr.bf16.mxu1 %v10921_v13  ;;  %v10990_v13 = vld [vmem:[#allocation17 + $0x20c] ss:$48 sps:$4 sm:$0xff]  }
 0xb54   : > { %5920 = vmatpush2.bf16.msra.mxu0 %v10916_v7 }
 0xb55   : > { %5986 = vmatpush1.bf16.msra.mxu1 %v10919_v11  ;;  %5921 = vmatprep.subr.bf16.mxu0 %v10924_v14  ;;  %v10993_v11 = vld [vmem:[#allocation17 + $0x80c] ss:$48 sps:$4 sm:$0xff]  }
 0xb56   : > { %5987 = vmatprep.subr.bf16.mxu1 %v10927_v15 }
 0xb58   : > { %5922 = vmatpush2.bf16.msra.mxu0 %v10922_v16 }
 0xb59   : > { %5988 = vmatpush1.bf16.msra.mxu1 %v10925_v17  ;;  %6014 = vmatprep.subr.bf16.mxu0 %v10930_v19  ;;  %v10988_v17 = vld [vmem:[#allocation17 + $0x208] ss:$48 sps:$4 sm:$0xff]  }
 0xb5a   : > { %5989 = vmatprep.subr.bf16.mxu1 %v10933_v20  ;;  %v10996_v20 = vld [vmem:[#allocation17 + $0x1ac] ss:$48 sps:$4 sm:$0xff]  }
 0xb5b   : > { %5924 = vmatmul.mubr.bf16.vlgmr.msra.gmra.mxu0 %v12476_v28 }
 0xb5c   : > { %6015 = vmatpush1.bf16.msra.mxu0 %v10928_v27  ;;  %6046 = vmatprep.mubr.bf16.mxu0 %v11912_v58 }
 0xb5d   : > { %5990 = vmatpush2.bf16.msra.mxu1 %v10931_v35  ;;  %6016 = vmatprep.subr.bf16.mxu0 %v10936_v23  ;;  %v10999_v35 = vld [vmem:[#allocation17 + $0x7ac] ss:$48 sps:$4 sm:$0xff]   ;;  %v10994_v23 = vld [vmem:[#allocation17 + $0x1a8] ss:$48 sps:$4 sm:$0xff]  }
 0xb5e   : > { %5991 = vmatprep.subr.bf16.mxu1 %v10939_v21  ;;  %v10997_v21 = vld [vmem:[#allocation17 + $0x7a8] ss:$48 sps:$4 sm:$0xff]  }
 0xb60   : > { %6017 = vmatpush1.bf16.msra.mxu0 %v10934_v29  ;;  %v11002_v29 = vld [vmem:[#allocation17 + $0x14c] ss:$48 sps:$4 sm:$0xff]  }
 0xb61   : > { %5992 = vmatpush2.bf16.msra.mxu1 %v10937_v18  ;;  %6018 = vmatprep.subr.bf16.mxu0 %v10942_v32  ;;  %v11005_v18 = vld [vmem:[#allocation17 + $0x74c] ss:$48 sps:$4 sm:$0xff]   ;;  %v11003_v32 = vld [vmem:[#allocation17 + $0x748] ss:$48 sps:$4 sm:$0xff]  }
 0xb62   : > { %5993 = vmatprep.subr.bf16.mxu1 %v10945_v33  ;;  %v11008_v33 = vld [vmem:[#allocation17 + $0xec] ss:$48 sps:$4 sm:$0xff]  }
 0xb64   : > { %6019 = vmatpush1.bf16.msra.mxu0 %v10940_v31  ;;  %v11011_v31 = vld [vmem:[#allocation17 + $0x6ec] ss:$48 sps:$4 sm:$0xff]  }
 0xb65   : > { %5994 = vmatpush2.bf16.msra.mxu1 %v10943_v36  ;;  %6020 = vmatprep.subr.bf16.mxu0 %v10948_v37  ;;  %v4152_v36 = vrot.slane %v12495_v61, %v12243_v8  ;;  %v11006_v37 = vld [vmem:[#allocation17 + $0xe8] ss:$48 sps:$4 sm:$0xff]  }
 0xb66   : > { %5995 = vmatprep.subr.bf16.mxu1 %v10951_v38  ;;  %v11009_v38 = vld [vmem:[#allocation17 + $0x6e8] ss:$48 sps:$4 sm:$0xff]  }
 0xb68   : > { %6021 = vmatpush1.bf16.msra.mxu0 %v10946_v39  ;;  %v11014_v39 = vld [vmem:[#allocation17 + $0x8c] ss:$48 sps:$4 sm:$0xff]  }
 0xb69   : > { %5996 = vmatpush2.bf16.msra.mxu1 %v10949_v40  ;;  %6022 = vmatprep.subr.bf16.mxu0 %v10954_v41  ;;  %v11017_v40 = vld [vmem:[#allocation17 + $0x68c] ss:$48 sps:$4 sm:$0xff]  }
 0xb6a   : > { %5997 = vmatprep.subr.bf16.mxu1 %v10957_v42  ;;  %v11012_v42 = vld [vmem:[#allocation17 + $0x88] ss:$48 sps:$4 sm:$0xff]  }
 0xb6c   : > { %6023 = vmatpush1.bf16.msra.mxu0 %v10952_v34  ;;  %v11015_v34 = vld [vmem:[#allocation17 + $0x688] ss:$48 sps:$4 sm:$0xff]  }
 0xb6d   : > { %5998 = vmatpush2.bf16.msra.mxu1 %v10955_v45  ;;  %6024 = vmatprep.subr.bf16.mxu0 %v10960_v46  ;;  %v11020_v45 = vld [vmem:[#allocation17 + $0x2c] ss:$48 sps:$4 sm:$0xff]  }
 0xb6e   : > { %5999 = vmatprep.subr.bf16.mxu1 %v10963_v47  ;;  %v11023_v46 = vld [vmem:[#allocation17 + $0x62c] ss:$48 sps:$4 sm:$0xff]  }
 0xb70   : > { %6025 = vmatpush1.bf16.msra.mxu0 %v10958_v48  ;;  %v11018_v48 = vld [vmem:[#allocation17 + $0x28] ss:$48 sps:$4 sm:$0xff]  }
 0xb71   : > { %6000 = vmatpush2.bf16.msra.mxu1 %v10961_v50  ;;  %6026 = vmatprep.subr.bf16.mxu0 %v10966_v51  ;;  %v11021_v50 = vld [vmem:[#allocation17 + $0x628] ss:$48 sps:$4 sm:$0xff]   ;;  %v11026_v51 = vld [vmem:[#allocation17 + $0x5cc] ss:$48 sps:$4 sm:$0xff]  }
 0xb72   : > { %6001 = vmatprep.subr.bf16.mxu1 %v10969_v52  ;;  %v11029_v52 = vld [vmem:[#allocation20 + $0xac] ss:$12 sps:$4 sm:$0xff]  }
 0xb74   : > { %6027 = vmatpush1.bf16.msra.mxu0 %v10964_v53 }
 0xb75   : > { %6002 = vmatpush2.bf16.msra.mxu1 %v10967_v54  ;;  %6028 = vmatprep.subr.bf16.mxu0 %v10972_v43  ;;  %v11024_v54 = vld [vmem:[#allocation17 + $0x5c8] ss:$48 sps:$4 sm:$0xff]   ;;  %v11027_v43 = vld [vmem:[#allocation20 + $0xa8] ss:$12 sps:$4 sm:$0xff]  }
 0xb76   : > { %6003 = vmatprep.subr.bf16.mxu1 %v10975_v55  ;;  %v11032_v55 = vld [vmem:[#allocation17 + $0x56c] ss:$48 sps:$4 sm:$0xff]  }
 0xb78   : > { %6029 = vmatpush1.bf16.msra.mxu0 %v10970_v56  ;;  %v11035_v56 = vld [vmem:[#allocation20 + $0x94] ss:$12 sps:$4 sm:$0xff]  }
 0xb79   : > { %6004 = vmatpush2.bf16.msra.mxu1 %v10973_v57  ;;  %6055 = vmatprep.subr.bf16.mxu0 %v10978_v59 }
 0xb7a   : > { %6096 = vmatprep.subr.bf16.mxu1 %v10981_v60  ;;  %v11030_v60 = vld [vmem:[#allocation17 + $0x568] ss:$48 sps:$4 sm:$0xff]  }
 0xb7b   : > { %6047 = vmatmul.mubr.bf16.vlgmr.msra.gmra.mxu0 %v12474_v25  ;;  %v5720_v63 = vpop.f32.mrf.mxu0 }
 0xb7c   : > { %6006 = vmatmul.mubr.bf16.vlgmr.msra.gmra.mxu1 %v12476_v28  ;;  %6056 = vmatpush1.bf16.msra.mxu0 %v10976_v62  ;;  %v5679_v12 = vpop.f32.mrf.mxu1  ;;  %v11033_v62 = vld [vmem:[#allocation20 + $0x90] ss:$12 sps:$4 sm:$0xff]  }
 0xb7d   : > { %6087 = vmatprep.mubr.bf16.mxu0 %v12472_v24  ;;  %v5680_v3 = vadd.f32 %v5679_v12, %v4148_v0  ;;  %6097 = vmatpush1.bf16.msra.mxu1 %v10979_v30  ;;  %v5722_v4 = vpop.f32.mrf.mxu0  ;;  %v10991_v24 = vld [vmem:[#allocation17 + $0x808] ss:$48 sps:$4 sm:$0xff]   ;;  %v11038_v30 = vld [vmem:[#allocation17 + $0x50c] ss:$48 sps:$4 sm:$0xff]   ;;  %v11039_v12 = vld [vmem:[#allocation20 + $0x78] ss:$12 sps:$4 sm:$0xff]  }
 0xb7e   : > { %v5681_v7 = vpop.f32.mrf.mxu1  ;;  %6057 = vmatprep.subr.bf16.mxu0 %v10984_v1  ;;  %6098 = vmatprep.subr.bf16.mxu1 %v10987_v2  ;;  %v11041_v1 = vld [vmem:[#allocation20 + $0x7c] ss:$12 sps:$4 sm:$0xff]  }
 0xb7f   : > { %v12502_v14 = vadd.f32 %v5720_v63, %v5680_v3  ;;  %v5724_v15 = vpop.f32.mrf.mxu0  ;;  %6128 = vmatprep.mubr.bf16.mxu1 %v11912_v58  ;;  %v11000_v58 = vld [vmem:[#allocation17 + $0x148] ss:$48 sps:$4 sm:$0xff]   ;;  %v5682_v41 = vadd.f32 %v5681_v7, %v4152_v36  ;;  %v11072_v36 = vld [vmem:[#allocation20 + $0x228] ss:$12 sps:$4 sm:$0xff]  }
 0xb80   : > { %6058 = vmatpush1.bf16.msra.mxu0 %v10982_v22  ;;  %v5683_v16 = vpop.f32.mrf.mxu1  ;;  %v11036_v63 = vld [vmem:[#allocation17 + $0x508] ss:$48 sps:$4 sm:$0xff]   ;;  %v11044_v22 = vld [vmem:[#allocation17 + $0x4ac] ss:$48 sps:$4 sm:$0xff]   ;;  %v11051_v15 = vld [vmem:[#allocation20 + $0x48] ss:$12 sps:$4 sm:$0xff]  }
 0xb81   : > { %6099 = vmatpush1.bf16.msra.mxu1 %v10985_v5  ;;  %v5725_v19 = vpop.f32.mrf.mxu0  ;;  %6059 = vmatprep.subr.bf16.mxu0 %v10990_v13  ;;  %v5723_v47 = vadd.f32 %v5722_v4, %v5682_v41  ;;  %v11042_v4 = vld [vmem:[#allocation17 + $0x4a8] ss:$48 sps:$4 sm:$0xff]   ;;  %v11050_v13 = vld [vmem:[#allocation17 + $0x44c] ss:$48 sps:$4 sm:$0xff]  }
 0xb82   : > { %v5684_v27 = vpop.f32.mrf.mxu1  ;;  %6100 = vmatprep.subr.bf16.mxu1 %v10993_v11  ;;  %v11045_v5 = vld [vmem:[#allocation20 + $0x60] ss:$12 sps:$4 sm:$0xff]  }
 0xb83   : > { %v6138_v53 = vmax.f32 %v5723_v47, 0.0  ;;  %v11053_v7 = vld [vmem:[#allocation20 + $0x4c] ss:$12 sps:$4 sm:$0xff]   ;;  %v11056_v16 = vld [vmem:[#allocation17 + $0x3ec] ss:$48 sps:$4 sm:$0xff]  }
 0xb84   : > { %6060 = vmatpush1.bf16.msra.mxu0 %v10988_v17  ;;  %v11048_v11 = vld [vmem:[#allocation17 + $0x448] ss:$48 sps:$4 sm:$0xff]   ;;  %v11059_v17 = vld [vmem:[#allocation20 + $0x34] ss:$12 sps:$4 sm:$0xff]  }
 0xb85   : > { %6101 = vmatpush1.bf16.msra.mxu1 %v10991_v24  ;;  %6061 = vmatprep.subr.bf16.mxu0 %v10996_v20  ;;  %v12507_v57 = vpack.c.bf16 %v6138_v53, %v6138_v53  ;;  %v11054_v19 = vld [vmem:[#allocation17 + $0x3e8] ss:$48 sps:$4 sm:$0xff]   ;;  %v11062_v20 = vld [vmem:[#allocation17 + $0x38c] ss:$48 sps:$4 sm:$0xff]  }
 0xb86   : > { %6102 = vmatprep.subr.bf16.mxu1 %v10999_v35  ;;  %v11057_v24 = vld [vmem:[#allocation20 + $0x30] ss:$12 sps:$4 sm:$0xff]  }
 0xb87   : > { %v11065_v27 = vld [vmem:[#allocation20 + $0x1c] ss:$12 sps:$4 sm:$0xff]  }
 0xb88   : > { %6062 = vmatpush1.bf16.msra.mxu0 %v10994_v23  ;;  %v11060_v35 = vld [vmem:[#allocation17 + $0x388] ss:$48 sps:$4 sm:$0xff]   ;;  %v11063_v23 = vld [vmem:[#allocation20 + $0x18] ss:$12 sps:$4 sm:$0xff]  }
 0xb89   : > { %6103 = vmatpush1.bf16.msra.mxu1 %v10997_v21  ;;  %6063 = vmatprep.subr.bf16.mxu0 %v11002_v29  ;;  %v11068_v21 = vld [vmem:[#allocation17 + $0x32c] ss:$48 sps:$4 sm:$0xff]  }
 0xb8a   : > { %6104 = vmatprep.subr.bf16.mxu1 %v11005_v18  ;;  %v11071_v29 = vld [vmem:[#allocation20 + $0x4] ss:$12 sps:$4 sm:$0xff]   ;;  %v11066_v18 = vld [vmem:[#allocation17 + $0x328] ss:$48 sps:$4 sm:$0xff]  }
 0xb8c   : > { %6064 = vmatpush1.bf16.msra.mxu0 %v11000_v58  ;;  %v11069_v58 = vld [vmem:[#allocation20] ss:$12 sps:$4 sm:$0xff]  }
 0xb8d   : > { %6105 = vmatpush1.bf16.msra.mxu1 %v11003_v32  ;;  %6065 = vmatprep.subr.bf16.mxu0 %v11008_v33  ;;  %v11074_v32 = vld [vmem:[#allocation20 + $0x22c] ss:$12 sps:$4 sm:$0xff]  }
 0xb8e   : > { %6106 = vmatprep.subr.bf16.mxu1 %v11011_v31  ;;  %v11077_v33 = vld [vmem:[#allocation20 + $0x16c] ss:$12 sps:$4 sm:$0xff]   ;;  %v4159_v31 = vsub.s32 3, %v12240_v6 }
 0xb90   : > { %6066 = vmatpush1.bf16.msra.mxu0 %v11006_v37  ;;  %v11075_v37 = vld [vmem:[#allocation20 + $0x168] ss:$12 sps:$4 sm:$0xff]  }
 0xb91   : > { %6107 = vmatpush1.bf16.msra.mxu1 %v11009_v38  ;;  %6067 = vmatprep.subr.bf16.mxu0 %v11014_v39  ;;  %v11080_v38 = vld [vmem:[#allocation20 + $0x214] ss:$12 sps:$4 sm:$0xff]   ;;  %v4160_v39 = vrot.slane %v12495_v61, %v4159_v31 }
 0xb92   : > { %6108 = vmatprep.subr.bf16.mxu1 %v11017_v40  ;;  %v11083_v40 = vld [vmem:[#allocation20 + $0x154] ss:$12 sps:$4 sm:$0xff]  }
 0xb94   : > { %6068 = vmatpush1.bf16.msra.mxu0 %v11012_v42  ;;  %v11078_v42 = vld [vmem:[#allocation20 + $0x210] ss:$12 sps:$4 sm:$0xff]  }
 0xb95   : > { %6109 = vmatpush1.bf16.msra.mxu1 %v11015_v34  ;;  %6069 = vmatprep.subr.bf16.mxu0 %v11020_v45  ;;  %v11081_v45 = vld [vmem:[#allocation20 + $0x150] ss:$12 sps:$4 sm:$0xff]  }
 0xb96   : > { %6110 = vmatprep.subr.bf16.mxu1 %v11023_v46  ;;  %v11086_v46 = vld [vmem:[#allocation20 + $0x1fc] ss:$12 sps:$4 sm:$0xff]  }
 0xb98   : > { %6070 = vmatpush1.bf16.msra.mxu0 %v11018_v48  ;;  %v11089_v48 = vld [vmem:[#allocation20 + $0x13c] ss:$12 sps:$4 sm:$0xff]  }
 0xb99   : > { %6111 = vmatpush1.bf16.msra.mxu1 %v11021_v50  ;;  %6071 = vmatprep.subr.bf16.mxu0 %v11026_v51 }
 0xb9a   : > { %8098 = vmatprep.subr.bf16.mxu1 %v11029_v52  ;;  %v11084_v52 = vld [vmem:[#allocation20 + $0x1f8] ss:$12 sps:$4 sm:$0xff]  }
 0xb9c   : > { %v12509_v59 = vpop.f32.mrf.mxu1  ;;  %6072 = vmatpush2.bf16.msra.mxu0 %v11024_v54  ;;  %6129 = vmatmul.mubr.bf16.vlgmr.msra.gmra.mxu1 %v12474_v25  ;;  %v11047_v25 = vld [vmem:[#allocation20 + $0x64] ss:$12 sps:$4 sm:$0xff]  }
 0xb9d   : > { %8099 = vmatpush1.bf16.msra.mxu1 %v11027_v43  ;;  %8130 = vmatprep.mubr.bf16.mxu1 %v12507_v57  ;;  %v11087_v54 = vld [vmem:[#allocation20 + $0x138] ss:$12 sps:$4 sm:$0xff]  }
 0xb9e   : > { %v12513_v0 = vpop.f32.mrf.mxu1  ;;  %6073 = vmatprep.subr.bf16.mxu0 %v11032_v55  ;;  %8100 = vmatprep.subr.bf16.mxu1 %v11035_v56  ;;  %v11095_v55 = vld [vmem:[#allocation20 + $0x124] ss:$12 sps:$4 sm:$0xff]  }
 0xba0   : > { %v5806_v2 = vpop.f32.mrf.mxu1  ;;  %6074 = vmatpush2.bf16.msra.mxu0 %v11030_v60  ;;  %v11090_v60 = vld [vmem:[#allocation20 + $0x1e0] ss:$12 sps:$4 sm:$0xff]  }
 0xba1   : > { %8101 = vmatpush1.bf16.msra.mxu1 %v11033_v62  ;;  %6075 = vmatprep.subr.bf16.mxu0 %v11038_v30  ;;  %v11093_v62 = vld [vmem:[#allocation20 + $0x120] ss:$12 sps:$4 sm:$0xff]   ;;  %v11099_v2 = vld [vmem:[#allocation20 + $0x108] ss:$12 sps:$4 sm:$0xff]  }
 0xba2   : > { %v5807_v3 = vpop.f32.mrf.mxu1  ;;  %8102 = vmatprep.subr.bf16.mxu1 %v11041_v1  ;;  %v11098_v30 = vld [vmem:[#allocation20 + $0x1cc] ss:$12 sps:$4 sm:$0xff]   ;;  %v11096_v1 = vld [vmem:[#allocation20 + $0x1c8] ss:$12 sps:$4 sm:$0xff]  }
 0xba3   : > { %v11105_v3 = vld [vmem:[#allocation20 + $0xf0] ss:$12 sps:$4 sm:$0xff]  }
 0xba4   : > { %6076 = vmatpush2.bf16.msra.mxu0 %v11036_v63  ;;  %v11104_v63 = vld [vmem:[#allocation20 + $0x1b4] ss:$12 sps:$4 sm:$0xff]  }
 0xba5   : > { %8103 = vmatpush1.bf16.msra.mxu1 %v11039_v12  ;;  %6077 = vmatprep.subr.bf16.mxu0 %v11044_v22  ;;  %v11107_v12 = vld [vmem:[#allocation20 + $0xf4] ss:$12 sps:$4 sm:$0xff]   ;;  %v11102_v22 = vld [vmem:[#allocation20 + $0x1b0] ss:$12 sps:$4 sm:$0xff]  }
 0xba6   : > { %8104 = vmatprep.subr.bf16.mxu1 %v11047_v25  ;;  %v11110_v25 = vld [vmem:[#allocation20 + $0x19c] ss:$12 sps:$4 sm:$0xff]  }
 0xba8   : > { %6078 = vmatpush2.bf16.msra.mxu0 %v11042_v4  ;;  %v11113_v4 = vld [vmem:[#allocation20 + $0xdc] ss:$12 sps:$4 sm:$0xff]  }
 0xba9   : > { %8105 = vmatpush1.bf16.msra.mxu1 %v11045_v5  ;;  %6079 = vmatprep.subr.bf16.mxu0 %v11050_v13  ;;  %v11108_v5 = vld [vmem:[#allocation20 + $0x198] ss:$12 sps:$4 sm:$0xff]  }
 0xbaa   : > { %8106 = vmatprep.subr.bf16.mxu1 %v11053_v7  ;;  %v11111_v13 = vld [vmem:[#allocation20 + $0xd8] ss:$12 sps:$4 sm:$0xff]  }
 0xbab   : > { %v11116_v7 = vld [vmem:[#allocation20 + $0x184] ss:$12 sps:$4 sm:$0xff]  }
 0xbac   : > { %6080 = vmatpush2.bf16.msra.mxu0 %v11048_v11  ;;  %v11119_v11 = vld [vmem:[#allocation20 + $0xc4] ss:$12 sps:$4 sm:$0xff]  }
 0xbad   : > { %8107 = vmatpush1.bf16.msra.mxu1 %v11051_v15  ;;  %6081 = vmatprep.subr.bf16.mxu0 %v11056_v16  ;;  %v11114_v15 = vld [vmem:[#allocation20 + $0x180] ss:$12 sps:$4 sm:$0xff]  }
 0xbae   : > { %8108 = vmatprep.subr.bf16.mxu1 %v11059_v17  ;;  %v11117_v16 = vld [vmem:[#allocation20 + $0xc0] ss:$12 sps:$4 sm:$0xff]  }
 0xbaf   : > { %v11122_v17 = vld [vmem:[#allocation20 + $0x2ec] ss:$12 sps:$4 sm:$0xff]  }
 0xbb0   : > { %6082 = vmatpush2.bf16.msra.mxu0 %v11054_v19  ;;  %v6137_v19 = vmax.f32 %v12502_v14, 0.0  ;;  %v11126_v14 = vld [vmem:[#allocation20 + $0x2d0] ss:$12 sps:$4 sm:$0xff]  }
 0xbb1   : > { %8109 = vmatpush1.bf16.msra.mxu1 %v11057_v24  ;;  %6083 = vmatprep.subr.bf16.mxu0 %v11062_v20  ;;  %v11125_v24 = vld [vmem:[#allocation20 + $0x3ac] ss:$12 sps:$4 sm:$0xff]   ;;  %v4167_v20 = vsub.s32 5, %v12240_v6 }
 0xbb2   : > { %8110 = vmatprep.subr.bf16.mxu1 %v11065_v27  ;;  %v11120_v27 = vld [vmem:[#allocation20 + $0x2e8] ss:$12 sps:$4 sm:$0xff]  }
 0xbb4   : > { %6084 = vmatpush2.bf16.msra.mxu0 %v11060_v35  ;;  %v11123_v35 = vld [vmem:[#allocation20 + $0x3a8] ss:$12 sps:$4 sm:$0xff]  }
 0xbb5   : > { %8111 = vmatpush1.bf16.msra.mxu1 %v11063_v23  ;;  %6085 = vmatprep.subr.bf16.mxu0 %v11068_v21  ;;  %v11128_v23 = vld [vmem:[#allocation20 + $0x2d4] ss:$12 sps:$4 sm:$0xff]   ;;  %v12528_v21 = vpack.c.bf16 %v6137_v19, %v6137_v19  ;;  %v11173_v19 = vld [vmem:[#allocation20 + $0x46c] ss:$12 sps:$4 sm:$0xff]  }
 0xbb6   : > { %8112 = vmatprep.subr.bf16.mxu1 %v11071_v29  ;;  %v11131_v29 = vld [vmem:[#allocation20 + $0x394] ss:$12 sps:$4 sm:$0xff]  }
 0xbb8   : > { %6086 = vmatpush2.bf16.msra.mxu0 %v11066_v18 }
 0xbb9   : > { %8113 = vmatpush1.bf16.msra.mxu1 %v11069_v58  ;;  %8139 = vmatprep.subr.bf16.mxu0 %v11074_v32  ;;  %v4168_v58 = vrot.slane %v12495_v61, %v4167_v20 }
 0xbba   : > { %8114 = vmatprep.subr.bf16.mxu1 %v11077_v33 }
 0xbbb   : > { %v12519_v41 = vpop.f32.mrf.mxu0  ;;  %6088 = vmatmul.mubr.bf16.vlgmr.msra.gmra.mxu0 %v12476_v28  ;;  %v11092_v28 = vld [vmem:[#allocation20 + $0x1e4] ss:$12 sps:$4 sm:$0xff]  }
 0xbbc   : > { %8140 = vmatpush1.bf16.msra.mxu0 %v11072_v36  ;;  %v11129_v36 = vld [vmem:[#allocation20 + $0x390] ss:$12 sps:$4 sm:$0xff]  }
 0xbbd   : > { %v5763_v34 = vpop.f32.mrf.mxu0  ;;  %8115 = vmatpush2.bf16.msra.mxu1 %v11075_v37  ;;  %8141 = vmatprep.subr.bf16.mxu0 %v11080_v38  ;;  %v11134_v37 = vld [vmem:[#allocation20 + $0x2bc] ss:$12 sps:$4 sm:$0xff]  }
 0xbbe   : > { %v5764_v47 = vadd.f32 %v5763_v34, %v4160_v39  ;;  %8116 = vmatprep.subr.bf16.mxu1 %v11083_v40  ;;  %v11137_v39 = vld [vmem:[#allocation20 + $0x37c] ss:$12 sps:$4 sm:$0xff]  }
 0xbbf   : > { %v5765_v50 = vpop.f32.mrf.mxu0 }
 0xbc0   : > { %v5805_v51 = vadd.f32 %v12513_v0, %v5764_v47  ;;  %8142 = vmatpush1.bf16.msra.mxu0 %v11078_v42  ;;  %v11101_v0 = vld [vmem:[#allocation20 + $0x10c] ss:$12 sps:$4 sm:$0xff]   ;;  %v11140_v50 = vld [vmem:[#allocation20 + $0x2a4] ss:$12 sps:$4 sm:$0xff]  }
 0xbc1   : > { %v5766_v53 = vpop.f32.mrf.mxu0  ;;  %8117 = vmatpush2.bf16.msra.mxu1 %v11081_v45  ;;  %8143 = vmatprep.subr.bf16.mxu0 %v11086_v46  ;;  %v11132_v45 = vld [vmem:[#allocation20 + $0x2b8] ss:$12 sps:$4 sm:$0xff]  }
 0xbc2   : > { %v6140_v43 = vmax.f32 %v5805_v51, 0.0  ;;  %8118 = vmatprep.subr.bf16.mxu1 %v11089_v48  ;;  %v11135_v48 = vld [vmem:[#allocation20 + $0x378] ss:$12 sps:$4 sm:$0xff]  }
 0xbc4   : > { %v12523_v56 = vpack.c.bf16 %v6140_v43, %v6140_v43  ;;  %8144 = vmatpush1.bf16.msra.mxu0 %v11084_v52  ;;  %v11143_v52 = vld [vmem:[#allocation20 + $0x364] ss:$12 sps:$4 sm:$0xff]   ;;  %v11141_v43 = vld [vmem:[#allocation20 + $0x360] ss:$12 sps:$4 sm:$0xff]  }
 0xbc5   : > { %8119 = vmatpush2.bf16.msra.mxu1 %v11087_v54  ;;  %8145 = vmatprep.subr.bf16.mxu0 %v11092_v28  ;;  %v11138_v54 = vld [vmem:[#allocation20 + $0x2a0] ss:$12 sps:$4 sm:$0xff]  }
 0xbc6   : > { %8171 = vmatprep.mubr.bf16.mxu0 %v12523_v56  ;;  %8120 = vmatprep.subr.bf16.mxu1 %v11095_v55  ;;  %v11146_v55 = vld [vmem:[#allocation20 + $0x28c] ss:$12 sps:$4 sm:$0xff]  }
 0xbc8   : > { %8146 = vmatpush1.bf16.msra.mxu0 %v11090_v60  ;;  %v11149_v60 = vld [vmem:[#allocation20 + $0x34c] ss:$12 sps:$4 sm:$0xff]  }
 0xbc9   : > { %8121 = vmatpush2.bf16.msra.mxu1 %v11093_v62  ;;  %8147 = vmatprep.subr.bf16.mxu0 %v11098_v30  ;;  %v11144_v62 = vld [vmem:[#allocation20 + $0x288] ss:$12 sps:$4 sm:$0xff]   ;;  %v4156_v30 = vrot.slane %v12495_v61, %v12246_v9 }
 0xbca   : > { %8122 = vmatprep.subr.bf16.mxu1 %v11101_v0  ;;  %v11147_v0 = vld [vmem:[#allocation20 + $0x348] ss:$12 sps:$4 sm:$0xff]  }
 0xbcc   : > { %8148 = vmatpush1.bf16.msra.mxu0 %v11096_v1  ;;  %v11152_v1 = vld [vmem:[#allocation20 + $0x274] ss:$12 sps:$4 sm:$0xff]  }
 0xbcd   : > { %8123 = vmatpush2.bf16.msra.mxu1 %v11099_v2  ;;  %8149 = vmatprep.subr.bf16.mxu0 %v11104_v63  ;;  %v11155_v2 = vld [vmem:[#allocation20 + $0x334] ss:$12 sps:$4 sm:$0xff]   ;;  %v11150_v63 = vld [vmem:[#allocation20 + $0x270] ss:$12 sps:$4 sm:$0xff]  }
 0xbce   : > { %8124 = vmatprep.subr.bf16.mxu1 %v11107_v12  ;;  %v5762_v12 = vadd.f32 %v12519_v41, %v4156_v30  ;;  %v11165_v41 = vld [vmem:[#allocation20 + $0x300] ss:$12 sps:$4 sm:$0xff]  }
 0xbd0   : > { %8150 = vmatpush1.bf16.msra.mxu0 %v11102_v22  ;;  %v11153_v22 = vld [vmem:[#allocation20 + $0x330] ss:$12 sps:$4 sm:$0xff]  }
 0xbd1   : > { %8125 = vmatpush2.bf16.msra.mxu1 %v11105_v3  ;;  %8151 = vmatprep.subr.bf16.mxu0 %v11110_v25  ;;  %v11158_v3 = vld [vmem:[#allocation20 + $0x25c] ss:$12 sps:$4 sm:$0xff]  }
 0xbd2   : > { %8126 = vmatprep.subr.bf16.mxu1 %v11113_v4  ;;  %v11161_v25 = vld [vmem:[#allocation20 + $0x31c] ss:$12 sps:$4 sm:$0xff]   ;;  %v11156_v4 = vld [vmem:[#allocation20 + $0x258] ss:$12 sps:$4 sm:$0xff]  }
 0xbd4   : > { %8152 = vmatpush1.bf16.msra.mxu0 %v11108_v5  ;;  %v5803_v5 = vadd.f32 %v12509_v59, %v5762_v12  ;;  %v11171_v59 = vld [vmem:[#allocation20 + $0x468] ss:$12 sps:$4 sm:$0xff]  }
 0xbd5   : > { %8127 = vmatpush2.bf16.msra.mxu1 %v11111_v13  ;;  %8153 = vmatprep.subr.bf16.mxu0 %v11116_v7  ;;  %v11159_v13 = vld [vmem:[#allocation20 + $0x318] ss:$12 sps:$4 sm:$0xff]  }
 0xbd6   : > { %8128 = vmatprep.subr.bf16.mxu1 %v11119_v11  ;;  %v11164_v7 = vld [vmem:[#allocation20 + $0x244] ss:$12 sps:$4 sm:$0xff]  }
 0xbd7   : > { %v11167_v11 = vld [vmem:[#allocation20 + $0x304] ss:$12 sps:$4 sm:$0xff]  }
 0xbd8   : > { %8154 = vmatpush1.bf16.msra.mxu0 %v11114_v15  ;;  %v11162_v15 = vld [vmem:[#allocation20 + $0x240] ss:$12 sps:$4 sm:$0xff]  }
 0xbd9   : > { %8129 = vmatpush2.bf16.msra.mxu1 %v11117_v16  ;;  %8155 = vmatprep.subr.bf16.mxu0 %v11122_v17  ;;  %v6139_v16 = vmax.f32 %v5803_v5, 0.0  ;;  %v11170_v17 = vld [vmem:[#allocation20 + $0x52c] ss:$12 sps:$4 sm:$0xff]  }
 0xbda   : > { %8180 = vmatprep.subr.bf16.mxu1 %v11125_v24  ;;  %v11168_v24 = vld [vmem:[#allocation20 + $0x528] ss:$12 sps:$4 sm:$0xff]  }
 0xbdb   : > { %v12530_v18 = vpop.f32.mrf.mxu0  ;;  %v12543_v20 = vpack.c.bf16 %v6139_v16, %v6139_v16 }
 0xbdc   : > { %v12533_v32 = vpop.f32.mrf.mxu1  ;;  %8131 = vmatmul.mubr.bf16.vlgmr.msra.gmra.mxu1 %v12528_v21  ;;  %8156 = vmatpush2.bf16.msra.mxu0 %v11120_v27  ;;  %v11176_v27 = vld [vmem:[#allocation20 + $0x514] ss:$12 sps:$4 sm:$0xff]  }
 0xbdd   : > { %v5886_v33 = vpop.f32.mrf.mxu0  ;;  %8181 = vmatpush1.bf16.msra.mxu1 %v11123_v35  ;;  %8157 = vmatprep.subr.bf16.mxu0 %v11128_v23  ;;  %v11179_v35 = vld [vmem:[#allocation20 + $0x454] ss:$12 sps:$4 sm:$0xff]  }
 0xbde   : > { %v5845_v38 = vpop.f32.mrf.mxu1  ;;  %8182 = vmatprep.subr.bf16.mxu1 %v11131_v29  ;;  %v11174_v29 = vld [vmem:[#allocation20 + $0x510] ss:$12 sps:$4 sm:$0xff]  }
 0xbdf   : > { %v5846_v40 = vadd.f32 %v5845_v38, %v4168_v58  ;;  %v5888_v42 = vpop.f32.mrf.mxu0  ;;  %v11177_v58 = vld [vmem:[#allocation20 + $0x450] ss:$12 sps:$4 sm:$0xff]   ;;  %v11180_v38 = vld [vmem:[#allocation20 + $0x4f8] ss:$12 sps:$4 sm:$0xff]  }
 0xbe0   : > { %v5847_v34 = vpop.f32.mrf.mxu1  ;;  %8158 = vmatpush2.bf16.msra.mxu0 %v11126_v14  ;;  %v11182_v14 = vld [vmem:[#allocation20 + $0x4fc] ss:$12 sps:$4 sm:$0xff]  }
 0xbe1   : > { %v5887_v46 = vadd.f32 %v5886_v33, %v5846_v40  ;;  %v5889_v47 = vpop.f32.mrf.mxu0  ;;  %8183 = vmatpush1.bf16.msra.mxu1 %v11129_v36  ;;  %8159 = vmatprep.subr.bf16.mxu0 %v11134_v37  ;;  %v11185_v36 = vld [vmem:[#allocation20 + $0x43c] ss:$12 sps:$4 sm:$0xff]   ;;  %v11188_v40 = vld [vmem:[#allocation20 + $0x4e4] ss:$12 sps:$4 sm:$0xff]  }
 0xbe2   : > { %v5848_v51 = vpop.f32.mrf.mxu1  ;;  %8184 = vmatprep.subr.bf16.mxu1 %v11137_v39  ;;  %v11183_v39 = vld [vmem:[#allocation20 + $0x438] ss:$12 sps:$4 sm:$0xff]  }
 0xbe3   : > { %v6142_v53 = vmax.f32 %v5887_v46, 0.0  ;;  %v11191_v34 = vld [vmem:[#allocation20 + $0x424] ss:$12 sps:$4 sm:$0xff]   ;;  %v11189_v46 = vld [vmem:[#allocation20 + $0x420] ss:$12 sps:$4 sm:$0xff]  }
 0xbe4   : > { %8160 = vmatpush2.bf16.msra.mxu0 %v11132_v45  ;;  %v11186_v45 = vld [vmem:[#allocation20 + $0x4e0] ss:$12 sps:$4 sm:$0xff]   ;;  %v11192_v51 = vld [vmem:[#allocation20 + $0x4c8] ss:$12 sps:$4 sm:$0xff]  }
 0xbe5   : > { %v12536_v28 = vpack.c.bf16 %v6142_v53, %v6142_v53  ;;  %8185 = vmatpush1.bf16.msra.mxu1 %v11135_v48  ;;  %8161 = vmatprep.subr.bf16.mxu0 %v11140_v50  ;;  %v11194_v47 = vld [vmem:[#allocation20 + $0x4cc] ss:$12 sps:$4 sm:$0xff]   ;;  %v4163_v48 = vsub.s32 4, %v12240_v6  ;;  %v11200_v53 = vld [vmem:[#allocation20 + $0x4b4] ss:$12 sps:$4 sm:$0xff]  }
 0xbe6   : > { %8186 = vmatprep.subr.bf16.mxu1 %v11143_v52  ;;  %v11197_v50 = vld [vmem:[#allocation20 + $0x40c] ss:$12 sps:$4 sm:$0xff]   ;;  %v11195_v52 = vld [vmem:[#allocation20 + $0x408] ss:$12 sps:$4 sm:$0xff]  }
 0xbe7   : > { %8212 = vmatprep.mubr.bf16.mxu1 %v12536_v28 }
 0xbe8   : > { %8162 = vmatpush2.bf16.msra.mxu0 %v11138_v54  ;;  %v4164_v54 = vrot.slane %v12495_v61, %v4163_v48  ;;  %v11245_v48 = vld [vmem:[#allocation20 + $0x64c] ss:$12 sps:$4 sm:$0xff]  }
 0xbe9   : > { %8187 = vmatpush1.bf16.msra.mxu1 %v11141_v43  ;;  %8163 = vmatprep.subr.bf16.mxu0 %v11146_v55  ;;  %v11203_v43 = vld [vmem:[#allocation20 + $0x3f4] ss:$12 sps:$4 sm:$0xff]   ;;  %v11198_v55 = vld [vmem:[#allocation20 + $0x4b0] ss:$12 sps:$4 sm:$0xff]  }
 0xbea   : > { %8188 = vmatprep.subr.bf16.mxu1 %v11149_v60  ;;  %v11201_v60 = vld [vmem:[#allocation20 + $0x3f0] ss:$12 sps:$4 sm:$0xff]   ;;  %v5844_v30 = vadd.f32 %v12533_v32, %v4164_v54  ;;  %v11221_v32 = vld [vmem:[#allocation20 + $0x6ac] ss:$12 sps:$4 sm:$0xff]   ;;  %v11251_v54 = vld [vmem:[#allocation20 + $0x634] ss:$12 sps:$4 sm:$0xff]  }
 0xbec   : > { %8164 = vmatpush2.bf16.msra.mxu0 %v11144_v62  ;;  %v11206_v62 = vld [vmem:[#allocation20 + $0x49c] ss:$12 sps:$4 sm:$0xff]   ;;  %v5885_v12 = vadd.f32 %v12530_v18, %v5844_v30 }
 0xbed   : > { %8189 = vmatpush1.bf16.msra.mxu1 %v11147_v0  ;;  %8165 = vmatprep.subr.bf16.mxu0 %v11152_v1  ;;  %v11209_v0 = vld [vmem:[#allocation20 + $0x3dc] ss:$12 sps:$4 sm:$0xff]   ;;  %v11204_v1 = vld [vmem:[#allocation20 + $0x498] ss:$12 sps:$4 sm:$0xff]  }
 0xbee   : > { %8190 = vmatprep.subr.bf16.mxu1 %v11155_v2  ;;  %v11207_v2 = vld [vmem:[#allocation20 + $0x3d8] ss:$12 sps:$4 sm:$0xff]   ;;  %v6141_v5 = vmax.f32 %v5885_v12, 0.0  ;;  %v11257_v30 = vld [vmem:[#allocation20 + $0x61c] ss:$12 sps:$4 sm:$0xff]  }
 0xbef   : > { %v11258_v12 = vld [vmem:[#allocation20 + $0x540] ss:$12 sps:$4 sm:$0xff]  }
 0xbf0   : > { %8166 = vmatpush2.bf16.msra.mxu0 %v11150_v63  ;;  %v11212_v63 = vld [vmem:[#allocation20 + $0x484] ss:$12 sps:$4 sm:$0xff]   ;;  %v12555_v18 = vpack.c.bf16 %v6141_v5, %v6141_v5  ;;  %v11273_v5 = vld [vmem:[#allocation20 + $0x828] ss:$12 sps:$4 sm:$0xff]  }
 0xbf1   : > { %8191 = vmatpush1.bf16.msra.mxu1 %v11153_v22  ;;  %8167 = vmatprep.subr.bf16.mxu0 %v11158_v3  ;;  %v11215_v22 = vld [vmem:[#allocation20 + $0x3c4] ss:$12 sps:$4 sm:$0xff]   ;;  %v11210_v3 = vld [vmem:[#allocation20 + $0x480] ss:$12 sps:$4 sm:$0xff]  }
 0xbf2   : > { %8192 = vmatprep.subr.bf16.mxu1 %v11161_v25  ;;  %v11213_v25 = vld [vmem:[#allocation20 + $0x3c0] ss:$12 sps:$4 sm:$0xff]  }
 0xbf4   : > { %8168 = vmatpush2.bf16.msra.mxu0 %v11156_v4  ;;  %v11218_v4 = vld [vmem:[#allocation20 + $0x5ec] ss:$12 sps:$4 sm:$0xff]  }
 0xbf5   : > { %8193 = vmatpush1.bf16.msra.mxu1 %v11159_v13  ;;  %8169 = vmatprep.subr.bf16.mxu0 %v11164_v7  ;;  %v4175_v13 = vsub.s32 7, %v12240_v6  ;;  %v11216_v7 = vld [vmem:[#allocation20 + $0x5e8] ss:$12 sps:$4 sm:$0xff]  }
 0xbf6   : > { %8194 = vmatprep.subr.bf16.mxu1 %v11167_v11  ;;  %v11219_v11 = vld [vmem:[#allocation20 + $0x6a8] ss:$12 sps:$4 sm:$0xff]  }
 0xbf7   : > { %v4176_v16 = vrot.slane %v12495_v61, %v4175_v13  ;;  %v11281_v13 = vld [vmem:[#allocation20 + $0x814] ss:$12 sps:$4 sm:$0xff]  }
 0xbf8   : > { %8170 = vmatpush2.bf16.msra.mxu0 %v11162_v15  ;;  %v11224_v15 = vld [vmem:[#allocation20 + $0x5d4] ss:$12 sps:$4 sm:$0xff]  }
 0xbf9   : > { %8195 = vmatpush1.bf16.msra.mxu1 %v11165_v41  ;;  %8221 = vmatprep.subr.bf16.mxu0 %v11170_v17  ;;  %v11227_v41 = vld [vmem:[#allocation20 + $0x694] ss:$12 sps:$4 sm:$0xff]  }
 0xbfa   : > { %8196 = vmatprep.subr.bf16.mxu1 %v11173_v19  ;;  %v11222_v19 = vld [vmem:[#allocation20 + $0x5d0] ss:$12 sps:$4 sm:$0xff]  }
 0xbfb   : > { %8172 = vmatmul.mubr.bf16.vlgmr.msra.gmra.mxu0 %v12543_v20 }
 0xbfc   : > { %v12546_v23 = vpop.f32.mrf.mxu1  ;;  %8222 = vmatpush1.bf16.msra.mxu0 %v11168_v24 }
 0xbfd   : > { %8197 = vmatpush2.bf16.msra.mxu1 %v11171_v59  ;;  %8223 = vmatprep.subr.bf16.mxu0 %v11176_v27  ;;  %v11225_v59 = vld [vmem:[#allocation20 + $0x690] ss:$12 sps:$4 sm:$0xff]  }
 0xbfe   : > { %v12548_v33 = vpop.f32.mrf.mxu1  ;;  %8198 = vmatprep.subr.bf16.mxu1 %v11179_v35  ;;  %v11230_v27 = vld [vmem:[#allocation20 + $0x5bc] ss:$12 sps:$4 sm:$0xff]  }
 0xc00   : > { %v5970_v37 = vpop.f32.mrf.mxu1  ;;  %8224 = vmatpush1.bf16.msra.mxu0 %v11174_v29  ;;  %v11233_v29 = vld [vmem:[#allocation20 + $0x67c] ss:$12 sps:$4 sm:$0xff]  }
 0xc01   : > { %8199 = vmatpush2.bf16.msra.mxu1 %v11177_v58  ;;  %8225 = vmatprep.subr.bf16.mxu0 %v11182_v14 }
 0xc02   : > { %v5971_v42 = vpop.f32.mrf.mxu1  ;;  %8200 = vmatprep.subr.bf16.mxu1 %v11185_v36  ;;  %v11228_v36 = vld [vmem:[#allocation20 + $0x5b8] ss:$12 sps:$4 sm:$0xff]  }
 0xc03   : > { %v11239_v42 = vld [vmem:[#allocation20 + $0x664] ss:$12 sps:$4 sm:$0xff]  }
 0xc04   : > { %8226 = vmatpush1.bf16.msra.mxu0 %v11180_v38  ;;  %v11231_v38 = vld [vmem:[#allocation20 + $0x678] ss:$12 sps:$4 sm:$0xff]  }
 0xc05   : > { %8201 = vmatpush2.bf16.msra.mxu1 %v11183_v39  ;;  %8227 = vmatprep.subr.bf16.mxu0 %v11188_v40  ;;  %v11236_v39 = vld [vmem:[#allocation20 + $0x5a4] ss:$12 sps:$4 sm:$0xff]  }
 0xc06   : > { %8202 = vmatprep.subr.bf16.mxu1 %v11191_v34 }
 0xc08   : > { %8228 = vmatpush1.bf16.msra.mxu0 %v11186_v45  ;;  %v11234_v45 = vld [vmem:[#allocation20 + $0x5a0] ss:$12 sps:$4 sm:$0xff]  }
 0xc09   : > { %8203 = vmatpush2.bf16.msra.mxu1 %v11189_v46  ;;  %8229 = vmatprep.subr.bf16.mxu0 %v11194_v47  ;;  %v4171_v46 = vsub.s32 6, %v12240_v6  ;;  %v11237_v47 = vld [vmem:[#allocation20 + $0x660] ss:$12 sps:$4 sm:$0xff]  }
 0xc0a   : > { %8204 = vmatprep.subr.bf16.mxu1 %v11197_v50  ;;  %v11240_v50 = vld [vmem:[#allocation20 + $0x588] ss:$12 sps:$4 sm:$0xff]  }
 0xc0c   : > { %8230 = vmatpush1.bf16.msra.mxu0 %v11192_v51  ;;  %v4172_v51 = vrot.slane %v12495_v61, %v4171_v46  ;;  %v11255_v61 = vld [vmem:[#allocation20 + $0x618] ss:$12 sps:$4 sm:$0xff]  }
 0xc0d   : > { %8205 = vmatpush2.bf16.msra.mxu1 %v11195_v52  ;;  %8231 = vmatprep.subr.bf16.mxu0 %v11200_v53  ;;  %v11243_v52 = vld [vmem:[#allocation20 + $0x648] ss:$12 sps:$4 sm:$0xff]  }
 0xc0e   : > { %8206 = vmatprep.subr.bf16.mxu1 %v11203_v43  ;;  %v11248_v53 = vld [vmem:[#allocation20 + $0x574] ss:$12 sps:$4 sm:$0xff]   ;;  %v11246_v43 = vld [vmem:[#allocation20 + $0x570] ss:$12 sps:$4 sm:$0xff]  }
 0xc10   : > { %8232 = vmatpush1.bf16.msra.mxu0 %v11198_v55 }
 0xc11   : > { %8207 = vmatpush2.bf16.msra.mxu1 %v11201_v60  ;;  %8233 = vmatprep.subr.bf16.mxu0 %v11206_v62  ;;  %v11249_v60 = vld [vmem:[#allocation20 + $0x630] ss:$12 sps:$4 sm:$0xff]  }
 0xc12   : > { %8208 = vmatprep.subr.bf16.mxu1 %v11209_v0  ;;  %v11254_v62 = vld [vmem:[#allocation20 + $0x55c] ss:$12 sps:$4 sm:$0xff]   ;;  %v11252_v0 = vld [vmem:[#allocation20 + $0x558] ss:$12 sps:$4 sm:$0xff]  }
 0xc14   : > { %8234 = vmatpush1.bf16.msra.mxu0 %v11204_v1 }
 0xc15   : > { %8209 = vmatpush2.bf16.msra.mxu1 %v11207_v2  ;;  %8235 = vmatprep.subr.bf16.mxu0 %v11212_v63  ;;  %v11260_v2 = vld [vmem:[#allocation20 + $0x544] ss:$12 sps:$4 sm:$0xff]  }
 0xc16   : > { %8210 = vmatprep.subr.bf16.mxu1 %v11215_v22  ;;  %v11263_v63 = vld [vmem:[#allocation20 + $0x604] ss:$12 sps:$4 sm:$0xff]  }
 0xc18   : > { %8236 = vmatpush1.bf16.msra.mxu0 %v11210_v3  ;;  %v11261_v3 = vld [vmem:[#allocation20 + $0x600] ss:$12 sps:$4 sm:$0xff]  }
 0xc19   : > { %8211 = vmatpush2.bf16.msra.mxu1 %v11213_v25  ;;  %8237 = vmatprep.subr.bf16.mxu0 %v11218_v4  ;;  %v11275_v25 = vld [vmem:[#allocation20 + $0x82c] ss:$12 sps:$4 sm:$0xff]  }
 0xc1a   : > { %8262 = vmatprep.subr.bf16.mxu1 %v11221_v32  ;;  %v11266_v4 = vld [vmem:[#allocation20 + $0x76c] ss:$12 sps:$4 sm:$0xff]  }
 0xc1b   : > { %v5925_v17 = vpop.f32.mrf.mxu0 }
 0xc1c   : > { %8213 = vmatmul.mubr.bf16.vlgmr.msra.gmra.mxu1 %v12555_v18  ;;  %8238 = vmatpush2.bf16.msra.mxu0 %v11216_v7  ;;  %v5926_v55 = vadd.f32 %v5925_v17, %v4172_v51  ;;  %v12568_v7 = vld [vmem:[#allocation19 + $0x8] sm:$0xf]  ;;  %v11284_v51 = vld [vmem:[#allocation20 + $0x70c] ss:$12 sps:$4 sm:$0xff]  }
 0xc1d   : > { %v5927_v24 = vpop.f32.mrf.mxu0  ;;  %8263 = vmatpush1.bf16.msra.mxu1 %v11219_v11  ;;  %8239 = vmatprep.subr.bf16.mxu0 %v11224_v15  ;;  %v11269_v11 = vld [vmem:[#allocation20 + $0x754] ss:$12 sps:$4 sm:$0xff]   ;;  %v11279_v17 = vld [vmem:[#allocation20 + $0x810] ss:$12 sps:$4 sm:$0xff]  }
 0xc1e   : > { %v5928_v35 = vadd.f32 %v5927_v24, %v4176_v16  ;;  %8264 = vmatprep.subr.bf16.mxu1 %v11227_v41  ;;  %v5967_v1 = vadd.f32 %v12546_v23, %v5926_v55  ;;  %v11264_v23 = vld [vmem:[#allocation20 + $0x768] ss:$12 sps:$4 sm:$0xff]   ;;  %v4184_v16 = vrot.slane %v12568_v7, %v12243_v8  ;;  %v11267_v24 = vld [vmem:[#allocation20 + $0x750] ss:$12 sps:$4 sm:$0xff]  }
 0xc1f   : > { %v5929_v58 = vpop.f32.mrf.mxu0  ;;  %v11290_v55 = vld [vmem:[#allocation20 + $0x6f4] ss:$12 sps:$4 sm:$0xff]  }
 0xc20   : > { %v5969_v14 = vadd.f32 %v12548_v33, %v5928_v35  ;;  %8240 = vmatpush2.bf16.msra.mxu0 %v11222_v19  ;;  %v11242_v33 = vld [vmem:[#allocation20 + $0x58c] ss:$12 sps:$4 sm:$0xff]   ;;  %v6143_v22 = vmax.f32 %v5967_v1, 0.0  ;;  %v11272_v35 = vld [vmem:[#allocation20 + $0x73c] ss:$12 sps:$4 sm:$0xff]  }
 0xc21   : > { %v5930_v37 = vpop.f32.mrf.mxu0  ;;  %8265 = vmatpush1.bf16.msra.mxu1 %v11225_v59  ;;  %8241 = vmatprep.subr.bf16.mxu0 %v11230_v27  ;;  %v11287_v59 = vld [vmem:[#allocation20 + $0x7fc] ss:$12 sps:$4 sm:$0xff]  }
 0xc22   : > { %v6144_v40 = vmax.f32 %v5969_v14, 0.0  ;;  %8266 = vmatprep.subr.bf16.mxu1 %v11233_v29  ;;  %v12566_v32 = vpack.c.bf16 %v6143_v22, %v6143_v22  ;;  %v11296_v1 = vld [vmem:[#allocation20 + $0x6dc] ss:$12 sps:$4 sm:$0xff]   ;;  %v11302_v22 = vld [vmem:[#allocation20 + $0x6c4] ss:$12 sps:$4 sm:$0xff]  }
 0xc24   : > { %v12560_v34 = vpack.c.bf16 %v6144_v40, %v6144_v40  ;;  %8242 = vmatpush2.bf16.msra.mxu0 %v11228_v36  ;;  %v11285_v36 = vld [vmem:[#allocation20 + $0x7f8] ss:$12 sps:$4 sm:$0xff]  }
 0xc25   : > { %8267 = vmatpush1.bf16.msra.mxu1 %v11231_v38  ;;  %8243 = vmatprep.subr.bf16.mxu0 %v11236_v39  ;;  %v11270_v39 = vld [vmem:[#allocation20 + $0x738] ss:$12 sps:$4 sm:$0xff]  }
 0xc26   : > { %8253 = vmatprep.mubr.bf16.mxu0 %v12560_v34  ;;  %8268 = vmatprep.subr.bf16.mxu1 %v11239_v42  ;;  %v11293_v40 = vld [vmem:[#allocation20 + $0x7e4] ss:$12 sps:$4 sm:$0xff]  }
 0xc28   : > { %8244 = vmatpush2.bf16.msra.mxu0 %v11234_v45  ;;  %v11278_v45 = vld [vmem:[#allocation20 + $0x724] ss:$12 sps:$4 sm:$0xff]  }
 0xc29   : > { %8269 = vmatpush1.bf16.msra.mxu1 %v11237_v47  ;;  %8245 = vmatprep.subr.bf16.mxu0 %v11242_v33  ;;  %v11291_v47 = vld [vmem:[#allocation20 + $0x7e0] ss:$12 sps:$4 sm:$0xff]  }
 0xc2a   : > { %8270 = vmatprep.subr.bf16.mxu1 %v11245_v48  ;;  %v11276_v48 = vld [vmem:[#allocation20 + $0x720] ss:$12 sps:$4 sm:$0xff]  }
 0xc2c   : > { %8246 = vmatpush2.bf16.msra.mxu0 %v11240_v50  ;;  %v11299_v50 = vld [vmem:[#allocation20 + $0x7cc] ss:$12 sps:$4 sm:$0xff]  }
 0xc2d   : > { %8271 = vmatpush1.bf16.msra.mxu1 %v11243_v52  ;;  %8247 = vmatprep.subr.bf16.mxu0 %v11248_v53  ;;  %v11297_v52 = vld [vmem:[#allocation20 + $0x7c8] ss:$12 sps:$4 sm:$0xff]  }
 0xc2e   : > { %8272 = vmatprep.subr.bf16.mxu1 %v11251_v54  ;;  %v11282_v53 = vld [vmem:[#allocation20 + $0x708] ss:$12 sps:$4 sm:$0xff]  }
 0xc2f   : > { %v11305_v54 = vld [vmem:[#allocation20 + $0x7b4] ss:$12 sps:$4 sm:$0xff]  }
 0xc30   : > { %8248 = vmatpush2.bf16.msra.mxu0 %v11246_v43  ;;  %v4180_v43 = vrot.slane %v12568_v7, %v12249_v10 }
 0xc31   : > { %8273 = vmatpush1.bf16.msra.mxu1 %v11249_v60  ;;  %8249 = vmatprep.subr.bf16.mxu0 %v11254_v62  ;;  %v11303_v60 = vld [vmem:[#allocation20 + $0x7b0] ss:$12 sps:$4 sm:$0xff]  }
 0xc32   : > { %8274 = vmatprep.subr.bf16.mxu1 %v11257_v30  ;;  %v11288_v62 = vld [vmem:[#allocation20 + $0x6f0] ss:$12 sps:$4 sm:$0xff]  }
 0xc33   : > { %v11310_v30 = vld [vmem:[#allocation20 + $0x79c] ss:$12 sps:$4 sm:$0xff]  }
 0xc34   : > { %8250 = vmatpush2.bf16.msra.mxu0 %v11252_v0 }
 0xc35   : > { %8275 = vmatpush1.bf16.msra.mxu1 %v11255_v61  ;;  %8251 = vmatprep.subr.bf16.mxu0 %v11260_v2  ;;  %v11308_v61 = vld [vmem:[#allocation20 + $0x798] ss:$12 sps:$4 sm:$0xff]  }
 0xc36   : > { %8276 = vmatprep.subr.bf16.mxu1 %v11263_v63  ;;  %v11294_v2 = vld [vmem:[#allocation20 + $0x6d8] ss:$12 sps:$4 sm:$0xff]  }
 0xc37   : > { %v11315_v63 = vld [vmem:[#allocation20 + $0x784] ss:$12 sps:$4 sm:$0xff]  }
 0xc38   : > { %8252 = vmatpush2.bf16.msra.mxu0 %v11258_v12 }
 0xc39   : > { %8277 = vmatpush1.bf16.msra.mxu1 %v11261_v3  ;;  %8303 = vmatprep.subr.bf16.mxu0 %v11275_v25  ;;  %v11313_v3 = vld [vmem:[#allocation20 + $0x780] ss:$12 sps:$4 sm:$0xff]  }
 0xc3a   : > { %8278 = vmatprep.subr.bf16.mxu1 %v11266_v4  ;;  %v11300_v25 = vld [vmem:[#allocation20 + $0x6c0] ss:$12 sps:$4 sm:$0xff]  }
 0xc3b   : > { %v12570_v15 = vpop.f32.mrf.mxu0  ;;  %8254 = vmatmul.mubr.bf16.vlgmr.msra.gmra.mxu0 %v12566_v32  ;;  %v11320_v4 = vld [vmem:[#allocation20 + $0x8ec] ss:$12 sps:$4 sm:$0xff]  }
 0xc3c   : > { %v6007_v41 = vpop.f32.mrf.mxu1  ;;  %8304 = vmatpush1.bf16.msra.mxu0 %v11273_v5 }
 0xc3d   : > { %v6050_v19 = vpop.f32.mrf.mxu0  ;;  %8279 = vmatpush2.bf16.msra.mxu1 %v11264_v23  ;;  %8305 = vmatprep.subr.bf16.mxu0 %v11281_v13  ;;  %v6008_v0 = vadd.f32 %v6007_v41, %v4180_v43  ;;  %v11306_v23 = vld [vmem:[#allocation20 + $0x170] ss:$12 sps:$4 sm:$0xff]   ;;  %v11318_v13 = vld [vmem:[#allocation20 + $0x8e8] ss:$12 sps:$4 sm:$0xff]   ;;  %v11337_v43 = vld [vmem:[#allocation20 + $0x20] ss:$12 sps:$4 sm:$0xff]  }
 0xc3e   : > { %v6009_v27 = vpop.f32.mrf.mxu1  ;;  %8280 = vmatprep.subr.bf16.mxu1 %v11269_v11  ;;  %v11307_v11 = vld [vmem:[#allocation20 + $0xb0] ss:$12 sps:$4 sm:$0xff]   ;;  %v11325_v41 = vld [vmem:[#allocation20 + $0x8d4] ss:$12 sps:$4 sm:$0xff]  }
 0xc3f   : > { %v6010_v29 = vadd.f32 %v6009_v27, %v4184_v16  ;;  %v6052_v58 = vpop.f32.mrf.mxu0  ;;  %v6049_v12 = vadd.f32 %v12570_v15, %v6008_v0  ;;  %v11311_v15 = vld [vmem:[#allocation20 + $0x158] ss:$12 sps:$4 sm:$0xff]   ;;  %v11358_v0 = vld [vmem:[#allocation20 + $0x2f0] ss:$12 sps:$4 sm:$0xff]  }
 0xc40   : > { %v6011_v14 = vpop.f32.mrf.mxu1  ;;  %8306 = vmatpush1.bf16.msra.mxu0 %v11279_v17  ;;  %v11328_v58 = vld [vmem:[#allocation20 + $0x8b8] ss:$12 sps:$4 sm:$0xff]  }
 0xc41   : > { %v6051_v37 = vadd.f32 %v6050_v19, %v6010_v29  ;;  %v6053_v38 = vpop.f32.mrf.mxu0  ;;  %8281 = vmatpush2.bf16.msra.mxu1 %v11267_v24  ;;  %8307 = vmatprep.subr.bf16.mxu0 %v11287_v59  ;;  %v6145_v5 = vmax.f32 %v6049_v12, 0.0  ;;  %v11323_v19 = vld [vmem:[#allocation20 + $0x8d0] ss:$12 sps:$4 sm:$0xff]   ;;  %v11312_v24 = vld [vmem:[#allocation20 + $0x98] ss:$12 sps:$4 sm:$0xff]  }
 0xc42   : > { %v6012_v42 = vpop.f32.mrf.mxu1  ;;  %8282 = vmatprep.subr.bf16.mxu1 %v11272_v35  ;;  %v11330_v59 = vld [vmem:[#allocation20 + $0x8bc] ss:$12 sps:$4 sm:$0xff]   ;;  %v11316_v35 = vld [vmem:[#allocation20 + $0x140] ss:$12 sps:$4 sm:$0xff]   ;;  %v11351_v12 = vld [vmem:[#allocation20 + $0x458] ss:$12 sps:$4 sm:$0xff]  }
 0xc43   : > { %v6146_v46 = vmax.f32 %v6051_v37, 0.0  ;;  %v12581_v16 = vpack.c.bf16 %v6145_v5, %v6145_v5  ;;  %v11317_v14 = vld [vmem:[#allocation20 + $0x80] ss:$12 sps:$4 sm:$0xff]   ;;  %v11321_v38 = vld [vmem:[#allocation20 + $0x128] ss:$12 sps:$4 sm:$0xff]  }
 0xc44   : > { %8308 = vmatpush1.bf16.msra.mxu0 %v11285_v36  ;;  %v11335_v36 = vld [vmem:[#allocation20 + $0x8a4] ss:$12 sps:$4 sm:$0xff]  }
 0xc45   : > { %v12575_v33 = vpack.c.bf16 %v6146_v46, %v6146_v46  ;;  %8283 = vmatpush2.bf16.msra.mxu1 %v11270_v39  ;;  %8309 = vmatprep.subr.bf16.mxu0 %v11293_v40  ;;  %v11333_v39 = vld [vmem:[#allocation20 + $0x8a0] ss:$12 sps:$4 sm:$0xff]   ;;  %v11326_v42 = vld [vmem:[#allocation20 + $0x110] ss:$12 sps:$4 sm:$0xff]  }
 0xc46   : > { %8284 = vmatprep.subr.bf16.mxu1 %v11278_v45  ;;  %v11340_v40 = vld [vmem:[#allocation20 + $0x88c] ss:$12 sps:$4 sm:$0xff]   ;;  %v11338_v45 = vld [vmem:[#allocation20 + $0x888] ss:$12 sps:$4 sm:$0xff]   ;;  %v11327_v46 = vld [vmem:[#allocation20 + $0x50] ss:$12 sps:$4 sm:$0xff]  }
 0xc47   : > { %8294 = vmatprep.mubr.bf16.mxu1 %v12575_v33 }
 0xc48   : > { %8310 = vmatpush1.bf16.msra.mxu0 %v11291_v47  ;;  %v11345_v47 = vld [vmem:[#allocation20 + $0x874] ss:$12 sps:$4 sm:$0xff]  }
 0xc49   : > { %8285 = vmatpush2.bf16.msra.mxu1 %v11276_v48  ;;  %8311 = vmatprep.subr.bf16.mxu0 %v11299_v50  ;;  %v11331_v48 = vld [vmem:[#allocation20 + $0xf8] ss:$12 sps:$4 sm:$0xff]   ;;  %v11343_v50 = vld [vmem:[#allocation20 + $0x870] ss:$12 sps:$4 sm:$0xff]  }
 0xc4a   : > { %8286 = vmatprep.subr.bf16.mxu1 %v11284_v51  ;;  %v11332_v51 = vld [vmem:[#allocation20 + $0x38] ss:$12 sps:$4 sm:$0xff]  }
 0xc4c   : > { %8312 = vmatpush1.bf16.msra.mxu0 %v11297_v52  ;;  %v11350_v52 = vld [vmem:[#allocation20 + $0x85c] ss:$12 sps:$4 sm:$0xff]  }
 0xc4d   : > { %8287 = vmatpush2.bf16.msra.mxu1 %v11282_v53  ;;  %8313 = vmatprep.subr.bf16.mxu0 %v11305_v54  ;;  %v11336_v53 = vld [vmem:[#allocation20 + $0xe0] ss:$12 sps:$4 sm:$0xff]   ;;  %v11348_v54 = vld [vmem:[#allocation20 + $0x858] ss:$12 sps:$4 sm:$0xff]  }
 0xc4e   : > { %8288 = vmatprep.subr.bf16.mxu1 %v11290_v55  ;;  %v11355_v55 = vld [vmem:[#allocation20 + $0x844] ss:$12 sps:$4 sm:$0xff]  }
 0xc50   : > { %8314 = vmatpush1.bf16.msra.mxu0 %v11303_v60  ;;  %v11341_v60 = vld [vmem:[#allocation20 + $0xc8] ss:$12 sps:$4 sm:$0xff]  }
 0xc51   : > { %8289 = vmatpush2.bf16.msra.mxu1 %v11288_v62  ;;  %8315 = vmatprep.subr.bf16.mxu0 %v11310_v30  ;;  %v11353_v62 = vld [vmem:[#allocation20 + $0x840] ss:$12 sps:$4 sm:$0xff]   ;;  %v11342_v30 = vld [vmem:[#allocation20 + $0x8] ss:$12 sps:$4 sm:$0xff]  }
 0xc52   : > { %8290 = vmatprep.subr.bf16.mxu1 %v11296_v1  ;;  %v11346_v1 = vld [vmem:[#allocation20 + $0x470] ss:$12 sps:$4 sm:$0xff]  }
 0xc54   : > { %8316 = vmatpush1.bf16.msra.mxu0 %v11308_v61  ;;  %v4188_v61 = vrot.slane %v12568_v7, %v12246_v9 }
 0xc55   : > { %8291 = vmatpush2.bf16.msra.mxu1 %v11294_v2  ;;  %8317 = vmatprep.subr.bf16.mxu0 %v11315_v63  ;;  %v11347_v2 = vld [vmem:[#allocation20 + $0x3b0] ss:$12 sps:$4 sm:$0xff]   ;;  %v4192_v63 = vrot.slane %v12568_v7, %v4159_v31  ;;  %v11357_v7 = vld [vmem:[#allocation20 + $0x380] ss:$12 sps:$4 sm:$0xff]  }
 0xc56   : > { %8292 = vmatprep.subr.bf16.mxu1 %v11302_v22 }
 0xc58   : > { %8318 = vmatpush1.bf16.msra.mxu0 %v11313_v3 }
 0xc59   : > { %8293 = vmatpush2.bf16.msra.mxu1 %v11300_v25  ;;  %8319 = vmatprep.subr.bf16.mxu0 %v11320_v4  ;;  %v11352_v4 = vld [vmem:[#allocation20 + $0x398] ss:$12 sps:$4 sm:$0xff]  }
 0xc5a   : > { %9783 = vmatprep.subr.bf16.mxu1 %v11306_v23 }
 0xc5c   : > { %v12583_v17 = vpop.f32.mrf.mxu1  ;;  %8295 = vmatmul.mubr.bf16.vlgmr.msra.gmra.mxu1 %v12581_v16  ;;  %8320 = vmatpush2.bf16.msra.mxu0 %v11318_v13  ;;  %v11356_v13 = vld [vmem:[#allocation20 + $0x440] ss:$12 sps:$4 sm:$0xff]  }
 0xc5d   : > { %9784 = vmatpush3.bf16.msra.mxu1 %v11307_v11  ;;  %8376 = vmatprep.mubr.bf16.mxu1 %v12507_v57  ;;  %v11322_v57 = vld [vmem:[#allocation20 + $0x68] ss:$12 sps:$4 sm:$0xff]  }
 0xc5e   : > { %v12587_v27 = vpop.f32.mrf.mxu1  ;;  %9785 = vmatprep.subr.bf16.mxu1 %v11311_v15  ;;  %8321 = vmatprep.subr.bf16.mxu0 %v11325_v41 }
 0xc60   : > { %v6134_v29 = vpop.f32.mrf.mxu1  ;;  %8322 = vmatpush2.bf16.msra.mxu0 %v11323_v19 }
 0xc61   : > { %9786 = vmatpush3.bf16.msra.mxu1 %v11312_v24  ;;  %8323 = vmatprep.subr.bf16.mxu0 %v11330_v59  ;;  %v11359_v24 = vld [vmem:[#allocation20 + $0x230] ss:$12 sps:$4 sm:$0xff]   ;;  %v11362_v59 = vld [vmem:[#allocation20 + $0x2d8] ss:$12 sps:$4 sm:$0xff]  }
 0xc62   : > { %v6135_v37 = vpop.f32.mrf.mxu1  ;;  %9787 = vmatprep.subr.bf16.mxu1 %v11316_v35  ;;  %v11364_v35 = vld [vmem:[#allocation20 + $0x410] ss:$12 sps:$4 sm:$0xff]  }
 0xc63   : > { %v11365_v29 = vld [vmem:[#allocation20 + $0x350] ss:$12 sps:$4 sm:$0xff]   ;;  %v11369_v37 = vld [vmem:[#allocation20 + $0x338] ss:$12 sps:$4 sm:$0xff]  }
 0xc64   : > { %8324 = vmatpush2.bf16.msra.mxu0 %v11328_v58  ;;  %v11366_v58 = vld [vmem:[#allocation20 + $0x2c0] ss:$12 sps:$4 sm:$0xff]  }
 0xc65   : > { %9788 = vmatpush3.bf16.msra.mxu1 %v11317_v14  ;;  %8325 = vmatprep.subr.bf16.mxu0 %v11335_v36  ;;  %v11368_v14 = vld [vmem:[#allocation20 + $0x3f8] ss:$12 sps:$4 sm:$0xff]   ;;  %v11367_v36 = vld [vmem:[#allocation20 + $0x200] ss:$12 sps:$4 sm:$0xff]  }
 0xc66   : > { %9789 = vmatprep.subr.bf16.mxu1 %v11321_v38  ;;  %v11370_v38 = vld [vmem:[#allocation20 + $0x2a8] ss:$12 sps:$4 sm:$0xff]  }
 0xc68   : > { %8326 = vmatpush2.bf16.msra.mxu0 %v11333_v39  ;;  %v11372_v39 = vld [vmem:[#allocation20 + $0x3e0] ss:$12 sps:$4 sm:$0xff]  }
 0xc69   : > { %9790 = vmatpush3.bf16.msra.mxu1 %v11322_v57  ;;  %8327 = vmatprep.subr.bf16.mxu0 %v11340_v40  ;;  %v11371_v57 = vld [vmem:[#allocation20 + $0x1e8] ss:$12 sps:$4 sm:$0xff]   ;;  %v11374_v40 = vld [vmem:[#allocation20 + $0x290] ss:$12 sps:$4 sm:$0xff]  }
 0xc6a   : > { %9791 = vmatprep.subr.bf16.mxu1 %v11326_v42  ;;  %v11376_v42 = vld [vmem:[#allocation20 + $0x3c8] ss:$12 sps:$4 sm:$0xff]  }
 0xc6c   : > { %8328 = vmatpush2.bf16.msra.mxu0 %v11338_v45  ;;  %v11375_v45 = vld [vmem:[#allocation20 + $0x1d0] ss:$12 sps:$4 sm:$0xff]  }
 0xc6d   : > { %9792 = vmatpush3.bf16.msra.mxu1 %v11327_v46  ;;  %8329 = vmatprep.subr.bf16.mxu0 %v11345_v47  ;;  %v11377_v46 = vld [vmem:[#allocation20 + $0x308] ss:$12 sps:$4 sm:$0xff]   ;;  %v11378_v47 = vld [vmem:[#allocation20 + $0x278] ss:$12 sps:$4 sm:$0xff]  }
 0xc6e   : > { %9793 = vmatprep.subr.bf16.mxu1 %v11331_v48  ;;  %v11380_v48 = vld [vmem:[#allocation20 + $0x770] ss:$12 sps:$4 sm:$0xff]  }
 0xc70   : > { %8330 = vmatpush2.bf16.msra.mxu0 %v11343_v50  ;;  %v11379_v50 = vld [vmem:[#allocation20 + $0x1b8] ss:$12 sps:$4 sm:$0xff]  }
 0xc71   : > { %9794 = vmatpush3.bf16.msra.mxu1 %v11332_v51  ;;  %8331 = vmatprep.subr.bf16.mxu0 %v11350_v52  ;;  %v11381_v51 = vld [vmem:[#allocation20 + $0x6b0] ss:$12 sps:$4 sm:$0xff]   ;;  %v11382_v52 = vld [vmem:[#allocation20 + $0x260] ss:$12 sps:$4 sm:$0xff]  }
 0xc72   : > { %9795 = vmatprep.subr.bf16.mxu1 %v11336_v53  ;;  %v11384_v53 = vld [vmem:[#allocation20 + $0x758] ss:$12 sps:$4 sm:$0xff]  }
 0xc74   : > { %8332 = vmatpush2.bf16.msra.mxu0 %v11348_v54 }
 0xc75   : > { %9796 = vmatpush3.bf16.msra.mxu1 %v11337_v43  ;;  %8333 = vmatprep.subr.bf16.mxu0 %v11355_v55  ;;  %v11383_v43 = vld [vmem:[#allocation20 + $0x1a0] ss:$12 sps:$4 sm:$0xff]   ;;  %v11385_v55 = vld [vmem:[#allocation20 + $0x698] ss:$12 sps:$4 sm:$0xff]  }
 0xc76   : > { %9797 = vmatprep.subr.bf16.mxu1 %v11341_v60  ;;  %v11386_v60 = vld [vmem:[#allocation20 + $0x248] ss:$12 sps:$4 sm:$0xff]  }
 0xc78   : > { %8334 = vmatpush2.bf16.msra.mxu0 %v11353_v62 }
 0xc79   : > { %9798 = vmatpush3.bf16.msra.mxu1 %v11342_v30  ;;  %9805 = vmatprep.subr.bf16.mxu0 %v11358_v0  ;;  %v11388_v30 = vld [vmem:[#allocation20 + $0x740] ss:$12 sps:$4 sm:$0xff]  }
 0xc7a   : > { %9827 = vmatprep.subr.bf16.mxu1 %v11346_v1  ;;  %v11387_v1 = vld [vmem:[#allocation20 + $0x188] ss:$12 sps:$4 sm:$0xff]  }
 0xc7b   : > { %v6089_v22 = vpop.f32.mrf.mxu0 }
 0xc7c   : > { %v6090_v3 = vadd.f32 %v6089_v22, %v4188_v61  ;;  %8377 = vmatmul.mubr.bf16.vlgmr.msra.gmra.mxu1 %v12528_v21  ;;  %v11360_v21 = vld [vmem:[#allocation20 + $0x428] ss:$12 sps:$4 sm:$0xff]   ;;  %v11389_v61 = vld [vmem:[#allocation20 + $0x680] ss:$12 sps:$4 sm:$0xff]   ;;  %v11394_v22 = vld [vmem:[#allocation20 + $0x5d8] ss:$12 sps:$4 sm:$0xff]  }
 0xc7d   : > { %v6091_v25 = vpop.f32.mrf.mxu0  ;;  %9828 = vmatpush3.bf16.msra.mxu1 %v11347_v2  ;;  %8456 = vmatprep.mubr.bf16.mxu1 %v12536_v28  ;;  %v11390_v2 = vld [vmem:[#allocation20 + $0x5f0] ss:$12 sps:$4 sm:$0xff]  }
 0xc7e   : > { %v6131_v5 = vadd.f32 %v12583_v17, %v6090_v3  ;;  %v6092_v23 = vadd.f32 %v6091_v25, %v4192_v63  ;;  %9829 = vmatprep.subr.bf16.mxu1 %v11351_v12  ;;  %v11361_v17 = vld [vmem:[#allocation20 + $0x368] ss:$12 sps:$4 sm:$0xff]   ;;  %v11391_v12 = vld [vmem:[#allocation20 + $0x530] ss:$12 sps:$4 sm:$0xff]   ;;  %v11395_v25 = vld [vmem:[#allocation20 + $0x518] ss:$12 sps:$4 sm:$0xff]  }
 0xc7f   : > { %v6093_v11 = vpop.f32.mrf.mxu0  ;;  %v11396_v3 = vld [vmem:[#allocation20 + $0x710] ss:$12 sps:$4 sm:$0xff]  }
 0xc80   : > { %v6133_v6 = vadd.f32 %v12587_v27, %v6092_v23  ;;  %v6147_v15 = vmax.f32 %v6131_v5, 0.0  ;;  %v11363_v27 = vld [vmem:[#allocation20 + $0x218] ss:$12 sps:$4 sm:$0xff]   ;;  %v11398_v5 = vld [vmem:[#allocation20 + $0x5c0] ss:$12 sps:$4 sm:$0xff]  }
 0xc81   : > { %v6094_v31 = vpop.f32.mrf.mxu0  ;;  %9830 = vmatpush3.bf16.msra.mxu1 %v11352_v4  ;;  %v11397_v4 = vld [vmem:[#allocation20 + $0x650] ss:$12 sps:$4 sm:$0xff]   ;;  %v11400_v23 = vld [vmem:[#allocation20 + $0x6f8] ss:$12 sps:$4 sm:$0xff]  }
 0xc82   : > { %v6148_v41 = vmax.f32 %v6133_v6, 0.0  ;;  %9831 = vmatprep.subr.bf16.mxu1 %v11356_v13  ;;  %v12600_v28 = vpack.c.bf16 %v6147_v15, %v6147_v15  ;;  %v11399_v13 = vld [vmem:[#allocation20 + $0x500] ss:$12 sps:$4 sm:$0xff]   ;;  %v11401_v11 = vld [vmem:[#allocation20 + $0x638] ss:$12 sps:$4 sm:$0xff]  }
 0xc83   : > { %v11402_v6 = vld [vmem:[#allocation20 + $0x5a8] ss:$12 sps:$4 sm:$0xff]   ;;  %v11404_v15 = vld [vmem:[#allocation20 + $0x6e0] ss:$12 sps:$4 sm:$0xff]   ;;  %v11406_v31 = vld [vmem:[#allocation20 + $0x590] ss:$12 sps:$4 sm:$0xff]  }
 0xc84   : > { %v12598_v19 = vpack.c.bf16 %v6148_v41, %v6148_v41  ;;  %v12613_v41 = vld [vmem:[#allocation22] sm:$0x7] }
 0xc85   : > { %9832 = vmatpush3.bf16.msra.mxu1 %v11357_v7  ;;  %v11408_v7 = vld [vmem:[#allocation20 + $0x6c8] ss:$12 sps:$4 sm:$0xff]  }
 0xc86   : > { %8335 = vmatprep.mubr.bf16.mxu0 %v12598_v19  ;;  %9833 = vmatprep.subr.bf16.mxu1 %v11360_v21  ;;  %v11407_v21 = vld [vmem:[#allocation20 + $0x4d0] ss:$12 sps:$4 sm:$0xff]  }
 0xc87   : > { %8336 = vmatmul.mubr.bf16.vlgmr.msra.gmra.mxu0 %v12600_v28 }
 0xc88   : > { %9806 = vmatpush3.bf16.msra.mxu0 %v11359_v24  ;;  %8416 = vmatprep.mubr.bf16.mxu0 %v12523_v56  ;;  %v11373_v56 = vld [vmem:[#allocation20 + $0x320] ss:$12 sps:$4 sm:$0xff]   ;;  %v11409_v24 = vld [vmem:[#allocation20 + $0x608] ss:$12 sps:$4 sm:$0xff]  }
 0xc89   : > { %9834 = vmatpush3.bf16.msra.mxu1 %v11361_v17  ;;  %9807 = vmatprep.subr.bf16.mxu0 %v11362_v59  ;;  %v11410_v17 = vld [vmem:[#allocation20 + $0x578] ss:$12 sps:$4 sm:$0xff]   ;;  %v6550_v59 = vrot.slane %v12613_v41, %v12249_v10 }
 0xc8a   : > { %9835 = vmatprep.subr.bf16.mxu1 %v11364_v35  ;;  %v6554_v35 = vrot.slane %v12613_v41, %v12243_v8 }
 0xc8c   : > { %9808 = vmatpush3.bf16.msra.mxu0 %v11363_v27  ;;  %v11411_v27 = vld [vmem:[#allocation20 + $0x4b8] ss:$12 sps:$4 sm:$0xff]  }
 0xc8d   : > { %9836 = vmatpush3.bf16.msra.mxu1 %v11365_v29  ;;  %9809 = vmatprep.subr.bf16.mxu0 %v11366_v58  ;;  %v11412_v29 = vld [vmem:[#allocation20 + $0x560] ss:$12 sps:$4 sm:$0xff]  }
 0xc8e   : > { %9837 = vmatprep.subr.bf16.mxu1 %v11368_v14 }
 0xc90   : > { %9810 = vmatpush3.bf16.msra.mxu0 %v11367_v36 }
 0xc91   : > { %9838 = vmatpush3.bf16.msra.mxu1 %v11369_v37  ;;  %9811 = vmatprep.subr.bf16.mxu0 %v11370_v38  ;;  %v11413_v38 = vld [vmem:[#allocation20 + $0x4a0] ss:$12 sps:$4 sm:$0xff]  }
 0xc92   : > { %9839 = vmatprep.subr.bf16.mxu1 %v11372_v39  ;;  %v11414_v39 = vld [vmem:[#allocation20 + $0x548] ss:$12 sps:$4 sm:$0xff]  }
 0xc94   : > { %9812 = vmatpush3.bf16.msra.mxu0 %v11371_v57 }
 0xc95   : > { %9840 = vmatpush3.bf16.msra.mxu1 %v11373_v56  ;;  %9813 = vmatprep.subr.bf16.mxu0 %v11374_v40  ;;  %v11415_v56 = vld [vmem:[#allocation20 + $0x488] ss:$12 sps:$4 sm:$0xff]  }
 0xc96   : > { %9841 = vmatprep.subr.bf16.mxu1 %v11376_v42  ;;  %v11416_v42 = vld [vmem:[#allocation20 + $0x8f0] ss:$12 sps:$4 sm:$0xff]  }
 0xc98   : > { %9814 = vmatpush3.bf16.msra.mxu0 %v11375_v45  ;;  %v11417_v45 = vld [vmem:[#allocation20 + $0x830] ss:$12 sps:$4 sm:$0xff]  }
 0xc99   : > { %9842 = vmatpush3.bf16.msra.mxu1 %v11377_v46  ;;  %9815 = vmatprep.subr.bf16.mxu0 %v11378_v47  ;;  %v11418_v46 = vld [vmem:[#allocation20 + $0x8d8] ss:$12 sps:$4 sm:$0xff]   ;;  %v11420_v47 = vld [vmem:[#allocation20 + $0x8c0] ss:$12 sps:$4 sm:$0xff]  }
 0xc9a   : > { %9871 = vmatprep.subr.bf16.mxu1 %v11380_v48  ;;  %v11421_v48 = vld [vmem:[#allocation20 + $0x800] ss:$12 sps:$4 sm:$0xff]  }
 0xc9c   : > { %9816 = vmatpush3.bf16.msra.mxu0 %v11379_v50  ;;  %v12605_v54 = vpop.f32.mrf.mxu1  ;;  %8457 = vmatmul.mubr.bf16.vlgmr.msra.gmra.mxu1 %v12555_v18  ;;  %v11392_v18 = vld [vmem:[#allocation20 + $0x728] ss:$12 sps:$4 sm:$0xff]  }
 0xc9d   : > { %9872 = vmatpush3.bf16.msra.mxu1 %v11381_v51  ;;  %8536 = vmatprep.mubr.bf16.mxu1 %v12575_v33  ;;  %v11393_v33 = vld [vmem:[#allocation20 + $0x668] ss:$12 sps:$4 sm:$0xff]   ;;  %v8133_v58 = vadd.f32 %v12605_v54, %v6550_v59  ;;  %v11426_v54 = vld [vmem:[#allocation20 + $0x878] ss:$12 sps:$4 sm:$0xff]  }
 0xc9e   : > { %v12609_v62 = vpop.f32.mrf.mxu1  ;;  %9817 = vmatprep.subr.bf16.mxu0 %v11382_v52  ;;  %9873 = vmatprep.subr.bf16.mxu1 %v11384_v53  ;;  %v11422_v50 = vld [vmem:[#allocation20 + $0x8a8] ss:$12 sps:$4 sm:$0xff]   ;;  %v11424_v52 = vld [vmem:[#allocation20 + $0x890] ss:$12 sps:$4 sm:$0xff]  }
 0xc9f   : > { %v8135_v36 = vadd.f32 %v12609_v62, %v6554_v35  ;;  %v11423_v51 = vld [vmem:[#allocation20 + $0x7e8] ss:$12 sps:$4 sm:$0xff]   ;;  %v11425_v53 = vld [vmem:[#allocation20 + $0x7d0] ss:$12 sps:$4 sm:$0xff]  }
 0xca0   : > { %9818 = vmatpush3.bf16.msra.mxu0 %v11383_v43  ;;  %v8136_v0 = vpop.f32.mrf.mxu1  ;;  %v11428_v43 = vld [vmem:[#allocation20 + $0x860] ss:$12 sps:$4 sm:$0xff]   ;;  %v11430_v62 = vld [vmem:[#allocation20 + $0x848] ss:$12 sps:$4 sm:$0xff]  }
 0xca1   : > { %9874 = vmatpush3.bf16.msra.mxu1 %v11385_v55  ;;  %9819 = vmatprep.subr.bf16.mxu0 %v11386_v60  ;;  %v11429_v55 = vld [vmem:[#allocation20 + $0x7a0] ss:$12 sps:$4 sm:$0xff]  }
 0xca2   : > { %v8137_v63 = vpop.f32.mrf.mxu1  ;;  %9875 = vmatprep.subr.bf16.mxu1 %v11388_v30 }
 0xca4   : > { %9820 = vmatpush3.bf16.msra.mxu0 %v11387_v1 }
 0xca5   : > { %9876 = vmatpush3.bf16.msra.mxu1 %v11389_v61  ;;  %9849 = vmatprep.subr.bf16.mxu0 %v11390_v2  ;;  %v11431_v61 = vld [vmem:[#allocation20 + $0x788] ss:$12 sps:$4 sm:$0xff]  }
 0xca6   : > { %9877 = vmatprep.subr.bf16.mxu1 %v11392_v18 }
 0xca7   : > { %8417 = vmatmul.mubr.bf16.vlgmr.msra.gmra.mxu0 %v12543_v20  ;;  %v11403_v20 = vld [vmem:[#allocation20 + $0x4e8] ss:$12 sps:$4 sm:$0xff]  }
 0xca8   : > { %9850 = vmatpush3.bf16.msra.mxu0 %v11391_v12  ;;  %8496 = vmatprep.mubr.bf16.mxu0 %v12560_v34  ;;  %v11405_v34 = vld [vmem:[#allocation20 + $0x620] ss:$12 sps:$4 sm:$0xff]  }
 0xca9   : > { %9878 = vmatpush3.bf16.msra.mxu1 %v11393_v33  ;;  %9851 = vmatprep.subr.bf16.mxu0 %v11394_v22 }
 0xcaa   : > { %9879 = vmatprep.subr.bf16.mxu1 %v11396_v3 }
 0xcac   : > { %9852 = vmatpush3.bf16.msra.mxu0 %v11395_v25 }
 0xcad   : > { %9880 = vmatpush3.bf16.msra.mxu1 %v11397_v4  ;;  %9853 = vmatprep.subr.bf16.mxu0 %v11398_v5 }
 0xcae   : > { %9881 = vmatprep.subr.bf16.mxu1 %v11400_v23 }
 0xcb0   : > { %9854 = vmatpush3.bf16.msra.mxu0 %v11399_v13 }
 0xcb1   : > { %9882 = vmatpush3.bf16.msra.mxu1 %v11401_v11  ;;  %9855 = vmatprep.subr.bf16.mxu0 %v11402_v6 }
 0xcb2   : > { %9883 = vmatprep.subr.bf16.mxu1 %v11404_v15 }
 0xcb4   : > { %9856 = vmatpush3.bf16.msra.mxu0 %v11403_v20 }
 0xcb5   : > { %9884 = vmatpush3.bf16.msra.mxu1 %v11405_v34  ;;  %9857 = vmatprep.subr.bf16.mxu0 %v11406_v31 }
 0xcb6   : > { %9885 = vmatprep.subr.bf16.mxu1 %v11408_v7 }
 0xcb8   : > { %9858 = vmatpush3.bf16.msra.mxu0 %v11407_v21 }
 0xcb9   : > { %9886 = vmatpush3.bf16.msra.mxu1 %v11409_v24  ;;  %9859 = vmatprep.subr.bf16.mxu0 %v11410_v17 }
 0xcbb   : > { %v8173_v14 = vpop.f32.mrf.mxu0 }
 0xcbc   : > { %v8174_v37 = vadd.f32 %v8173_v14, %v8133_v58  ;;  %9860 = vmatpush3.bf16.msra.mxu0 %v11411_v27  ;;  %8537 = vmatmul.mubr.bf16.vlgmr.msra.gmra.mxu1 %v12581_v16  ;;  %v11419_v16 = vld [vmem:[#allocation20 + $0x818] ss:$12 sps:$4 sm:$0xff]  }
 0xcbd   : > { %v8175_v10 = vpop.f32.mrf.mxu0  ;;  %9861 = vmatprep.subr.bf16.mxu0 %v11412_v29 }
 0xcbe   : > { %v8176_v57 = vadd.f32 %v8175_v10, %v8135_v36 }
 0xcbf   : > { %v8177_v8 = vpop.f32.mrf.mxu0 }
 0xcc0   : > { %9862 = vmatpush3.bf16.msra.mxu0 %v11413_v38 }
 0xcc1   : > { %v8178_v40 = vpop.f32.mrf.mxu0  ;;  %9863 = vmatprep.subr.bf16.mxu0 %v11414_v39 }
 0xcc4   : > { %9864 = vmatpush3.bf16.msra.mxu0 %v11415_v56 }
 0xcc5   : > { %9893 = vmatprep.subr.bf16.mxu0 %v11416_v42 }
 0xcc7   : > { %8497 = vmatmul.mubr.bf16.vlgmr.msra.gmra.mxu0 %v12566_v32  ;;  %v11427_v32 = vld [vmem:[#allocation20 + $0x7b8] ss:$12 sps:$4 sm:$0xff]  }
 0xcc8   : > { %9894 = vmatpush3.bf16.msra.mxu0 %v11417_v45  ;;  %8576 = vmatprep.mubr.bf16.mxu0 %v12598_v19 }
 0xcc9   : > { %9895 = vmatprep.subr.bf16.mxu0 %v11418_v46 }
 0xccc   : > { %9896 = vmatpush3.bf16.msra.mxu0 %v11419_v16 }
 0xccd   : > { %9897 = vmatprep.subr.bf16.mxu0 %v11420_v47 }
 0xcd0   : > { %9898 = vmatpush3.bf16.msra.mxu0 %v11421_v48 }
 0xcd1   : > { %9899 = vmatprep.subr.bf16.mxu0 %v11422_v50 }
 0xcd4   : > { %9900 = vmatpush3.bf16.msra.mxu0 %v11423_v51 }
 0xcd5   : > { %9901 = vmatprep.subr.bf16.mxu0 %v11424_v52 }
 0xcd8   : > { %9902 = vmatpush3.bf16.msra.mxu0 %v11425_v53 }
 0xcd9   : > { %9903 = vmatprep.subr.bf16.mxu0 %v11426_v54 }
 0xcdc   : > { %9904 = vmatpush3.bf16.msra.mxu0 %v11427_v32  ;;  %v8214_v19 = vpop.f32.mrf.mxu1 }
 0xcdd   : > { %v8215_v60 = vadd.f32 %v8214_v19, %v8174_v37  ;;  %9905 = vmatprep.subr.bf16.mxu0 %v11428_v43 }
 0xcde   : > { %v8216_v30 = vpop.f32.mrf.mxu1 }
 0xcdf   : > { %v8217_v0 = vadd.f32 %v8216_v30, %v8176_v57 }
 0xce0   : > { %9906 = vmatpush3.bf16.msra.mxu0 %v11429_v55  ;;  %v8218_v1 = vpop.f32.mrf.mxu1 }
 0xce1   : > { %9907 = vmatprep.subr.bf16.mxu0 %v11430_v62 }
 0xce2   : > { %v8219_v2 = vpop.f32.mrf.mxu1 }
 0xce4   : > { %9908 = vmatpush3.bf16.msra.mxu0 %v11431_v61 }
 0xce7   : > { %8577 = vmatmul.mubr.bf16.vlgmr.msra.gmra.mxu0 %v12600_v28 }
 0xcfb   : > { %v8255_v63 = vpop.f32.mrf.mxu0 }
 0xcfc   : > { %v8256_v18 = vadd.f32 %v8255_v63, %v8215_v60 }
 0xcfd   : > { %v8257_v12 = vpop.f32.mrf.mxu0 }
 0xcfe   : > { %v8258_v33 = vadd.f32 %v8257_v12, %v8217_v0 }
 0xcff   : > { %v8259_v22 = vpop.f32.mrf.mxu0 }
 0xd01   : > { %v8260_v3 = vpop.f32.mrf.mxu0 }
 0xd1c   : > { %v8296_v25 = vpop.f32.mrf.mxu1 }
 0xd1d   : > { %v8297_v34 = vadd.f32 %v8296_v25, %v8256_v18 }
 0xd1e   : > { %v8298_v4 = vpop.f32.mrf.mxu1 }
 0xd1f   : > { %v8299_v7 = vadd.f32 %v8298_v4, %v8258_v33 }
 0xd20   : > { %v8300_v5 = vpop.f32.mrf.mxu1 }
 0xd22   : > { %v8301_v23 = vpop.f32.mrf.mxu1 }
 0xd3c   : > { %v9799_v13 = vpop.f32.mrf.mxu1 }
 0xd3e   : > { %v9800_v11 = vpop.f32.mrf.mxu1 }
 0xd3f   : > { %v9801_v6 = vadd.f32 %v9800_v11, %v9799_v13 }
 0xd40   : > { %v9802_v15 = vpop.f32.mrf.mxu1 }
 0xd42   : > { %v9803_v20 = vpop.f32.mrf.mxu1 }
 0xd47   : > { %v8337_v31 = vpop.f32.mrf.mxu0 }
 0xd48   : > { %v8338_v28 = vadd.f32 %v8337_v31, %v8297_v34 }
 0xd49   : > { %v8339_v21 = vpop.f32.mrf.mxu0 }
 0xd4a   : > { %v8584_v24 = vadd.f32 %v8338_v28, %v12440_v26  ;;  %v8340_v17 = vadd.f32 %v8339_v21, %v8299_v7  ;;  %v6558_v26 = vrot.slane %v12613_v41, %v12246_v9 }
 0xd4b   : > { %v8341_v59 = vpop.f32.mrf.mxu0 }
 0xd4c   : > { %8587 = vst [vmem:[%s12628_s4] sm:$0xff] %v8584_v24  ;;  %v8585_v35 = vadd.f32 %v8340_v17, %v12437_v44  ;;  %v8379_v39 = vadd.f32 %v9801_v6, %v6558_v26 }
 0xd4d   : > { %v8342_v27 = vpop.f32.mrf.mxu0 }
 0xd4e   : > { %8588 = vst [vmem:[%s12628_s4 + $0x8] sm:$0xff] %v8585_v35 }
 0xd5c   : > { %v9843_v29 = vpop.f32.mrf.mxu1 }
 0xd5e   : > { %v9844_v58 = vpop.f32.mrf.mxu1 }
 0xd5f   : > { %v9845_v14 = vadd.f32 %v9844_v58, %v9843_v29 }
 0xd60   : > { %v9846_v36 = vpop.f32.mrf.mxu1 }
 0xd62   : > { %v9847_v37 = vpop.f32.mrf.mxu1 }
 0xd67   : > { %v9821_v38 = vpop.f32.mrf.mxu0 }
 0xd69   : > { %v9822_v10 = vpop.f32.mrf.mxu0 }
 0xd6a   : > { %v9823_v57 = vadd.f32 %v9822_v10, %v9821_v38 }
 0xd6b   : > { %v9824_v8 = vpop.f32.mrf.mxu0 }
 0xd6c   : > { %v8419_v56 = vadd.f32 %v9823_v57, %v8379_v39 }
 0xd6d   : > { %v9825_v40 = vpop.f32.mrf.mxu0 }
 0xd6e   : > { %v8459_v42 = vadd.f32 %v9845_v14, %v8419_v56 }
 0xd7c   : > { %v9887_v44 = vpop.f32.mrf.mxu1 }
 0xd7e   : > { %v9888_v45 = vpop.f32.mrf.mxu1 }
 0xd7f   : > { %v9889_v53 = vadd.f32 %v9888_v45, %v9887_v44 }
 0xd80   : > { %v9890_v46 = vpop.f32.mrf.mxu1 }
 0xd82   : > { %v9891_v16 = vpop.f32.mrf.mxu1 }
 0xd87   : > { %v9865_v47 = vpop.f32.mrf.mxu0 }
 0xd89   : > { %v9866_v48 = vpop.f32.mrf.mxu0 }
 0xd8a   : > { %v9867_v9 = vadd.f32 %v9866_v48, %v9865_v47 }
 0xd8b   : > { %v9868_v50 = vpop.f32.mrf.mxu0 }
 0xd8c   : > { %v8499_v41 = vadd.f32 %v9867_v9, %v8459_v42 }
 0xd8d   : > { %v9869_v51 = vpop.f32.mrf.mxu0 }
 0xd8e   : > { %v8539_v32 = vadd.f32 %v9889_v53, %v8499_v41 }
 0xda7   : > { %v9909_v52 = vpop.f32.mrf.mxu0 }
 0xda9   : > { %v9910_v54 = vpop.f32.mrf.mxu0 }
 0xdaa   : > { %v9911_v43 = vadd.f32 %v9910_v54, %v9909_v52 }
 0xdab   : > { %v9912_v19 = vpop.f32.mrf.mxu0 }
 0xdac   : > { %v8579_v55 = vadd.f32 %v9911_v43, %v8539_v32 }
 0xdad   : > { %v9913_v60 = vpop.f32.mrf.mxu0 }
 0xdae   : > { %v8586_v62 = vadd.f32 %v8579_v55, %v12443_v49 }
 0xdb0   : > { %8589 = vst [vmem:[%s12628_s4 + $0x10] sm:$0xff] %v8586_v62 }
 0xdb1   : > { %11816 = shalt.err (!%p11813_p11)
}
 0xdb2   : > { %s11817_s24 = scalar_lea.hbm %s8603_s3, 384  ;;  %s11821_s7 = scalar_lea.hbm %s12686_s13, 768 }
 0xdb3   : > { %p11818_p12 = scmp.ne.s32.totalorder %s8603_s3, %s11817_s24  ;;  %p11822_p1 = scmp.lt.s32.totalorder %s8603_s3, %s12686_s13 }
 0xdb4   : > { %p11823_p5 = scmp.lt.s32.totalorder %s11821_s7, %s11817_s24 }
 0xdb5   : > { %p11819_p6 = pnand %p11818_p12, %p12733_p13 }
 0xdb6   : > { %p11824_p8 = por %p11823_p5, %p11822_p1 }
 0xdb7   : > { %p11820_p0 = pneg %p11819_p6 }
 0xdb9   : > { %p11825_p9 = pnand %p11824_p8, %p11820_p0 }
 0xdbb   : > { %11828 = shalt.err (!%p11825_p9)
}
 0xdbc   : > { %10081 = dma.vmem_to_hbm [thread:$0]  (%p12733_p13), %s8606_s19, 384, %s8603_s3, %s8591_s22  }
 0xdbd PF: > { %s8617_s4 = sand.u32 1, %s11879_s25   ;;  %p12734_p3 = scmp.ne.s32.totalorder %s12717_s18, 0 }
 0xdbe   : > { %p12735_p4 = scmp.ge.s32.totalorder %s11891_s28, 2  ;;  %s8618_s15 = scalar_lea.sflag [#allocation4], %s8617_s4 }
 0xdc0   : > { %p10125_p2 = pnand %p12735_p4, %p12734_p3 }
 0xdc2   : > { %p10126_p7 = pneg %p10125_p2 }
 0xdc4   : > { %11874 = dma.done.wait (%p10126_p7), %s8618_s15, 384  }
 0xdc5   : > { %11876 = vsyncadd (%p10126_p7), %s8618_s15, 4294966912  ;;  %p32_p10 = scmp.ge.s32.totalorder %s12131_s20, 4   ;;  %s12736_s25 = smov %s11883_s26 }
 0xdc6   : > { %s12737_s26 = smov %s11887_s27  ;;  %s12738_s27 = smov %s12142_s17 }
 0xdc7   : > { %s12739_s28 = smov %s12131_s20  ;;  %34 = sbr.rel (!%p32_p10) target bundleno = 20 (0x14), region = 165 }
 0xdcc   :  { %8623 = vsyncpa [#allocation3], 1 }
 0xdcd   :  { %8625 = vsyncpa [#allocation3 + $0x1], 1 }
 0xdce   :  { %8626 = vsyncpa [#allocation6], 1 }
 0xdcf   :  { %8627 = vsyncpa [#allocation9], 1 }
 0xdd0   :  { %8628 = vsyncpa [#allocation12], 1 }
 0xdd1   :  { %8629 = vsyncpa [#allocation15], 1 }
 0xdd2   :  { %8630 = vsyncpa [#allocation18], 1 }
 0xdd3   :  { %8631 = vsyncpa [#allocation21], 1 }
 0xdd4   :  { %8632 = vsyncpa [#allocation4], 1 }
 0xdd5   :  { %8634 = vsyncpa [#allocation4 + $0x1], 1 }

</bundles_post_ra>
